<compile_context>
chip_gen: v7x
topology: tpu7x:2x2x1
jax: 0.10.0
libtpu: 0.0.40
codegen_flags: <defaults>
</compile_context>

<pallas_src>
import functools

import jax
import jax.numpy as jnp
from jax.experimental import pallas as pl
from jax.experimental.pallas import tpu as pltpu


# ------------------------------ fused kernel --------------------------------

def _convsc_fused_kernel(x_ref, *args, K, has_res, has_readout, eps):
    """Fused ConvSC layer for one NHWC batch element.

    conv(KxK, stride 1, 'same') + bias -> GroupNorm(2 groups over the conv
    output channels) -> affine -> SiLU, with optional fused residual add on the
    input and fused 1x1 readout matmul on the output.
    """
    idx = 0
    if has_res:
        res_ref = args[idx]; idx += 1
    w_ref, b_ref, g_ref, be_ref = args[idx:idx + 4]; idx += 4
    if has_readout:
        rw_ref, rb_ref = args[idx:idx + 2]; idx += 2
    o_ref, xp_ref, col_ref = args[idx:idx + 3]

    pad = K // 2
    _, H, W, Cin = x_ref.shape
    Cout = b_ref.shape[1]
    Hp, Wp = H + 2 * pad, W + 2 * pad

    # ---- input (+ fused residual) into the padded VMEM scratch ----
    x = x_ref[0].astype(jnp.float32)
    if has_res:
        x = x + res_ref[0].astype(jnp.float32)
    # Zero only the thin halo border each step (the interior is fully
    # overwritten below).  Per-step border zeroing (instead of a
    # program_id==0-gated full zero) stays correct when the batch axis is
    # sharded across TensorCores, and removes the full-tile store pass.
    zrow = jnp.zeros((pad, Wp, Cin), jnp.float32)
    zcol = jnp.zeros((H, pad, Cin), jnp.float32)
    xp_ref[0:pad, :, :] = zrow
    xp_ref[pad + H:Hp, :, :] = zrow
    xp_ref[pad:pad + H, 0:pad, :] = zcol
    xp_ref[pad:pad + H, pad + W:Wp, :] = zcol
    xp_ref[pad:pad + H, pad:pad + W, :] = x

    # ---- im2col into the bf16 col scratch: K*K plain stores, no lane concat ----
    for kh in range(K):                       # static unroll: K*K shifted windows
        for kw in range(K):
            kk = kh * K + kw
            win = xp_ref[kh:kh + H, kw:kw + W, :]                # (H, W, Cin)
            col_ref[:, kk * Cin:(kk + 1) * Cin] = (
                win.reshape(H * W, Cin).astype(jnp.bfloat16))

    # ---- one deep MXU matmul: bf16 operands, f32 accumulation ----
    acc = jnp.dot(col_ref[...], w_ref[...],
                  preferred_element_type=jnp.float32)            # (H*W, Cout)
    acc = acc + b_ref[...]

    # ---- GroupNorm(2 groups): two-stage stats ----
    # stage 1: per-channel row sums (sublane reduction, no full-tile masks)
    s_c = jnp.sum(acc, axis=0, keepdims=True)                    # (1, Cout)
    q_c = jnp.sum(acc * acc, axis=0, keepdims=True)              # (1, Cout)
    # stage 2: masked lane reduction on the tiny (1, Cout) rows
    half = Cout // 2
    cidx = jax.lax.broadcasted_iota(jnp.int32, (1, Cout), 1)
    hi = cidx >= half
    m_hi = hi.astype(jnp.float32)
    m_lo = 1.0 - m_hi
    n = jnp.float32(H * W * half)
    s_lo = jnp.sum(s_c * m_lo)
    s_hi = jnp.sum(s_c * m_hi)
    q_lo = jnp.sum(q_c * m_lo)
    q_hi = jnp.sum(q_c * m_hi)
    mean_lo, mean_hi = s_lo / n, s_hi / n
    var_lo = q_lo / n - mean_lo * mean_lo      # biased var (PyTorch GN), f32
    var_hi = q_hi / n - mean_hi * mean_hi
    mean_c = jnp.where(hi, mean_hi, mean_lo)                     # (1, Cout)
    inv_c = jnp.where(hi, jax.lax.rsqrt(var_hi + eps), jax.lax.rsqrt(var_lo + eps))

    y = (acc - mean_c) * (inv_c * g_ref[...]) + be_ref[...]
    y = y * jax.nn.sigmoid(y)                                    # SiLU (EUP)

    # ---- optional fused 1x1 readout (avoids a standalone Cout=4 kernel) ----
    if has_readout:
        y = jnp.dot(y.astype(jnp.bfloat16), rw_ref[...],
                    preferred_element_type=jnp.float32)
        y = y + rb_ref[...]

    Co = o_ref.shape[3]
    o_ref[0] = y.reshape(H, W, Co).astype(o_ref.dtype)


# ------------------------------ layer wrapper --------------------------------

def pixel_shuffle_nhwc(x, r=2):
    """PyTorch PixelShuffle semantics in NHWC (pure layout glue, bf16)."""
    N, H, W, C4 = x.shape
    C = C4 // (r * r)
    x = x.reshape(N, H, W, C, r, r)
    x = x.transpose(0, 1, 4, 2, 5, 3)
    return x.reshape(N, H * r, W * r, C)


def convsc_fused(x, p, *, upsampling, residual=None, readout=None, eps=1e-5):
    """Fused ConvSC layer.  x: (N,H,W,Cin) NHWC -> NHWC output (bf16/f32)."""
    N, H, W, Cin = x.shape
    K = p["w"].shape[0]
    pad = K // 2
    Cout = p["w"].shape[3]                       # 4*C_hid if upsampling else C_hid

    # Host-side parameter prep (pure layout/casts, folded into the jit once).
    w2 = p["w"].reshape(K * K * Cin, Cout).astype(jnp.bfloat16)  # im2col layout
    b2 = p["b"].reshape(1, Cout).astype(jnp.float32)
    rep = 4 if upsampling else 1                 # pre-shuffle channel order c*4+s
    g2 = jnp.repeat(p["gamma"], rep).reshape(1, Cout).astype(jnp.float32)
    be2 = jnp.repeat(p["beta"], rep).reshape(1, Cout).astype(jnp.float32)

    inputs = [x.astype(jnp.bfloat16)]
    in_specs = [pl.BlockSpec((1, H, W, Cin), lambda n: (n, 0, 0, 0))]
    if residual is not None:
        inputs.append(residual.astype(jnp.bfloat16))
        in_specs.append(pl.BlockSpec((1, H, W, Cin), lambda n: (n, 0, 0, 0)))
    inputs += [w2, b2, g2, be2]
    in_specs += [
        pl.BlockSpec((K * K * Cin, Cout), lambda n: (0, 0)),
        pl.BlockSpec((1, Cout), lambda n: (0, 0)),
        pl.BlockSpec((1, Cout), lambda n: (0, 0)),
        pl.BlockSpec((1, Cout), lambda n: (0, 0)),
    ]
    Co_out = Cout
    out_dtype = jnp.bfloat16                     # bf16 inter-layer activations
    if readout is not None:
        rw, rb = readout                          # (C_hid, C_out), (C_out,)
        Co_out = rw.shape[1]
        inputs += [rw.astype(jnp.bfloat16),
                   rb.reshape(1, Co_out).astype(jnp.float32)]
        in_specs += [
            pl.BlockSpec((rw.shape[0], Co_out), lambda n: (0, 0)),
            pl.BlockSpec((1, Co_out), lambda n: (0, 0)),
        ]
        out_dtype = jnp.float32                   # final decoder output stays f32

    kern = functools.partial(
        _convsc_fused_kernel, K=K, has_res=residual is not None,
        has_readout=readout is not None, eps=eps)

    out = pl.pallas_call(
        kern,
        out_shape=jax.ShapeDtypeStruct((N, H, W, Co_out), out_dtype),
        grid=(N,),
        in_specs=in_specs,
        out_specs=pl.BlockSpec((1, H, W, Co_out), lambda n: (n, 0, 0, 0)),
        scratch_shapes=[
            pltpu.VMEM((H + 2 * pad, W + 2 * pad, Cin), jnp.float32),   # padded x
            pltpu.VMEM((H * W, K * K * Cin), jnp.bfloat16),             # im2col
        ],
        compiler_params=pltpu.CompilerParams(
            dimension_semantics=("parallel",),
            # Full-image blocks: raise the scoped VMEM limit beyond the
            # 16/32 MiB defaults (v5e/v6e have 128 MiB physical; v7x handled by
            # the banding TODO).
            vmem_limit_bytes=64 * 1024 * 1024),
    )(*inputs)

    if upsampling:
        # GN+SiLU already applied pre-shuffle inside the kernel; pure layout
        # glue on bf16 (half the HBM traffic of f32).
        out = pixel_shuffle_nhwc(out, 2)
    return out


# --------------------------------- Decoder -----------------------------------

def sampling_generator(N, reverse=False):
    samplings = [False, True] * (N // 2)
    return list(reversed(samplings[:N])) if reverse else samplings[:N]


def init_convsc(key, C_in, C_out, K, upsampling):
    k1, k2 = jax.random.split(key)
    Co = C_out * 4 if upsampling else C_out
    return {
        "w": jax.random.normal(k1, (K, K, C_in, Co), jnp.float32) * 0.05,
        "b": jax.random.normal(k2, (Co,), jnp.float32) * 0.05,
        "gamma": jnp.ones((C_out,), jnp.float32),
        "beta": jnp.zeros((C_out,), jnp.float32),
    }


def init_decoder(key, C_hid, C_out, N_S, spatio_kernel):
    samplings = sampling_generator(N_S, reverse=True)
    keys = jax.random.split(key, N_S + 2)
    dec = [init_convsc(keys[i], C_hid, C_hid, spatio_kernel, s)
           for i, s in enumerate(samplings)]
    return {
        "dec": dec,
        "samplings": samplings,
        "readout_w": jax.random.normal(keys[-2], (1, 1, C_hid, C_out), jnp.float32) * 0.05,
        "readout_b": jax.random.normal(keys[-1], (C_out,), jnp.float32) * 0.05,
    }


def decoder_forward(params, hid_nchw, enc1_nchw):
    hid = jnp.transpose(hid_nchw, (0, 2, 3, 1)).astype(jnp.bfloat16)   # NCHW -> NHWC
    enc1 = jnp.transpose(enc1_nchw, (0, 2, 3, 1)).astype(jnp.bfloat16)
    dec, samp = params["dec"], params["samplings"]
    for i in range(len(dec) - 1):
        hid = convsc_fused(hid, dec[i], upsampling=samp[i])
    # sampling_generator(..., reverse=True) always ends with False, so the last
    # ConvSC never upsamples -> residual add and 1x1 readout fuse into it.
    assert not samp[-1]
    C_hid, C_out = params["readout_w"].shape[2], params["readout_w"].shape[3]
    rw = params["readout_w"].reshape(C_hid, C_out)
    Y = convsc_fused(hid, dec[-1], upsampling=False, residual=enc1,
                     readout=(rw, params["readout_b"]))
    return jnp.transpose(Y, (0, 3, 1, 2))           # NHWC -> NCHW (f32)


# --------------------------- pure-JAX reference ------------------------------

def _ref_conv(x, w, b, pad):
    y = jax.lax.conv_general_dilated(
        x, w, (1, 1), [(pad, pad), (pad, pad)],
        dimension_numbers=("NHWC", "HWIO", "NHWC"))
    return y + b


def _ref_gn_silu(x, gamma, beta, groups=2, eps=1e-5):
    N, H, W, C = x.shape
    xg = x.reshape(N, H, W, groups, C // groups)
    mean = xg.mean(axis=(1, 2, 4), keepdims=True)
    var = jnp.square(xg - mean).mean(axis=(1, 2, 4), keepdims=True)
    y = ((xg - mean) * jax.lax.rsqrt(var + eps)).reshape(N, H, W, C)
    y = y * gamma + beta
    return y * jax.nn.sigmoid(y)


def _ref_decoder(params, hid_nchw, enc1_nchw):
    hid = jnp.transpose(hid_nchw, (0, 2, 3, 1))
    enc1 = jnp.transpose(enc1_nchw, (0, 2, 3, 1))

    def layer(x, p, up):
        K = p["w"].shape[0]
        y = _ref_conv(x, p["w"], p["b"], K // 2)
        if up:
            y = pixel_shuffle_nhwc(y, 2)
        return _ref_gn_silu(y, p["gamma"], p["beta"])

    dec, samp = params["dec"], params["samplings"]
    for i in range(len(dec) - 1):
        hid = layer(hid, dec[i], samp[i])
    Y = layer(hid + enc1, dec[-1], samp[-1])
    Y = _ref_conv(Y, params["readout_w"], params["readout_b"], 0)
    return jnp.transpose(Y, (0, 3, 1, 2))


# ----------------------------------- main ------------------------------------

if __name__ == "__main__":
    C_hid, C_out, N_S, spatio_kernel = 16, 4, 2, 3
    N, H, W = 2, 8, 8

    samplings = sampling_generator(N_S, reverse=True)        # [True, False]
    up_pre = 2 ** sum(bool(s) for s in samplings[:-1])        # upscale before residual
    up_all = 2 ** sum(bool(s) for s in samplings)             # total upscale

    key = jax.random.PRNGKey(0)
    k_hid, k_enc = jax.random.split(key)
    hid = jax.random.normal(k_hid, (N, C_hid, H, W), jnp.float32)
    enc1 = jax.random.normal(k_enc, (N, C_hid, H * up_pre, W * up_pre), jnp.float32)

    params = init_decoder(jax.random.PRNGKey(1), C_hid, C_out, N_S, spatio_kernel)

    fwd = jax.jit(functools.partial(decoder_forward, params))
    out = jax.block_until_ready(fwd(hid, enc1))
    assert out.shape == (N, C_out, H * up_all, W * up_all), out.shape

    ref = jax.block_until_ready(_ref_decoder(params, hid, enc1))
    # bf16 MXU operands + bf16 inter-layer activations (f32 accumulation and
    # f32 GN/SiLU math) => slightly looser tolerance vs. the pure-f32 reference.
    assert jnp.allclose(out, ref, atol=5e-2, rtol=5e-2), \
        float(jnp.max(jnp.abs(out - ref)))

    print("KERNEL_OK")
</pallas_src>

<mosaic_0001>
module attributes {stable_mosaic.version = 11 : i64} {
  func.func @_convsc_fused_kernel(%arg0: i32, %arg1: memref<1x8x8x16xbf16, #tpu.memory_space<vmem>>, %arg2: memref<144x64xbf16, #tpu.memory_space<vmem>>, %arg3: memref<1x64xf32, #tpu.memory_space<vmem>>, %arg4: memref<1x64xf32, #tpu.memory_space<vmem>>, %arg5: memref<1x64xf32, #tpu.memory_space<vmem>>, %arg6: memref<1x8x8x64xbf16, #tpu.memory_space<vmem>>, %arg7: memref<10x10x16xf32, #tpu.memory_space<vmem>>, %arg8: memref<64x144xbf16, #tpu.memory_space<vmem>>) attributes {dimension_semantics = [#tpu.dimension_semantics<parallel>], iteration_bounds = array<i64: 2>, scalar_prefetch = 0 : i64, scratch_operands = 2 : i64, tpu.core_type = #tpu.core_type<tc>, window_params = [{transform_indices = @transform_0, window_bounds = array<i64: 1, 8, 8, 16>}, {pipeline_mode = #tpu.pipeline_mode<synchronous>, transform_indices = @transform_1, window_bounds = array<i64: 144, 64>}, {pipeline_mode = #tpu.pipeline_mode<synchronous>, transform_indices = @transform_2, window_bounds = array<i64: 1, 64>}, {pipeline_mode = #tpu.pipeline_mode<synchronous>, transform_indices = @transform_3, window_bounds = array<i64: 1, 64>}, {pipeline_mode = #tpu.pipeline_mode<synchronous>, transform_indices = @transform_4, window_bounds = array<i64: 1, 64>}, {transform_indices = @transform_5, window_bounds = array<i64: 1, 8, 8, 64>}]} {
    %c0 = arith.constant 0 : index
    %c0_0 = arith.constant 0 : index
    %c0_1 = arith.constant 0 : index
    %c0_2 = arith.constant 0 : index
    %0 = vector.load %arg1[%c0, %c0_0, %c0_1, %c0_2] : memref<1x8x8x16xbf16, #tpu.memory_space<vmem>>, vector<1x8x8x16xbf16>
    %1 = vector.shape_cast %0 : vector<1x8x8x16xbf16> to vector<8x8x16xbf16>
    %2 = arith.extf %1 : vector<8x8x16xbf16> to vector<8x8x16xf32>
    %cst = arith.constant 0.000000e+00 : f32
    %3 = vector.broadcast %cst : f32 to vector<1x10x16xf32>
    %cst_3 = arith.constant 0.000000e+00 : f32
    %4 = vector.broadcast %cst_3 : f32 to vector<8x1x16xf32>
    %c0_4 = arith.constant 0 : index
    %c0_5 = arith.constant 0 : index
    %c0_6 = arith.constant 0 : index
    %5 = vector.load %arg7[%c0_4, %c0_5, %c0_6] : memref<10x10x16xf32, #tpu.memory_space<vmem>>, vector<1x10x16xf32>
    tpu.vector_store %arg7[%c0_4, %c0_5, %c0_6], %3 {strides = array<i32>} : memref<10x10x16xf32, #tpu.memory_space<vmem>>, vector<1x10x16xf32>,
    %c9 = arith.constant 9 : index
    %c0_7 = arith.constant 0 : index
    %c0_8 = arith.constant 0 : index
    %6 = vector.load %arg7[%c9, %c0_7, %c0_8] : memref<10x10x16xf32, #tpu.memory_space<vmem>>, vector<1x10x16xf32>
    tpu.vector_store %arg7[%c9, %c0_7, %c0_8], %3 {strides = array<i32>} : memref<10x10x16xf32, #tpu.memory_space<vmem>>, vector<1x10x16xf32>,
    %c1 = arith.constant 1 : index
    %c0_9 = arith.constant 0 : index
    %c0_10 = arith.constant 0 : index
    %7 = vector.load %arg7[%c1, %c0_9, %c0_10] : memref<10x10x16xf32, #tpu.memory_space<vmem>>, vector<8x1x16xf32>
    tpu.vector_store %arg7[%c1, %c0_9, %c0_10], %4 {strides = array<i32>} : memref<10x10x16xf32, #tpu.memory_space<vmem>>, vector<8x1x16xf32>,
    %c1_11 = arith.constant 1 : index
    %c9_12 = arith.constant 9 : index
    %c0_13 = arith.constant 0 : index
    %8 = vector.load %arg7[%c1_11, %c9_12, %c0_13] : memref<10x10x16xf32, #tpu.memory_space<vmem>>, vector<8x1x16xf32>
    tpu.vector_store %arg7[%c1_11, %c9_12, %c0_13], %4 {strides = array<i32>} : memref<10x10x16xf32, #tpu.memory_space<vmem>>, vector<8x1x16xf32>,
    %c1_14 = arith.constant 1 : index
    %c1_15 = arith.constant 1 : index
    %c0_16 = arith.constant 0 : index
    %9 = vector.load %arg7[%c1_14, %c1_15, %c0_16] : memref<10x10x16xf32, #tpu.memory_space<vmem>>, vector<8x8x16xf32>
    tpu.vector_store %arg7[%c1_14, %c1_15, %c0_16], %2 {strides = array<i32>} : memref<10x10x16xf32, #tpu.memory_space<vmem>>, vector<8x8x16xf32>,
    %c0_17 = arith.constant 0 : index
    %c0_18 = arith.constant 0 : index
    %c0_19 = arith.constant 0 : index
    %10 = vector.load %arg7[%c0_17, %c0_18, %c0_19] : memref<10x10x16xf32, #tpu.memory_space<vmem>>, vector<8x8x16xf32>
    %11 = vector.shape_cast %10 : vector<8x8x16xf32> to vector<64x16xf32>
    %12 = arith.truncf %11 : vector<64x16xf32> to vector<64x16xbf16>
    %c0_20 = arith.constant 0 : index
    %c0_21 = arith.constant 0 : index
    %13 = vector.load %arg8[%c0_20, %c0_21] : memref<64x144xbf16, #tpu.memory_space<vmem>>, vector<64x16xbf16>
    tpu.vector_store %arg8[%c0_20, %c0_21], %12 {strides = array<i32>} : memref<64x144xbf16, #tpu.memory_space<vmem>>, vector<64x16xbf16>,
    %c0_22 = arith.constant 0 : index
    %c1_23 = arith.constant 1 : index
    %c0_24 = arith.constant 0 : index
    %14 = vector.load %arg7[%c0_22, %c1_23, %c0_24] : memref<10x10x16xf32, #tpu.memory_space<vmem>>, vector<8x8x16xf32>
    %15 = vector.shape_cast %14 : vector<8x8x16xf32> to vector<64x16xf32>
    %16 = arith.truncf %15 : vector<64x16xf32> to vector<64x16xbf16>
    %c0_25 = arith.constant 0 : index
    %c16 = arith.constant 16 : index
    %17 = vector.load %arg8[%c0_25, %c16] : memref<64x144xbf16, #tpu.memory_space<vmem>>, vector<64x16xbf16>
    tpu.vector_store %arg8[%c0_25, %c16], %16 {strides = array<i32>} : memref<64x144xbf16, #tpu.memory_space<vmem>>, vector<64x16xbf16>,
    %c0_26 = arith.constant 0 : index
    %c2 = arith.constant 2 : index
    %c0_27 = arith.constant 0 : index
    %18 = vector.load %arg7[%c0_26, %c2, %c0_27] : memref<10x10x16xf32, #tpu.memory_space<vmem>>, vector<8x8x16xf32>
    %19 = vector.shape_cast %18 : vector<8x8x16xf32> to vector<64x16xf32>
    %20 = arith.truncf %19 : vector<64x16xf32> to vector<64x16xbf16>
    %c0_28 = arith.constant 0 : index
    %c32 = arith.constant 32 : index
    %21 = vector.load %arg8[%c0_28, %c32] : memref<64x144xbf16, #tpu.memory_space<vmem>>, vector<64x16xbf16>
    tpu.vector_store %arg8[%c0_28, %c32], %20 {strides = array<i32>} : memref<64x144xbf16, #tpu.memory_space<vmem>>, vector<64x16xbf16>,
    %c1_29 = arith.constant 1 : index
    %c0_30 = arith.constant 0 : index
    %c0_31 = arith.constant 0 : index
    %22 = vector.load %arg7[%c1_29, %c0_30, %c0_31] : memref<10x10x16xf32, #tpu.memory_space<vmem>>, vector<8x8x16xf32>
    %23 = vector.shape_cast %22 : vector<8x8x16xf32> to vector<64x16xf32>
    %24 = arith.truncf %23 : vector<64x16xf32> to vector<64x16xbf16>
    %c0_32 = arith.constant 0 : index
    %c48 = arith.constant 48 : index
    %25 = vector.load %arg8[%c0_32, %c48] : memref<64x144xbf16, #tpu.memory_space<vmem>>, vector<64x16xbf16>
    tpu.vector_store %arg8[%c0_32, %c48], %24 {strides = array<i32>} : memref<64x144xbf16, #tpu.memory_space<vmem>>, vector<64x16xbf16>,
    %c1_33 = arith.constant 1 : index
    %c1_34 = arith.constant 1 : index
    %c0_35 = arith.constant 0 : index
    %26 = vector.load %arg7[%c1_33, %c1_34, %c0_35] : memref<10x10x16xf32, #tpu.memory_space<vmem>>, vector<8x8x16xf32>
    %27 = vector.shape_cast %26 : vector<8x8x16xf32> to vector<64x16xf32>
    %28 = arith.truncf %27 : vector<64x16xf32> to vector<64x16xbf16>
    %c0_36 = arith.constant 0 : index
    %c64 = arith.constant 64 : index
    %29 = vector.load %arg8[%c0_36, %c64] : memref<64x144xbf16, #tpu.memory_space<vmem>>, vector<64x16xbf16>
    tpu.vector_store %arg8[%c0_36, %c64], %28 {strides = array<i32>} : memref<64x144xbf16, #tpu.memory_space<vmem>>, vector<64x16xbf16>,
    %c1_37 = arith.constant 1 : index
    %c2_38 = arith.constant 2 : index
    %c0_39 = arith.constant 0 : index
    %30 = vector.load %arg7[%c1_37, %c2_38, %c0_39] : memref<10x10x16xf32, #tpu.memory_space<vmem>>, vector<8x8x16xf32>
    %31 = vector.shape_cast %30 : vector<8x8x16xf32> to vector<64x16xf32>
    %32 = arith.truncf %31 : vector<64x16xf32> to vector<64x16xbf16>
    %c0_40 = arith.constant 0 : index
    %c80 = arith.constant 80 : index
    %33 = vector.load %arg8[%c0_40, %c80] : memref<64x144xbf16, #tpu.memory_space<vmem>>, vector<64x16xbf16>
    tpu.vector_store %arg8[%c0_40, %c80], %32 {strides = array<i32>} : memref<64x144xbf16, #tpu.memory_space<vmem>>, vector<64x16xbf16>,
    %c2_41 = arith.constant 2 : index
    %c0_42 = arith.constant 0 : index
    %c0_43 = arith.constant 0 : index
    %34 = vector.load %arg7[%c2_41, %c0_42, %c0_43] : memref<10x10x16xf32, #tpu.memory_space<vmem>>, vector<8x8x16xf32>
    %35 = vector.shape_cast %34 : vector<8x8x16xf32> to vector<64x16xf32>
    %36 = arith.truncf %35 : vector<64x16xf32> to vector<64x16xbf16>
    %c0_44 = arith.constant 0 : index
    %c96 = arith.constant 96 : index
    %37 = vector.load %arg8[%c0_44, %c96] : memref<64x144xbf16, #tpu.memory_space<vmem>>, vector<64x16xbf16>
    tpu.vector_store %arg8[%c0_44, %c96], %36 {strides = array<i32>} : memref<64x144xbf16, #tpu.memory_space<vmem>>, vector<64x16xbf16>,
    %c2_45 = arith.constant 2 : index
    %c1_46 = arith.constant 1 : index
    %c0_47 = arith.constant 0 : index
    %38 = vector.load %arg7[%c2_45, %c1_46, %c0_47] : memref<10x10x16xf32, #tpu.memory_space<vmem>>, vector<8x8x16xf32>
    %39 = vector.shape_cast %38 : vector<8x8x16xf32> to vector<64x16xf32>
    %40 = arith.truncf %39 : vector<64x16xf32> to vector<64x16xbf16>
    %c0_48 = arith.constant 0 : index
    %c112 = arith.constant 112 : index
    %41 = vector.load %arg8[%c0_48, %c112] : memref<64x144xbf16, #tpu.memory_space<vmem>>, vector<64x16xbf16>
    tpu.vector_store %arg8[%c0_48, %c112], %40 {strides = array<i32>} : memref<64x144xbf16, #tpu.memory_space<vmem>>, vector<64x16xbf16>,
    %c2_49 = arith.constant 2 : index
    %c2_50 = arith.constant 2 : index
    %c0_51 = arith.constant 0 : index
    %42 = vector.load %arg7[%c2_49, %c2_50, %c0_51] : memref<10x10x16xf32, #tpu.memory_space<vmem>>, vector<8x8x16xf32>
    %43 = vector.shape_cast %42 : vector<8x8x16xf32> to vector<64x16xf32>
    %44 = arith.truncf %43 : vector<64x16xf32> to vector<64x16xbf16>
    %c0_52 = arith.constant 0 : index
    %c128 = arith.constant 128 : index
    %45 = vector.load %arg8[%c0_52, %c128] : memref<64x144xbf16, #tpu.memory_space<vmem>>, vector<64x16xbf16>
    tpu.vector_store %arg8[%c0_52, %c128], %44 {strides = array<i32>} : memref<64x144xbf16, #tpu.memory_space<vmem>>, vector<64x16xbf16>,
    %c0_53 = arith.constant 0 : index
    %c0_54 = arith.constant 0 : index
    %46 = vector.load %arg8[%c0_53, %c0_54] : memref<64x144xbf16, #tpu.memory_space<vmem>>, vector<64x144xbf16>
    %c0_55 = arith.constant 0 : index
    %c0_56 = arith.constant 0 : index
    %47 = vector.load %arg2[%c0_55, %c0_56] : memref<144x64xbf16, #tpu.memory_space<vmem>>, vector<144x64xbf16>
    %cst_57 = arith.constant dense<0.000000e+00> : vector<64x64xf32>
    %48 = tpu.matmul %46, %47, %cst_57 {dimension_numbers = #tpu.dot_dimension_numbers<[1], [0], [0], [1], [0, 0, 1, 1], [], []>} : vector<64x144xbf16>, vector<144x64xbf16>, vector<64x64xf32> -> vector<64x64xf32>
    %c0_58 = arith.constant 0 : index
    %c0_59 = arith.constant 0 : index
    %49 = vector.load %arg3[%c0_58, %c0_59] : memref<1x64xf32, #tpu.memory_space<vmem>>, vector<1x64xf32>
    %50 = vector.broadcast %49 : vector<1x64xf32> to vector<64x64xf32>
    %51 = arith.addf %48, %50 : vector<64x64xf32>
    %cst_60 = arith.constant dense<0.000000e+00> : vector<64xf32>
    %52 = vector.multi_reduction <add>, %51, %cst_60 [0] : vector<64x64xf32> to vector<64xf32>
    %53 = vector.shape_cast %52 : vector<64xf32> to vector<1x64xf32>
    %54 = arith.mulf %51, %51 : vector<64x64xf32>
    %cst_61 = arith.constant dense<0.000000e+00> : vector<64xf32>
    %55 = vector.multi_reduction <add>, %54, %cst_61 [0] : vector<64x64xf32> to vector<64xf32>
    %56 = vector.shape_cast %55 : vector<64xf32> to vector<1x64xf32>
    %57 = tpu.iota {dimensions = array<i32: 1>} : vector<1x64xi32>
    %c32_i32 = arith.constant 32 : i32
    %58 = vector.broadcast %c32_i32 : i32 to vector<1x64xi32>
    %59 = arith.cmpi sge, %57, %58 : vector<1x64xi32>
    %60 = arith.extui %59 : vector<1x64xi1> to vector<1x64xi32>
    %61 = arith.sitofp %60 : vector<1x64xi32> to vector<1x64xf32>
    %cst_62 = arith.constant 1.000000e+00 : f32
    %62 = vector.broadcast %cst_62 : f32 to vector<1x64xf32>
    %63 = arith.subf %62, %61 : vector<1x64xf32>
    %64 = arith.mulf %53, %63 : vector<1x64xf32>
    %65 = vector.shape_cast %64 : vector<1x64xf32> to vector<1x1x64xf32>
    %cst_63 = arith.constant dense<0.000000e+00> : vector<1xf32>
    %66 = vector.multi_reduction <add>, %65, %cst_63 [1, 2] : vector<1x1x64xf32> to vector<1xf32>
    %67 = vector.shape_cast %66 : vector<1xf32> to vector<1x1x1xf32>
    %68 = vector.extract %67[0, 0, 0] : f32 from vector<1x1x1xf32>
    %69 = arith.mulf %53, %61 : vector<1x64xf32>
    %70 = vector.shape_cast %69 : vector<1x64xf32> to vector<1x1x64xf32>
    %cst_64 = arith.constant dense<0.000000e+00> : vector<1xf32>
    %71 = vector.multi_reduction <add>, %70, %cst_64 [1, 2] : vector<1x1x64xf32> to vector<1xf32>
    %72 = vector.shape_cast %71 : vector<1xf32> to vector<1x1x1xf32>
    %73 = vector.extract %72[0, 0, 0] : f32 from vector<1x1x1xf32>
    %74 = arith.mulf %56, %63 : vector<1x64xf32>
    %75 = vector.shape_cast %74 : vector<1x64xf32> to vector<1x1x64xf32>
    %cst_65 = arith.constant dense<0.000000e+00> : vector<1xf32>
    %76 = vector.multi_reduction <add>, %75, %cst_65 [1, 2] : vector<1x1x64xf32> to vector<1xf32>
    %77 = vector.shape_cast %76 : vector<1xf32> to vector<1x1x1xf32>
    %78 = vector.extract %77[0, 0, 0] : f32 from vector<1x1x1xf32>
    %79 = arith.mulf %56, %61 : vector<1x64xf32>
    %80 = vector.shape_cast %79 : vector<1x64xf32> to vector<1x1x64xf32>
    %cst_66 = arith.constant dense<0.000000e+00> : vector<1xf32>
    %81 = vector.multi_reduction <add>, %80, %cst_66 [1, 2] : vector<1x1x64xf32> to vector<1xf32>
    %82 = vector.shape_cast %81 : vector<1xf32> to vector<1x1x1xf32>
    %83 = vector.extract %82[0, 0, 0] : f32 from vector<1x1x1xf32>
    %cst_67 = arith.constant 2.048000e+03 : f32
    %84 = arith.divf %68, %cst_67 : f32
    %cst_68 = arith.constant 2.048000e+03 : f32
    %85 = arith.divf %73, %cst_68 : f32
    %cst_69 = arith.constant 2.048000e+03 : f32
    %86 = arith.divf %78, %cst_69 : f32
    %87 = arith.mulf %84, %84 : f32
    %88 = arith.subf %86, %87 : f32
    %cst_70 = arith.constant 2.048000e+03 : f32
    %89 = arith.divf %83, %cst_70 : f32
    %90 = arith.mulf %85, %85 : f32
    %91 = arith.subf %89, %90 : f32
    %92 = vector.broadcast %85 : f32 to vector<1x64xf32>
    %93 = vector.broadcast %84 : f32 to vector<1x64xf32>
    %94 = arith.select %59, %92, %93 : vector<1x64xi1>, vector<1x64xf32>
    %cst_71 = arith.constant 9.99999974E-6 : f32
    %95 = arith.addf %91, %cst_71 : f32
    %96 = math.rsqrt %95 : f32
    %cst_72 = arith.constant 9.99999974E-6 : f32
    %97 = arith.addf %88, %cst_72 : f32
    %98 = math.rsqrt %97 : f32
    %99 = vector.broadcast %96 : f32 to vector<1x64xf32>
    %100 = vector.broadcast %98 : f32 to vector<1x64xf32>
    %101 = arith.select %59, %99, %100 : vector<1x64xi1>, vector<1x64xf32>
    %102 = vector.broadcast %94 : vector<1x64xf32> to vector<64x64xf32>
    %103 = arith.subf %51, %102 : vector<64x64xf32>
    %c0_73 = arith.constant 0 : index
    %c0_74 = arith.constant 0 : index
    %104 = vector.load %arg4[%c0_73, %c0_74] : memref<1x64xf32, #tpu.memory_space<vmem>>, vector<1x64xf32>
    %105 = arith.mulf %101, %104 : vector<1x64xf32>
    %106 = vector.broadcast %105 : vector<1x64xf32> to vector<64x64xf32>
    %107 = arith.mulf %103, %106 : vector<64x64xf32>
    %c0_75 = arith.constant 0 : index
    %c0_76 = arith.constant 0 : index
    %108 = vector.load %arg5[%c0_75, %c0_76] : memref<1x64xf32, #tpu.memory_space<vmem>>, vector<1x64xf32>
    %109 = vector.broadcast %108 : vector<1x64xf32> to vector<64x64xf32>
    %110 = arith.addf %107, %109 : vector<64x64xf32>
    %111 = arith.negf %110 : vector<64x64xf32>
    %112 = math.exp %111 : vector<64x64xf32>
    %cst_77 = arith.constant 1.000000e+00 : f32
    %113 = vector.broadcast %cst_77 : f32 to vector<64x64xf32>
    %114 = arith.addf %113, %112 : vector<64x64xf32>
    %115 = arith.divf %113, %114 : vector<64x64xf32>
    %116 = arith.mulf %110, %115 : vector<64x64xf32>
    %117 = vector.shape_cast %116 : vector<64x64xf32> to vector<8x8x64xf32>
    %118 = arith.truncf %117 : vector<8x8x64xf32> to vector<8x8x64xbf16>
    %c0_78 = arith.constant 0 : index
    %c0_79 = arith.constant 0 : index
    %c0_80 = arith.constant 0 : index
    %c0_81 = arith.constant 0 : index
    %119 = vector.load %arg6[%c0_78, %c0_79, %c0_80, %c0_81] : memref<1x8x8x64xbf16, #tpu.memory_space<vmem>>, vector<1x8x8x64xbf16>
    %120 = vector.shape_cast %119 : vector<1x8x8x64xbf16> to vector<8x8x64xbf16>
    %121 = vector.shape_cast %118 : vector<8x8x64xbf16> to vector<1x8x8x64xbf16>
    tpu.vector_store %arg6[%c0_78, %c0_79, %c0_80, %c0_81], %121 {strides = array<i32>} : memref<1x8x8x64xbf16, #tpu.memory_space<vmem>>, vector<1x8x8x64xbf16>,
    return
  }
  func.func @transform_0(%arg0: i32) -> (i32, i32, i32, i32) {
    %c0_i32 = arith.constant 0 : i32
    %c0_i32_0 = arith.constant 0 : i32
    %c0_i32_1 = arith.constant 0 : i32
    %c0_i32_2 = arith.constant 0 : i32
    return %arg0, %c0_i32, %c0_i32_0, %c0_i32_1 : i32, i32, i32, i32
  }
  func.func @transform_1(%arg0: i32) -> (i32, i32) {
    %c0_i32 = arith.constant 0 : i32
    %c0_i32_0 = arith.constant 0 : i32
    %c0_i32_1 = arith.constant 0 : i32
    return %c0_i32, %c0_i32_0 : i32, i32
  }
  func.func @transform_2(%arg0: i32) -> (i32, i32) {
    %c0_i32 = arith.constant 0 : i32
    %c0_i32_0 = arith.constant 0 : i32
    %c0_i32_1 = arith.constant 0 : i32
    return %c0_i32, %c0_i32_0 : i32, i32
  }
  func.func @transform_3(%arg0: i32) -> (i32, i32) {
    %c0_i32 = arith.constant 0 : i32
    %c0_i32_0 = arith.constant 0 : i32
    %c0_i32_1 = arith.constant 0 : i32
    return %c0_i32, %c0_i32_0 : i32, i32
  }
  func.func @transform_4(%arg0: i32) -> (i32, i32) {
    %c0_i32 = arith.constant 0 : i32
    %c0_i32_0 = arith.constant 0 : i32
    %c0_i32_1 = arith.constant 0 : i32
    return %c0_i32, %c0_i32_0 : i32, i32
  }
  func.func @transform_5(%arg0: i32) -> (i32, i32, i32, i32) {
    %c0_i32 = arith.constant 0 : i32
    %c0_i32_0 = arith.constant 0 : i32
    %c0_i32_1 = arith.constant 0 : i32
    %c0_i32_2 = arith.constant 0 : i32
    return %arg0, %c0_i32, %c0_i32_0, %c0_i32_1 : i32, i32, i32, i32
  }
}

module attributes {stable_mosaic.version = 11 : i64} {
  func.func @_convsc_fused_kernel(%arg0: i32, %arg1: memref<1x16x16x16xbf16, #tpu.memory_space<vmem>>, %arg2: memref<1x16x16x16xbf16, #tpu.memory_space<vmem>>, %arg3: memref<144x16xbf16, #tpu.memory_space<vmem>>, %arg4: memref<1x16xf32, #tpu.memory_space<vmem>>, %arg5: memref<1x16xf32, #tpu.memory_space<vmem>>, %arg6: memref<1x16xf32, #tpu.memory_space<vmem>>, %arg7: memref<16x4xbf16, #tpu.memory_space<vmem>>, %arg8: memref<1x4xf32, #tpu.memory_space<vmem>>, %arg9: memref<1x16x16x4xf32, #tpu.memory_space<vmem>>, %arg10: memref<18x18x16xf32, #tpu.memory_space<vmem>>, %arg11: memref<256x144xbf16, #tpu.memory_space<vmem>>) attributes {dimension_semantics = [#tpu.dimension_semantics<parallel>], iteration_bounds = array<i64: 2>, scalar_prefetch = 0 : i64, scratch_operands = 2 : i64, tpu.core_type = #tpu.core_type<tc>, window_params = [{transform_indices = @transform_0, window_bounds = array<i64: 1, 16, 16, 16>}, {transform_indices = @transform_1, window_bounds = array<i64: 1, 16, 16, 16>}, {pipeline_mode = #tpu.pipeline_mode<synchronous>, transform_indices = @transform_2, window_bounds = array<i64: 144, 16>}, {pipeline_mode = #tpu.pipeline_mode<synchronous>, transform_indices = @transform_3, window_bounds = array<i64: 1, 16>}, {pipeline_mode = #tpu.pipeline_mode<synchronous>, transform_indices = @transform_4, window_bounds = array<i64: 1, 16>}, {pipeline_mode = #tpu.pipeline_mode<synchronous>, transform_indices = @transform_5, window_bounds = array<i64: 1, 16>}, {pipeline_mode = #tpu.pipeline_mode<synchronous>, transform_indices = @transform_6, window_bounds = array<i64: 16, 4>}, {pipeline_mode = #tpu.pipeline_mode<synchronous>, transform_indices = @transform_7, window_bounds = array<i64: 1, 4>}, {transform_indices = @transform_8, window_bounds = array<i64: 1, 16, 16, 4>}]} {
    %c0 = arith.constant 0 : index
    %c0_0 = arith.constant 0 : index
    %c0_1 = arith.constant 0 : index
    %c0_2 = arith.constant 0 : index
    %0 = vector.load %arg1[%c0, %c0_0, %c0_1, %c0_2] : memref<1x16x16x16xbf16, #tpu.memory_space<vmem>>, vector<1x16x16x16xbf16>
    %1 = vector.shape_cast %0 : vector<1x16x16x16xbf16> to vector<16x16x16xbf16>
    %2 = arith.extf %1 : vector<16x16x16xbf16> to vector<16x16x16xf32>
    %c0_3 = arith.constant 0 : index
    %c0_4 = arith.constant 0 : index
    %c0_5 = arith.constant 0 : index
    %c0_6 = arith.constant 0 : index
    %3 = vector.load %arg2[%c0_3, %c0_4, %c0_5, %c0_6] : memref<1x16x16x16xbf16, #tpu.memory_space<vmem>>, vector<1x16x16x16xbf16>
    %4 = vector.shape_cast %3 : vector<1x16x16x16xbf16> to vector<16x16x16xbf16>
    %5 = arith.extf %4 : vector<16x16x16xbf16> to vector<16x16x16xf32>
    %6 = arith.addf %2, %5 : vector<16x16x16xf32>
    %cst = arith.constant 0.000000e+00 : f32
    %7 = vector.broadcast %cst : f32 to vector<1x18x16xf32>
    %cst_7 = arith.constant 0.000000e+00 : f32
    %8 = vector.broadcast %cst_7 : f32 to vector<16x1x16xf32>
    %c0_8 = arith.constant 0 : index
    %c0_9 = arith.constant 0 : index
    %c0_10 = arith.constant 0 : index
    %9 = vector.load %arg10[%c0_8, %c0_9, %c0_10] : memref<18x18x16xf32, #tpu.memory_space<vmem>>, vector<1x18x16xf32>
    tpu.vector_store %arg10[%c0_8, %c0_9, %c0_10], %7 {strides = array<i32>} : memref<18x18x16xf32, #tpu.memory_space<vmem>>, vector<1x18x16xf32>,
    %c17 = arith.constant 17 : index
    %c0_11 = arith.constant 0 : index
    %c0_12 = arith.constant 0 : index
    %10 = vector.load %arg10[%c17, %c0_11, %c0_12] : memref<18x18x16xf32, #tpu.memory_space<vmem>>, vector<1x18x16xf32>
    tpu.vector_store %arg10[%c17, %c0_11, %c0_12], %7 {strides = array<i32>} : memref<18x18x16xf32, #tpu.memory_space<vmem>>, vector<1x18x16xf32>,
    %c1 = arith.constant 1 : index
    %c0_13 = arith.constant 0 : index
    %c0_14 = arith.constant 0 : index
    %11 = vector.load %arg10[%c1, %c0_13, %c0_14] : memref<18x18x16xf32, #tpu.memory_space<vmem>>, vector<16x1x16xf32>
    tpu.vector_store %arg10[%c1, %c0_13, %c0_14], %8 {strides = array<i32>} : memref<18x18x16xf32, #tpu.memory_space<vmem>>, vector<16x1x16xf32>,
    %c1_15 = arith.constant 1 : index
    %c17_16 = arith.constant 17 : index
    %c0_17 = arith.constant 0 : index
    %12 = vector.load %arg10[%c1_15, %c17_16, %c0_17] : memref<18x18x16xf32, #tpu.memory_space<vmem>>, vector<16x1x16xf32>
    tpu.vector_store %arg10[%c1_15, %c17_16, %c0_17], %8 {strides = array<i32>} : memref<18x18x16xf32, #tpu.memory_space<vmem>>, vector<16x1x16xf32>,
    %c1_18 = arith.constant 1 : index
    %c1_19 = arith.constant 1 : index
    %c0_20 = arith.constant 0 : index
    %13 = vector.load %arg10[%c1_18, %c1_19, %c0_20] : memref<18x18x16xf32, #tpu.memory_space<vmem>>, vector<16x16x16xf32>
    tpu.vector_store %arg10[%c1_18, %c1_19, %c0_20], %6 {strides = array<i32>} : memref<18x18x16xf32, #tpu.memory_space<vmem>>, vector<16x16x16xf32>,
    %c0_21 = arith.constant 0 : index
    %c0_22 = arith.constant 0 : index
    %c0_23 = arith.constant 0 : index
    %14 = vector.load %arg10[%c0_21, %c0_22, %c0_23] : memref<18x18x16xf32, #tpu.memory_space<vmem>>, vector<16x16x16xf32>
    %15 = vector.shape_cast %14 : vector<16x16x16xf32> to vector<256x16xf32>
    %16 = arith.truncf %15 : vector<256x16xf32> to vector<256x16xbf16>
    %c0_24 = arith.constant 0 : index
    %c0_25 = arith.constant 0 : index
    %17 = vector.load %arg11[%c0_24, %c0_25] : memref<256x144xbf16, #tpu.memory_space<vmem>>, vector<256x16xbf16>
    tpu.vector_store %arg11[%c0_24, %c0_25], %16 {strides = array<i32>} : memref<256x144xbf16, #tpu.memory_space<vmem>>, vector<256x16xbf16>,
    %c0_26 = arith.constant 0 : index
    %c1_27 = arith.constant 1 : index
    %c0_28 = arith.constant 0 : index
    %18 = vector.load %arg10[%c0_26, %c1_27, %c0_28] : memref<18x18x16xf32, #tpu.memory_space<vmem>>, vector<16x16x16xf32>
    %19 = vector.shape_cast %18 : vector<16x16x16xf32> to vector<256x16xf32>
    %20 = arith.truncf %19 : vector<256x16xf32> to vector<256x16xbf16>
    %c0_29 = arith.constant 0 : index
    %c16 = arith.constant 16 : index
    %21 = vector.load %arg11[%c0_29, %c16] : memref<256x144xbf16, #tpu.memory_space<vmem>>, vector<256x16xbf16>
    tpu.vector_store %arg11[%c0_29, %c16], %20 {strides = array<i32>} : memref<256x144xbf16, #tpu.memory_space<vmem>>, vector<256x16xbf16>,
    %c0_30 = arith.constant 0 : index
    %c2 = arith.constant 2 : index
    %c0_31 = arith.constant 0 : index
    %22 = vector.load %arg10[%c0_30, %c2, %c0_31] : memref<18x18x16xf32, #tpu.memory_space<vmem>>, vector<16x16x16xf32>
    %23 = vector.shape_cast %22 : vector<16x16x16xf32> to vector<256x16xf32>
    %24 = arith.truncf %23 : vector<256x16xf32> to vector<256x16xbf16>
    %c0_32 = arith.constant 0 : index
    %c32 = arith.constant 32 : index
    %25 = vector.load %arg11[%c0_32, %c32] : memref<256x144xbf16, #tpu.memory_space<vmem>>, vector<256x16xbf16>
    tpu.vector_store %arg11[%c0_32, %c32], %24 {strides = array<i32>} : memref<256x144xbf16, #tpu.memory_space<vmem>>, vector<256x16xbf16>,
    %c1_33 = arith.constant 1 : index
    %c0_34 = arith.constant 0 : index
    %c0_35 = arith.constant 0 : index
    %26 = vector.load %arg10[%c1_33, %c0_34, %c0_35] : memref<18x18x16xf32, #tpu.memory_space<vmem>>, vector<16x16x16xf32>
    %27 = vector.shape_cast %26 : vector<16x16x16xf32> to vector<256x16xf32>
    %28 = arith.truncf %27 : vector<256x16xf32> to vector<256x16xbf16>
    %c0_36 = arith.constant 0 : index
    %c48 = arith.constant 48 : index
    %29 = vector.load %arg11[%c0_36, %c48] : memref<256x144xbf16, #tpu.memory_space<vmem>>, vector<256x16xbf16>
    tpu.vector_store %arg11[%c0_36, %c48], %28 {strides = array<i32>} : memref<256x144xbf16, #tpu.memory_space<vmem>>, vector<256x16xbf16>,
    %c1_37 = arith.constant 1 : index
    %c1_38 = arith.constant 1 : index
    %c0_39 = arith.constant 0 : index
    %30 = vector.load %arg10[%c1_37, %c1_38, %c0_39] : memref<18x18x16xf32, #tpu.memory_space<vmem>>, vector<16x16x16xf32>
    %31 = vector.shape_cast %30 : vector<16x16x16xf32> to vector<256x16xf32>
    %32 = arith.truncf %31 : vector<256x16xf32> to vector<256x16xbf16>
    %c0_40 = arith.constant 0 : index
    %c64 = arith.constant 64 : index
    %33 = vector.load %arg11[%c0_40, %c64] : memref<256x144xbf16, #tpu.memory_space<vmem>>, vector<256x16xbf16>
    tpu.vector_store %arg11[%c0_40, %c64], %32 {strides = array<i32>} : memref<256x144xbf16, #tpu.memory_space<vmem>>, vector<256x16xbf16>,
    %c1_41 = arith.constant 1 : index
    %c2_42 = arith.constant 2 : index
    %c0_43 = arith.constant 0 : index
    %34 = vector.load %arg10[%c1_41, %c2_42, %c0_43] : memref<18x18x16xf32, #tpu.memory_space<vmem>>, vector<16x16x16xf32>
    %35 = vector.shape_cast %34 : vector<16x16x16xf32> to vector<256x16xf32>
    %36 = arith.truncf %35 : vector<256x16xf32> to vector<256x16xbf16>
    %c0_44 = arith.constant 0 : index
    %c80 = arith.constant 80 : index
    %37 = vector.load %arg11[%c0_44, %c80] : memref<256x144xbf16, #tpu.memory_space<vmem>>, vector<256x16xbf16>
    tpu.vector_store %arg11[%c0_44, %c80], %36 {strides = array<i32>} : memref<256x144xbf16, #tpu.memory_space<vmem>>, vector<256x16xbf16>,
    %c2_45 = arith.constant 2 : index
    %c0_46 = arith.constant 0 : index
    %c0_47 = arith.constant 0 : index
    %38 = vector.load %arg10[%c2_45, %c0_46, %c0_47] : memref<18x18x16xf32, #tpu.memory_space<vmem>>, vector<16x16x16xf32>
    %39 = vector.shape_cast %38 : vector<16x16x16xf32> to vector<256x16xf32>
    %40 = arith.truncf %39 : vector<256x16xf32> to vector<256x16xbf16>
    %c0_48 = arith.constant 0 : index
    %c96 = arith.constant 96 : index
    %41 = vector.load %arg11[%c0_48, %c96] : memref<256x144xbf16, #tpu.memory_space<vmem>>, vector<256x16xbf16>
    tpu.vector_store %arg11[%c0_48, %c96], %40 {strides = array<i32>} : memref<256x144xbf16, #tpu.memory_space<vmem>>, vector<256x16xbf16>,
    %c2_49 = arith.constant 2 : index
    %c1_50 = arith.constant 1 : index
    %c0_51 = arith.constant 0 : index
    %42 = vector.load %arg10[%c2_49, %c1_50, %c0_51] : memref<18x18x16xf32, #tpu.memory_space<vmem>>, vector<16x16x16xf32>
    %43 = vector.shape_cast %42 : vector<16x16x16xf32> to vector<256x16xf32>
    %44 = arith.truncf %43 : vector<256x16xf32> to vector<256x16xbf16>
    %c0_52 = arith.constant 0 : index
    %c112 = arith.constant 112 : index
    %45 = vector.load %arg11[%c0_52, %c112] : memref<256x144xbf16, #tpu.memory_space<vmem>>, vector<256x16xbf16>
    tpu.vector_store %arg11[%c0_52, %c112], %44 {strides = array<i32>} : memref<256x144xbf16, #tpu.memory_space<vmem>>, vector<256x16xbf16>,
    %c2_53 = arith.constant 2 : index
    %c2_54 = arith.constant 2 : index
    %c0_55 = arith.constant 0 : index
    %46 = vector.load %arg10[%c2_53, %c2_54, %c0_55] : memref<18x18x16xf32, #tpu.memory_space<vmem>>, vector<16x16x16xf32>
    %47 = vector.shape_cast %46 : vector<16x16x16xf32> to vector<256x16xf32>
    %48 = arith.truncf %47 : vector<256x16xf32> to vector<256x16xbf16>
    %c0_56 = arith.constant 0 : index
    %c128 = arith.constant 128 : index
    %49 = vector.load %arg11[%c0_56, %c128] : memref<256x144xbf16, #tpu.memory_space<vmem>>, vector<256x16xbf16>
    tpu.vector_store %arg11[%c0_56, %c128], %48 {strides = array<i32>} : memref<256x144xbf16, #tpu.memory_space<vmem>>, vector<256x16xbf16>,
    %c0_57 = arith.constant 0 : index
    %c0_58 = arith.constant 0 : index
    %50 = vector.load %arg11[%c0_57, %c0_58] : memref<256x144xbf16, #tpu.memory_space<vmem>>, vector<256x144xbf16>
    %c0_59 = arith.constant 0 : index
    %c0_60 = arith.constant 0 : index
    %51 = vector.load %arg3[%c0_59, %c0_60] : memref<144x16xbf16, #tpu.memory_space<vmem>>, vector<144x16xbf16>
    %cst_61 = arith.constant dense<0.000000e+00> : vector<256x16xf32>
    %52 = tpu.matmul %50, %51, %cst_61 {dimension_numbers = #tpu.dot_dimension_numbers<[1], [0], [0], [1], [0, 0, 1, 1], [], []>} : vector<256x144xbf16>, vector<144x16xbf16>, vector<256x16xf32> -> vector<256x16xf32>
    %c0_62 = arith.constant 0 : index
    %c0_63 = arith.constant 0 : index
    %53 = vector.load %arg4[%c0_62, %c0_63] : memref<1x16xf32, #tpu.memory_space<vmem>>, vector<1x16xf32>
    %54 = vector.broadcast %53 : vector<1x16xf32> to vector<256x16xf32>
    %55 = arith.addf %52, %54 : vector<256x16xf32>
    %cst_64 = arith.constant dense<0.000000e+00> : vector<16xf32>
    %56 = vector.multi_reduction <add>, %55, %cst_64 [0] : vector<256x16xf32> to vector<16xf32>
    %57 = vector.shape_cast %56 : vector<16xf32> to vector<1x16xf32>
    %58 = arith.mulf %55, %55 : vector<256x16xf32>
    %cst_65 = arith.constant dense<0.000000e+00> : vector<16xf32>
    %59 = vector.multi_reduction <add>, %58, %cst_65 [0] : vector<256x16xf32> to vector<16xf32>
    %60 = vector.shape_cast %59 : vector<16xf32> to vector<1x16xf32>
    %61 = tpu.iota {dimensions = array<i32: 1>} : vector<1x16xi32>
    %c8_i32 = arith.constant 8 : i32
    %62 = vector.broadcast %c8_i32 : i32 to vector<1x16xi32>
    %63 = arith.cmpi sge, %61, %62 : vector<1x16xi32>
    %64 = arith.extui %63 : vector<1x16xi1> to vector<1x16xi32>
    %65 = arith.sitofp %64 : vector<1x16xi32> to vector<1x16xf32>
    %cst_66 = arith.constant 1.000000e+00 : f32
    %66 = vector.broadcast %cst_66 : f32 to vector<1x16xf32>
    %67 = arith.subf %66, %65 : vector<1x16xf32>
    %68 = arith.mulf %57, %67 : vector<1x16xf32>
    %69 = vector.shape_cast %68 : vector<1x16xf32> to vector<1x1x16xf32>
    %cst_67 = arith.constant dense<0.000000e+00> : vector<1xf32>
    %70 = vector.multi_reduction <add>, %69, %cst_67 [1, 2] : vector<1x1x16xf32> to vector<1xf32>
    %71 = vector.shape_cast %70 : vector<1xf32> to vector<1x1x1xf32>
    %72 = vector.extract %71[0, 0, 0] : f32 from vector<1x1x1xf32>
    %73 = arith.mulf %57, %65 : vector<1x16xf32>
    %74 = vector.shape_cast %73 : vector<1x16xf32> to vector<1x1x16xf32>
    %cst_68 = arith.constant dense<0.000000e+00> : vector<1xf32>
    %75 = vector.multi_reduction <add>, %74, %cst_68 [1, 2] : vector<1x1x16xf32> to vector<1xf32>
    %76 = vector.shape_cast %75 : vector<1xf32> to vector<1x1x1xf32>
    %77 = vector.extract %76[0, 0, 0] : f32 from vector<1x1x1xf32>
    %78 = arith.mulf %60, %67 : vector<1x16xf32>
    %79 = vector.shape_cast %78 : vector<1x16xf32> to vector<1x1x16xf32>
    %cst_69 = arith.constant dense<0.000000e+00> : vector<1xf32>
    %80 = vector.multi_reduction <add>, %79, %cst_69 [1, 2] : vector<1x1x16xf32> to vector<1xf32>
    %81 = vector.shape_cast %80 : vector<1xf32> to vector<1x1x1xf32>
    %82 = vector.extract %81[0, 0, 0] : f32 from vector<1x1x1xf32>
    %83 = arith.mulf %60, %65 : vector<1x16xf32>
    %84 = vector.shape_cast %83 : vector<1x16xf32> to vector<1x1x16xf32>
    %cst_70 = arith.constant dense<0.000000e+00> : vector<1xf32>
    %85 = vector.multi_reduction <add>, %84, %cst_70 [1, 2] : vector<1x1x16xf32> to vector<1xf32>
    %86 = vector.shape_cast %85 : vector<1xf32> to vector<1x1x1xf32>
    %87 = vector.extract %86[0, 0, 0] : f32 from vector<1x1x1xf32>
    %cst_71 = arith.constant 2.048000e+03 : f32
    %88 = arith.divf %72, %cst_71 : f32
    %cst_72 = arith.constant 2.048000e+03 : f32
    %89 = arith.divf %77, %cst_72 : f32
    %cst_73 = arith.constant 2.048000e+03 : f32
    %90 = arith.divf %82, %cst_73 : f32
    %91 = arith.mulf %88, %88 : f32
    %92 = arith.subf %90, %91 : f32
    %cst_74 = arith.constant 2.048000e+03 : f32
    %93 = arith.divf %87, %cst_74 : f32
    %94 = arith.mulf %89, %89 : f32
    %95 = arith.subf %93, %94 : f32
    %96 = vector.broadcast %89 : f32 to vector<1x16xf32>
    %97 = vector.broadcast %88 : f32 to vector<1x16xf32>
    %98 = arith.select %63, %96, %97 : vector<1x16xi1>, vector<1x16xf32>
    %cst_75 = arith.constant 9.99999974E-6 : f32
    %99 = arith.addf %95, %cst_75 : f32
    %100 = math.rsqrt %99 : f32
    %cst_76 = arith.constant 9.99999974E-6 : f32
    %101 = arith.addf %92, %cst_76 : f32
    %102 = math.rsqrt %101 : f32
    %103 = vector.broadcast %100 : f32 to vector<1x16xf32>
    %104 = vector.broadcast %102 : f32 to vector<1x16xf32>
    %105 = arith.select %63, %103, %104 : vector<1x16xi1>, vector<1x16xf32>
    %106 = vector.broadcast %98 : vector<1x16xf32> to vector<256x16xf32>
    %107 = arith.subf %55, %106 : vector<256x16xf32>
    %c0_77 = arith.constant 0 : index
    %c0_78 = arith.constant 0 : index
    %108 = vector.load %arg5[%c0_77, %c0_78] : memref<1x16xf32, #tpu.memory_space<vmem>>, vector<1x16xf32>
    %109 = arith.mulf %105, %108 : vector<1x16xf32>
    %110 = vector.broadcast %109 : vector<1x16xf32> to vector<256x16xf32>
    %111 = arith.mulf %107, %110 : vector<256x16xf32>
    %c0_79 = arith.constant 0 : index
    %c0_80 = arith.constant 0 : index
    %112 = vector.load %arg6[%c0_79, %c0_80] : memref<1x16xf32, #tpu.memory_space<vmem>>, vector<1x16xf32>
    %113 = vector.broadcast %112 : vector<1x16xf32> to vector<256x16xf32>
    %114 = arith.addf %111, %113 : vector<256x16xf32>
    %115 = arith.negf %114 : vector<256x16xf32>
    %116 = math.exp %115 : vector<256x16xf32>
    %cst_81 = arith.constant 1.000000e+00 : f32
    %117 = vector.broadcast %cst_81 : f32 to vector<256x16xf32>
    %118 = arith.addf %117, %116 : vector<256x16xf32>
    %119 = arith.divf %117, %118 : vector<256x16xf32>
    %120 = arith.mulf %114, %119 : vector<256x16xf32>
    %121 = arith.truncf %120 : vector<256x16xf32> to vector<256x16xbf16>
    %c0_82 = arith.constant 0 : index
    %c0_83 = arith.constant 0 : index
    %122 = vector.load %arg7[%c0_82, %c0_83] : memref<16x4xbf16, #tpu.memory_space<vmem>>, vector<16x4xbf16>
    %cst_84 = arith.constant dense<0.000000e+00> : vector<256x4xf32>
    %123 = tpu.matmul %121, %122, %cst_84 {dimension_numbers = #tpu.dot_dimension_numbers<[1], [0], [0], [1], [0, 0, 1, 1], [], []>} : vector<256x16xbf16>, vector<16x4xbf16>, vector<256x4xf32> -> vector<256x4xf32>
    %c0_85 = arith.constant 0 : index
    %c0_86 = arith.constant 0 : index
    %124 = vector.load %arg8[%c0_85, %c0_86] : memref<1x4xf32, #tpu.memory_space<vmem>>, vector<1x4xf32>
    %125 = vector.broadcast %124 : vector<1x4xf32> to vector<256x4xf32>
    %126 = arith.addf %123, %125 : vector<256x4xf32>
    %127 = vector.shape_cast %126 : vector<256x4xf32> to vector<16x16x4xf32>
    %c0_87 = arith.constant 0 : index
    %c0_88 = arith.constant 0 : index
    %c0_89 = arith.constant 0 : index
    %c0_90 = arith.constant 0 : index
    %128 = vector.load %arg9[%c0_87, %c0_88, %c0_89, %c0_90] : memref<1x16x16x4xf32, #tpu.memory_space<vmem>>, vector<1x16x16x4xf32>
    %129 = vector.shape_cast %128 : vector<1x16x16x4xf32> to vector<16x16x4xf32>
    %130 = vector.shape_cast %127 : vector<16x16x4xf32> to vector<1x16x16x4xf32>
    tpu.vector_store %arg9[%c0_87, %c0_88, %c0_89, %c0_90], %130 {strides = array<i32>} : memref<1x16x16x4xf32, #tpu.memory_space<vmem>>, vector<1x16x16x4xf32>,
    return
  }
  func.func @transform_0(%arg0: i32) -> (i32, i32, i32, i32) {
    %c0_i32 = arith.constant 0 : i32
    %c0_i32_0 = arith.constant 0 : i32
    %c0_i32_1 = arith.constant 0 : i32
    %c0_i32_2 = arith.constant 0 : i32
    return %arg0, %c0_i32, %c0_i32_0, %c0_i32_1 : i32, i32, i32, i32
  }
  func.func @transform_1(%arg0: i32) -> (i32, i32, i32, i32) {
    %c0_i32 = arith.constant 0 : i32
    %c0_i32_0 = arith.constant 0 : i32
    %c0_i32_1 = arith.constant 0 : i32
    %c0_i32_2 = arith.constant 0 : i32
    return %arg0, %c0_i32, %c0_i32_0, %c0_i32_1 : i32, i32, i32, i32
  }
  func.func @transform_2(%arg0: i32) -> (i32, i32) {
    %c0_i32 = arith.constant 0 : i32
    %c0_i32_0 = arith.constant 0 : i32
    %c0_i32_1 = arith.constant 0 : i32
    return %c0_i32, %c0_i32_0 : i32, i32
  }
  func.func @transform_3(%arg0: i32) -> (i32, i32) {
    %c0_i32 = arith.constant 0 : i32
    %c0_i32_0 = arith.constant 0 : i32
    %c0_i32_1 = arith.constant 0 : i32
    return %c0_i32, %c0_i32_0 : i32, i32
  }
  func.func @transform_4(%arg0: i32) -> (i32, i32) {
    %c0_i32 = arith.constant 0 : i32
    %c0_i32_0 = arith.constant 0 : i32
    %c0_i32_1 = arith.constant 0 : i32
    return %c0_i32, %c0_i32_0 : i32, i32
  }
  func.func @transform_5(%arg0: i32) -> (i32, i32) {
    %c0_i32 = arith.constant 0 : i32
    %c0_i32_0 = arith.constant 0 : i32
    %c0_i32_1 = arith.constant 0 : i32
    return %c0_i32, %c0_i32_0 : i32, i32
  }
  func.func @transform_6(%arg0: i32) -> (i32, i32) {
    %c0_i32 = arith.constant 0 : i32
    %c0_i32_0 = arith.constant 0 : i32
    %c0_i32_1 = arith.constant 0 : i32
    return %c0_i32, %c0_i32_0 : i32, i32
  }
  func.func @transform_7(%arg0: i32) -> (i32, i32) {
    %c0_i32 = arith.constant 0 : i32
    %c0_i32_0 = arith.constant 0 : i32
    %c0_i32_1 = arith.constant 0 : i32
    return %c0_i32, %c0_i32_0 : i32, i32
  }
  func.func @transform_8(%arg0: i32) -> (i32, i32, i32, i32) {
    %c0_i32 = arith.constant 0 : i32
    %c0_i32_0 = arith.constant 0 : i32
    %c0_i32_1 = arith.constant 0 : i32
    %c0_i32_2 = arith.constant 0 : i32
    return %arg0, %c0_i32, %c0_i32_0, %c0_i32_1 : i32, i32, i32, i32
  }
}

</mosaic_0001>

<bundles_post_ra>
// kernel: decoder_forward.2
= control target key start
LH: loop header
LB: loop body
LE: loop exit
PB: predicated region body
PF: predicated region fallthrough
CT: control target
= control target key end

     0   :  { %10 = vsyncpa [#allocation5], 0  ;;  %s2219_s0 = inlined_call_operand.hbm [shape: bf16[2,8,8,16], index: 0, kind: input, shape index: {}]   ;;  %s2220_s1 = inlined_call_operand.hbm [shape: bf16[144,64], index: 1, kind: input, shape index: {}]   ;;  %s2221_s2 = inlined_call_operand.hbm [shape: f32[1,64], index: 2, kind: input, shape index: {}]   ;;  %s2222_s3 = inlined_call_operand.hbm [shape: f32[1,64], index: 3, kind: input, shape index: {}]   ;;  %s2223_s4 = inlined_call_operand.hbm [shape: f32[1,64], index: 4, kind: input, shape index: {}]   ;;  %s2224_s5 = inlined_call_operand.hbm [shape: bf16[2,8,8,64], index: 5, kind: output, shape index: {}]  }
   0x1   :  { %12 = vsyncpa [#allocation5 + $0x1], 0 }
   0x2   :  { %13 = vsyncpa [#allocation8], 0 }
   0x3   :  { %14 = vsyncpa [#allocation11], 0 }
   0x4   :  { %15 = vsyncpa [#allocation6], 0 }
   0x5   :  { %17 = vsyncpa [#allocation6 + $0x1], 0  ;;  %s1647_s18 = smov 0   ;;  %s1649_s19 = smov 0  }
   0x6   :  { %s1651_s20 = smov 0   ;;  %s1653_s21 = smov 0  }
   0x7 LB: > { %s1668_s22 = sadd.s32 4294967295, %s1597_s21   ;;  %s1140_s23 = sadd.s32 4294967294, %s1597_s21   ;;  %s1597_s21 = sphi %s1653_s21, %s2249_s21   ;;  %s1593_s20 = sphi %s1651_s20, %s2248_s20   ;;  %s1589_s19 = sphi %s1649_s19, %s2247_s19   ;;  %s1585_s18 = sphi %s1647_s18, %s2246_s18  }
   0x8   : > { %p43_p0 = scmp.ne.s32.totalorder %s1589_s19, %s1585_s18  ;;  %p2225_p1 = scmp.eq.s32.totalorder %s1668_s22, 0 }
   0x9   : > { %p157_p3 = scmp.eq.s32.totalorder %s1140_s23, 1  ;;  %p1141_p5 = scmp.ge.s32.totalorder %s1597_s21, 1 }
   0xa   : > { %p1677_p4 = por %p2225_p1, %p43_p0  ;;  %p164_p7 = scmp.lt.s32.totalorder %s1597_s21, 3 }
   0xb   : > { %p1682_p6 = por %p157_p3, %p43_p0  ;;  %s1599_s27 = smov [#allocation7]  }
   0xc   : > { %s2229_s24 = scalar_select %p1677_p4, 1, 0 }
   0xd   : > { %s2230_s25 = scalar_select %p1682_p6, 1, 0 }
   0xe   : > { %p1687_p8 = pnand %p1141_p5, %p164_p7  ;;  %s176_s28 = sshll.u32 %s1599_s27, 4  ;;  %s1691_s28 = int_to_ptr.vmem [resolvable:$true] %s176_s28 }
   0xf   : > { %s1600_s30 = smov [#allocation10]   ;;  %s1601_s7 = smov [#allocation9]  }
  0x10   : > { %s2231_s26 = scalar_select %p1687_p8, 1, 0 }
  0x11   : > { %p1257_p9 = pneg %p1687_p8  ;;  %s201_s6 = sshll.u32 %s1600_s30, 4  ;;  %s1702_s6 = int_to_ptr.vmem [resolvable:$true] %s201_s6 }
  0x12   : > { %s1704_s8 = sshll.u32 %s1601_s7, 4  ;;  %s1381_s11 = scalar_lea.hbm %s2220_s1, 1152  ;;  %s191_s8 = int_to_ptr.vmem [resolvable:$true] %s1704_s8 }
  0x13   : > { %p1698_p11 = pnand %p1257_p9, %p2225_p1  ;;  %p1382_p12 = scmp.ne.s32.totalorder %s2220_s1, %s1381_s11 }
  0x14   : > { %p1388_p5 = scmp.lt.u32.totalorder %s1381_s11, %s2220_s1 }
  0x15   : > { %p1714_p13 = pneg %p1698_p11 }
  0x17   : > { %p1384_p0 = pnand %p1714_p13, %p1382_p12 }
  0x19   : > { %p1385_p3 = pneg %p1384_p0 }
  0x1b   : > { %p1390_p7 = pnand %p1388_p5, %p1385_p3 }
  0x1d   : > { %1393 = shalt.err (!%p1390_p7)
}
  0x1e   : > { %s1394_s17 = scalar_lea.vmem %s1691_s28, 1152  ;;  %p1402_p2 = scmp.lt.s32.totalorder %s1691_s28, %s1691_s28 }
  0x1f   : > { %p1395_p9 = scmp.ne.s32.totalorder %s1691_s28, %s1394_s17  ;;  %p1403_p6 = scmp.lt.s32.totalorder %s1394_s17, %s1394_s17 }
  0x21   : > { %p1397_p10 = pnand %p1395_p9, %p1714_p13  ;;  %p1404_p12 = por %p1403_p6, %p1402_p2 }
  0x23   : > { %p1398_p1 = pneg %p1397_p10 }
  0x25   : > { %p1405_p0 = pnand %p1404_p12, %p1398_p1 }
  0x27   : > { %1408 = shalt.err (!%p1405_p0)
}
  0x28   : > { %s1602_s23 = smov 64   ;;  %s1603_s27 = smov 4  }
  0x29   : > { %1260 = dma.hbm_to_vmem [thread:$0]  (!%p1698_p11), %s2220_s1, 1152, %s1691_s28, [#allocation8], %s1602_s23, %s1602_s23, %s1603_s27  }
  0x2a   : > { %s1409_s11 = scalar_lea.hbm %s2222_s3, 16 }
  0x2b   : > { %p1410_p1 = scmp.ne.s32.totalorder %s2222_s3, %s1409_s11  ;;  %p1416_p10 = scmp.lt.u32.totalorder %s1409_s11, %s2222_s3 }
  0x2d   : > { %p1412_p2 = pnand %p1410_p1, %p1714_p13 }
  0x2f   : > { %p1413_p6 = pneg %p1412_p2 }
  0x31   : > { %p1418_p3 = pnand %p1416_p10, %p1413_p6 }
  0x33   : > { %1421 = shalt.err (!%p1418_p3)
}
  0x34   : > { %s1422_s28 = scalar_lea.vmem %s1702_s6, 16  ;;  %s1429_s17 = scalar_lea.vmem %s1702_s6, 32 }
  0x35   : > { %p1423_p5 = scmp.ne.s32.totalorder %s1702_s6, %s1422_s28  ;;  %p1430_p12 = scmp.lt.s32.totalorder %s1702_s6, %s1702_s6 }
  0x36   : > { %p1431_p0 = scmp.lt.s32.totalorder %s1429_s17, %s1422_s28 }
  0x37   : > { %p1425_p7 = pnand %p1423_p5, %p1714_p13 }
  0x38   : > { %p1432_p1 = por %p1431_p0, %p1430_p12 }
  0x39   : > { %p1426_p9 = pneg %p1425_p7 }
  0x3b   : > { %p1433_p2 = pnand %p1432_p1, %p1426_p9 }
  0x3d   : > { %1436 = shalt.err (!%p1433_p2)
}
  0x3e   : > { %1266 = dma.hbm_to_vmem [thread:$0]  (!%p1698_p11), %s2222_s3, 16, %s1702_s6, [#allocation11]  }
  0x3f   : > { %s1437_s11 = scalar_lea.hbm %s2221_s2, 16 }
  0x40   : > { %p1438_p6 = scmp.ne.s32.totalorder %s2221_s2, %s1437_s11  ;;  %p1444_p5 = scmp.lt.u32.totalorder %s1437_s11, %s2221_s2 }
  0x42   : > { %p1440_p10 = pnand %p1438_p6, %p1714_p13 }
  0x44   : > { %p1441_p3 = pneg %p1440_p10 }
  0x46   : > { %p1446_p7 = pnand %p1444_p5, %p1441_p3 }
  0x48   : > { %1449 = shalt.err (!%p1446_p7)
}
  0x49   : > { %s1450_s28 = scalar_lea.vmem %s191_s8, 16  ;;  %s1457_s6 = scalar_lea.vmem %s191_s8, 32 }
  0x4a   : > { %p1451_p9 = scmp.ne.s32.totalorder %s191_s8, %s1450_s28  ;;  %p1458_p1 = scmp.lt.s32.totalorder %s191_s8, %s191_s8 }
  0x4b   : > { %p1459_p2 = scmp.lt.s32.totalorder %s1457_s6, %s1450_s28 }
  0x4c   : > { %p1453_p12 = pnand %p1451_p9, %p1714_p13 }
  0x4d   : > { %p1460_p4 = por %p1459_p2, %p1458_p1 }
  0x4e   : > { %p1454_p0 = pneg %p1453_p12 }
  0x50   : > { %p1461_p8 = pnand %p1460_p4, %p1454_p0 }
  0x52   : > { %1464 = shalt.err (!%p1461_p8)
}
  0x53   : > { %1263 = dma.hbm_to_vmem [thread:$0]  (!%p1698_p11), %s2221_s2, 16, %s191_s8, [#allocation8]  }
  0x54   : > { %s1604_s7 = smov [#allocation12]   ;;  %s1465_s12 = scalar_lea.hbm %s2223_s4, 16 }
  0x55   : > { %s212_s9 = sshll.u32 %s1604_s7, 4  ;;  %p1466_p6 = scmp.ne.s32.totalorder %s2223_s4, %s1465_s12  ;;  %s213_s9 = int_to_ptr.vmem [resolvable:$true] %s212_s9 }
  0x56   : > { %p1472_p10 = scmp.lt.u32.totalorder %s1465_s12, %s2223_s4 }
  0x57   : > { %p1468_p4 = pnand %p1466_p6, %p1714_p13 }
  0x59   : > { %p1469_p8 = pneg %p1468_p4 }
  0x5b   : > { %p1474_p3 = pnand %p1472_p10, %p1469_p8 }
  0x5d   : > { %1477 = shalt.err (!%p1474_p3)
}
  0x5e   : > { %s1478_s8 = scalar_lea.vmem %s213_s9, 16  ;;  %s1485_s6 = scalar_lea.vmem %s213_s9, 32 }
  0x5f   : > { %p1479_p5 = scmp.ne.s32.totalorder %s213_s9, %s1478_s8  ;;  %p1486_p12 = scmp.lt.s32.totalorder %s213_s9, %s213_s9 }
  0x60   : > { %p1487_p0 = scmp.lt.s32.totalorder %s1485_s6, %s1478_s8 }
  0x61   : > { %p1481_p7 = pnand %p1479_p5, %p1714_p13 }
  0x62   : > { %p1488_p1 = por %p1487_p0, %p1486_p12 }
  0x63   : > { %p1482_p9 = pneg %p1481_p7 }
  0x65   : > { %p1489_p2 = pnand %p1488_p1, %p1482_p9 }
  0x67   : > { %1492 = shalt.err (!%p1489_p2)
}
  0x68   : > { %1269 = dma.hbm_to_vmem [thread:$0]  (!%p1698_p11), %s2223_s4, 16, %s213_s9, [#allocation11]  }
  0x69   : > { %s1800_s14 = sadd.s32 1, %s1597_s21   ;;  %s30_s7 = sadd.s32 1, %s1593_s20 }
  0x6a   : > { %s27_s29 = ssub.s32 %s1597_s21, %s1800_s14  ;;  %p37_p13 = scmp.ne.s32.totalorder %s1593_s20, %s1589_s19 }
  0x6b   : > { %p28_p6 = scmp.eq.s32.totalorder %s27_s29, 0  ;;  %p38_p4 = scmp.eq.s32.totalorder %s1597_s21, 0 }
  0x6c   : > { %p2234_p8 = scmp.eq.s32.totalorder %s1668_s22, 1  ;;  %p1282_p3 = scmp.lt.s32.totalorder %s1597_s21, 2 }
  0x6d   : > { %s1816_s11 = scalar_select %p28_p6, %s1593_s20, %s30_s7  }
  0x6e   : > { %p1810_p10 = por %p2234_p8, %p37_p13  ;;  %p39_p5 = por %p38_p4, %p37_p13 }
  0x6f   : > { %s223_s12 = sand.u32 1, %s1593_s20   ;;  %s1186_s9 = sshll.u32 %s1597_s21, 9 }
  0x70   : > { %s1147_s13 = sshll.u32 %s223_s12, 5  ;;  %s1823_s28 = scalar_lea.hbm %s2219_s0, %s1186_s9 }
  0x71   : > { %s227_s8 = scalar_lea.vmem [#allocation4], %s1147_s13  ;;  %p1827_p11 = pnand %p1282_p3, %p39_p5 }
  0x72   : > { %s234_s6 = sshll.u32 %s227_s8, 4  ;;  %s1831_s30 = scalar_lea.sflag [#allocation5], %s223_s12  ;;  %s1825_s6 = int_to_ptr.vmem [resolvable:$true] %s234_s6 }
  0x73   : > { %s1493_s7 = scalar_lea.hbm %s1823_s28, 512  ;;  %p1495_p9 = pneg %p1827_p11 }
  0x74   : > { %p1494_p7 = scmp.ne.s32.totalorder %s1823_s28, %s1493_s7  ;;  %s1498_s9 = scalar_lea.hbm %s2219_s0, 1024 }
  0x75   : > { %p1499_p1 = scmp.lt.u32.totalorder %s1823_s28, %s2219_s0  ;;  %p1500_p2 = scmp.lt.u32.totalorder %s1498_s9, %s1493_s7 }
  0x76   : > { %p1496_p12 = pnand %p1495_p9, %p1494_p7  ;;  %p1502_p6 = scmp.lt.u32.totalorder %s1493_s7, %s1823_s28 }
  0x77   : > { %p1501_p13 = por %p1500_p2, %p1499_p1 }
  0x78   : > { %p1497_p0 = pneg %p1496_p12 }
  0x79   : > { %p1503_p4 = por %p1502_p6, %p1501_p13 }
  0x7b   : > { %p1504_p8 = pnand %p1503_p4, %p1497_p0 }
  0x7d   : > { %1507 = shalt.err (!%p1504_p8)
}
  0x7e   : > { %s1508_s12 = scalar_lea.vmem %s1825_s6, 512  ;;  %s1605_s8 = smov [#allocation4]  }
  0x7f   : > { %p1509_p3 = scmp.ne.s32.totalorder %s1825_s6, %s1508_s12  ;;  %s1513_s29 = sshll.u32 %s1605_s8, 4  ;;  %s1514_s29 = int_to_ptr.vmem [resolvable:$false] %s1513_s29 }
  0x80   : > { %s1515_s13 = scalar_lea.vmem %s1514_s29, 1024  ;;  %p1516_p12 = scmp.lt.s32.totalorder %s1825_s6, %s1514_s29 }
  0x81   : > { %p1511_p5 = pnand %p1509_p3, %p1495_p9  ;;  %p1517_p1 = scmp.lt.s32.totalorder %s1515_s13, %s1508_s12 }
  0x83   : > { %p1512_p7 = pneg %p1511_p5  ;;  %p1518_p2 = por %p1517_p1, %p1516_p12 }
  0x85   : > { %p1519_p13 = pnand %p1518_p2, %p1512_p7 }
  0x87   : > { %1522 = shalt.err (!%p1519_p13)
}
  0x88   : > { %1273 = dma.hbm_to_vmem [thread:$0]  (!%p1827_p11), %s1823_s28, 512, %s1825_s6, %s1831_s30, %s1602_s23, %s1602_s23, %s1603_s27  }
  0x89   : > { %p2237_p9 = scmp.ne.s32.totalorder %s2231_s26, 0 }
  0x8a   : > { %s1865_s7 = sand.u32 (!%p2237_p9), 1, %s1589_s19   ;;  %p2238_p0 = scmp.ne.s32.totalorder (!%p2237_p9), %s2229_s24, 0 }
  0x8b   : > { %246 = sbr.rel (%p2237_p9) target bundleno = 930 (0x3a2), region = 40  ;;  %s1151_s9 = sshll.u32 (!%p2237_p9), %s1865_s7, 5 }
  0x8c   : > { %s249_s15 = scalar_lea.sflag (!%p2237_p9), [#allocation5], %s1865_s7  ;;  %s1871_s17 = scalar_lea.vmem (!%p2237_p9), [#allocation4], %s1151_s9 }
  0x92   : > { %1568 = dma.done.wait (%p2238_p0), %s249_s15, 512  }
  0x93   : > { %1570 = vsyncadd (%p2238_p0), %s249_s15, 4294966784  ;;  %p2239_p11 = scmp.eq.s32.totalorder %s1668_s22, 0 }
  0x95   : > { %1572 = dma.done.wait (%p2239_p11), [#allocation8], 1168   ;;  %p2240_p6 = pmov %p2239_p11 }
  0x97   : > { %1574 = vsyncadd (%p2240_p6), [#allocation8], 4294966128  ;;  %p2241_p4 = pmov %p2240_p6 }
  0x99   : > { %1576 = dma.done.wait (%p2241_p4), [#allocation11], 32   ;;  %p2242_p8 = pmov %p2241_p4 }
  0x9a   : > { %vm312_vm0 = vcmask 130048   ;;  %vm320_vm1 = vcmask 122880   ;;  %v1606_v0 = vmov 0.0   ;;  %vm314_vm2 = vcmask 123904   ;;  %v1189_v2 = vld [vmem:[%s1871_s17] sm:$0xff]   ;;  %v1204_v3 = vld [vmem:[%s1871_s17 + $0x8] sm:$0xff]  }
  0x9b   : > { %1578 = vsyncadd (%p2242_p8), [#allocation11], 4294967264  ;;  %321 = vst.msk [vmem:[#allocation2 + $0x10] sm:$0x1] %vm320_vm1, %v1606_v0  ;;  %v1607_v1 = vmov 0   ;;  %v1205_v4 = vld [vmem:[%s1871_s17 + $0x10] sm:$0xff]   ;;  %v1190_v5 = vunpack.c.l.bf16 %v1189_v2  ;;  %v1191_v6 = vunpack.c.h.bf16 %v1189_v2  ;;  %v1194_v7 = vunpack.c.l.bf16 %v1204_v3 }
  0x9c   : > { %322 = vst.msk [vmem:[#allocation2 + $0x20] sm:$0x1] %vm320_vm1, %v1606_v0  ;;  %323 = vst.msk [vmem:[#allocation2 + $0x30] sm:$0x1] %vm320_vm1, %v1606_v0  ;;  %708 = vmatprep.subr.bf16.mxu0 %v1607_v1  ;;  %1207 = vmatprep.subr.bf16.mxu1 %v1607_v1  ;;  %v1195_v8 = vunpack.c.h.bf16 %v1204_v3  ;;  %v1206_v9 = vld [vmem:[%s1871_s17 + $0x18] sm:$0xff]   ;;  %v1198_v10 = vunpack.c.l.bf16 %v1205_v4  ;;  %v1199_v11 = vunpack.c.h.bf16 %v1205_v4  ;;  %v1336_v14 = vld [vmem:[#allocation7] sm:$0xff]  }
  0x9d   : > { %313 = vst.msk [vmem:[#allocation2] sm:$0xff] %vm312_vm0, %v1606_v0  ;;  %317 = vst.msk [vmem:[#allocation2 + $0x90] sm:$0xff] %vm312_vm0, %v1606_v0  ;;  %v1202_v12 = vunpack.c.l.bf16 %v1206_v9  ;;  %v1203_v13 = vunpack.c.h.bf16 %v1206_v9  ;;  %709 = vmatpush1.bf16.msra.mxu0 %v1336_v14  ;;  %v1337_v15 = vld [vmem:[#allocation7 + $0x8] sm:$0xff]   ;;  %1216 = vmatpush1.bf16.msra.mxu1 %v1336_v14  ;;  %v1338_v19 = vld [vmem:[#allocation7 + $0x10] sm:$0xff]   ;;  %s1608_s24 = smov 48   ;;  %s1609_s26 = smov 16  }
  0x9e   : > { %324 = vst.msk [vmem:[#allocation2 + $0x40] sm:$0x1] %vm320_vm1, %v1606_v0  ;;  %325 = vst.msk [vmem:[#allocation2 + $0x50] sm:$0x1] %vm320_vm1, %v1606_v0  ;;  %710 = vmatprep.subr.bf16.mxu0 %v1607_v1  ;;  %1208 = vmatprep.subr.bf16.mxu1 %v1607_v1  ;;  %v1339_v36 = vld [vmem:[#allocation7 + $0x18] sm:$0xff]   ;;  %s2228_s23 = smov 64  }
  0x9f   : > { %326 = vst.msk [vmem:[#allocation2 + $0x60] sm:$0x1] %vm320_vm1, %v1606_v0  ;;  %327 = vst.msk [vmem:[#allocation2 + $0x70] sm:$0x1] %vm320_vm1, %v1606_v0  ;;  %s1611_s27 = smov 32   ;;  %v1340_v49 = vld [vmem:[#allocation7 + $0x20] sm:$0xff]  }
  0xa0   : > { %328 = vst.msk [vmem:[#allocation2 + $0x80] sm:$0x1] %vm320_vm1, %v1606_v0  ;;  %329 = vst.msk [vmem:[#allocation2 + $0x19] sm:$0x1] %vm320_vm1, %v1606_v0  ;;  %s1612_s28 = smov 96   ;;  %s1613_s6 = smov 80  }
  0xa1   : > { %330 = vst.msk [vmem:[#allocation2 + $0x29] sm:$0x1] %vm320_vm1, %v1606_v0  ;;  %331 = vst.msk [vmem:[#allocation2 + $0x39] sm:$0x1] %vm320_vm1, %v1606_v0  ;;  %711 = vmatpush1.bf16.msra.mxu0 %v1337_v15  ;;  %1217 = vmatpush1.bf16.msra.mxu1 %v1337_v15  ;;  %v1341_v52 = vld [vmem:[#allocation7 + $0x28] sm:$0xff]   ;;  %s1614_s30 = smov 112  }
  0xa2   : > { %332 = vst.msk [vmem:[#allocation2 + $0x49] sm:$0x1] %vm320_vm1, %v1606_v0  ;;  %333 = vst.msk [vmem:[#allocation2 + $0x59] sm:$0x1] %vm320_vm1, %v1606_v0  ;;  %712 = vmatprep.subr.bf16.mxu0 %v1607_v1  ;;  %1209 = vmatprep.subr.bf16.mxu1 %v1607_v1  ;;  %v1342_v57 = vld [vmem:[#allocation7 + $0x30] sm:$0xff]   ;;  %v1343_v59 = vld [vmem:[#allocation7 + $0x38] sm:$0xff]  }
  0xa3   : > { %334 = vst.msk [vmem:[#allocation2 + $0x69] sm:$0x1] %vm320_vm1, %v1606_v0  ;;  %335 = vst.msk [vmem:[#allocation2 + $0x79] sm:$0x1] %vm320_vm1, %v1606_v0  ;;  %v1344_v63 = vld [vmem:[#allocation7 + $0x40] sm:$0xff]   ;;  %vm389_vm3 = vcmask 261248  }
  0xa4   : > { %336 = vst.msk [vmem:[#allocation2 + $0x89] sm:$0x1] %vm320_vm1, %v1606_v0  ;;  %v345_v18 = vld [vmem:[#allocation2] sm:$0xff]  ;;  %v534_v15 = vld [vmem:[#allocation2 + $0x90] sm:$0xff]  ;;  %vm422_vm4 = vcmask 392448   ;;  %vm455_vm5 = vcmask 523648  }
  0xa5   : > { %315 = vst.msk [vmem:[#allocation2 + $0x8] sm:$0x3] %vm314_vm2, %v1606_v0  ;;  %318 = vst.msk [vmem:[#allocation2 + $0x98] sm:$0x3] %vm314_vm2, %v1606_v0  ;;  %713 = vmatpush1.bf16.msra.mxu0 %v1338_v19  ;;  %1218 = vmatpush1.bf16.msra.mxu1 %v1338_v19  ;;  %vm488_vm6 = vcmask 654848   ;;  %vm521_vm7 = vcmask 786048  }
  0xa6   : > { %337 = vst.msk [vmem:[#allocation2 + $0x11] sm:$0xff] %vm312_vm0, %v1190_v5  ;;  %338 = vst.msk [vmem:[#allocation2 + $0x21] sm:$0xff] %vm312_vm0, %v1191_v6  ;;  %714 = vmatprep.subr.bf16.mxu0 %v1607_v1  ;;  %1210 = vmatprep.subr.bf16.mxu1 %v1607_v1  ;;  %vm555_vm8 = vcmask 917248   ;;  %vm588_vm9 = vcmask 1048448   ;;  %vm773_vm10 = vcmask 523264   ;;  %vm831_vm12 = vcmask 516096  }
  0xa7   : > { %339 = vst.msk [vmem:[#allocation2 + $0x31] sm:$0xff] %vm312_vm0, %v1194_v7  ;;  %340 = vst.msk [vmem:[#allocation2 + $0x41] sm:$0xff] %vm312_vm0, %v1195_v8  ;;  %vm1006_vm13 = vcmask 519168  }
  0xa8   : > { %341 = vst.msk [vmem:[#allocation2 + $0x51] sm:$0xff] %vm312_vm0, %v1198_v10  ;;  %342 = vst.msk [vmem:[#allocation2 + $0x61] sm:$0xff] %vm312_vm0, %v1199_v11 }
  0xa9   : > { %343 = vst.msk [vmem:[#allocation2 + $0x71] sm:$0xff] %vm312_vm0, %v1202_v12  ;;  %344 = vst.msk [vmem:[#allocation2 + $0x81] sm:$0xff] %vm312_vm0, %v1203_v13  ;;  %715 = vmatpush1.bf16.msra.mxu0 %v1339_v36  ;;  %1219 = vmatpush1.bf16.msra.mxu1 %v1339_v36 }
  0xaa   : > { %716 = vmatprep.subr.bf16.mxu0 %v1607_v1  ;;  %1211 = vmatprep.subr.bf16.mxu1 %v1607_v1 }
  0xac   : > { %v361_v16 = vld [vmem:[#allocation2 + $0x1] sm:$0xff]  ;;  %v600_v8 = vld [vmem:[#allocation2 + $0x92] sm:$0xff] }
  0xad   : > { %v394_v17 = vld [vmem:[#allocation2 + $0x2] sm:$0xff]  ;;  %v427_v20 = vld [vmem:[#allocation2 + $0x10] sm:$0xff]  ;;  %717 = vmatpush1.bf16.msra.mxu0 %v1340_v49  ;;  %1220 = vmatpush1.bf16.msra.mxu1 %v1340_v49 }
  0xae   : > { %v428_v21 = vld [vmem:[#allocation2 + $0x20] sm:$0xff]  ;;  %v362_v22 = vld [vmem:[#allocation2 + $0x11] sm:$0xff]  ;;  %v353_v28 = vpack.c.bf16 %v427_v20, %v345_v18  ;;  %718 = vmatprep.subr.bf16.mxu0 %v1607_v1  ;;  %1212 = vmatprep.subr.bf16.mxu1 %v1607_v1 }
  0xaf   : > { %v435_v23 = vpack.c.bf16 %v428_v21, %v427_v20  ;;  %v369_v24 = vpack.c.bf16 %v362_v22, %v361_v16  ;;  %v461_v25 = vld [vmem:[#allocation2 + $0x21] sm:$0xff]  ;;  %v395_v26 = vld [vmem:[#allocation2 + $0x12] sm:$0xff] }
  0xb0   : > { %v1941_v27 = vld [vmem:[#allocation2 + $0x30] sm:$0xff]  ;;  %v494_v30 = vld [vmem:[#allocation2 + $0x22] sm:$0xff]  ;;  %v468_v32 = vpack.c.bf16 %v461_v25, %v362_v22  ;;  %v402_v33 = vpack.c.bf16 %v395_v26, %v394_v17  ;;  %357 = vst.msk [vmem:[#allocation3] sm:$0xff] %vm312_vm0, %v353_v28 }
  0xb1   : > { %v535_v29 = vpack.c.bf16 %v1941_v27, %v428_v21  ;;  %v1944_v31 = vld [vmem:[#allocation2 + $0x32] sm:$0xff]  ;;  %443 = vrot.lane.b32.xlu1 %v435_v23, %s1608_s24  ;;  %377 = vrot.lane.b32.xlu0 %v369_v24, %s1609_s26  ;;  %v1949_v35 = vld [vmem:[#allocation2 + $0x40] sm:$0xff]  ;;  %v501_v46 = vpack.c.bf16 %v494_v30, %v395_v26 }
  0xb2   : > { %v403_v34 = vpack.c.bf16 %v1944_v31, %v494_v30  ;;  %v1952_v37 = vld [vmem:[#allocation2 + $0x42] sm:$0xff]  ;;  %v1954_v38 = vld [vmem:[#allocation2 + $0x52] sm:$0xff]  ;;  %719 = vmatpush1.bf16.msra.mxu0 %v1341_v52  ;;  %1221 = vmatpush1.bf16.msra.mxu1 %v1341_v52  ;;  %v436_v58 = vpack.c.bf16 %v1949_v35, %v1941_v27 }
  0xb3   : > { %v1956_v39 = vld [vmem:[#allocation2 + $0x50] sm:$0xff]  ;;  %358 = vst.msk [vmem:[#allocation3 + $0x10] sm:$0xff] %vm312_vm0, %v535_v29  ;;  %v404_v40 = vpack.c.bf16 %v1954_v38, %v1952_v37  ;;  %v1961_v41 = vld [vmem:[#allocation2 + $0x60] sm:$0xff]  ;;  %720 = vmatprep.subr.bf16.mxu0 %v1607_v1  ;;  %1213 = vmatprep.subr.bf16.mxu1 %v1607_v1  ;;  %v502_v2 = vpack.c.bf16 %v1952_v37, %v1944_v31 }
  0xb4   : > { %v1965_v42 = vpack.c.bf16 %v1956_v39, %v1949_v35  ;;  %605 = vst.msk [vmem:[#allocation3 + $0x8] sm:$0xff] %vm312_vm0, %v403_v34  ;;  %v1970_v43 = vld [vmem:[#allocation2 + $0x62] sm:$0xff]  ;;  %v1972_v44 = vld [vmem:[#allocation2 + $0x70] sm:$0xff]  ;;  %v437_v61 = vpack.c.bf16 %v1961_v41, %v1956_v39 }
  0xb5   : > { %v1974_v45 = vld [vmem:[#allocation2 + $0x72] sm:$0xff]  ;;  %476 = vrot.lane.b32.xlu1 %v468_v32, %s2228_s23  ;;  %410 = vrot.lane.b32.xlu0 %v402_v33, %s1611_s27  ;;  %v1980_v47 = vpack.c.bf16 %v1972_v44, %v1961_v41  ;;  %606 = vst.msk [vmem:[#allocation3 + $0x18] sm:$0xff] %vm312_vm0, %v404_v40  ;;  %v365_v53 = vld [vmem:[#allocation2 + $0x41] sm:$0xff]  ;;  %v503_v4 = vpack.c.bf16 %v1970_v43, %v1954_v38 }
  0xb6   : > { %v1984_v48 = vpack.c.bf16 %v1974_v45, %v1970_v43  ;;  %359 = vst.msk [vmem:[#allocation3 + $0x20] sm:$0xff] %vm312_vm0, %v1965_v42  ;;  %v364_v50 = vld [vmem:[#allocation2 + $0x31] sm:$0xff]  ;;  %721 = vmatpush1.bf16.msra.mxu0 %v1342_v57  ;;  %1222 = vmatpush1.bf16.msra.mxu1 %v1342_v57  ;;  %v465_v62 = vld [vmem:[#allocation2 + $0x61] sm:$0xff] }
  0xb7   : > { %360 = vst.msk [vmem:[#allocation3 + $0x30] sm:$0xff] %vm312_vm0, %v1980_v47  ;;  %v370_v51 = vpack.c.bf16 %v364_v50, %v461_v25  ;;  %v366_v54 = vld [vmem:[#allocation2 + $0x51] sm:$0xff]  ;;  %722 = vmatprep.subr.bf16.mxu0 %v1607_v1  ;;  %v469_v60 = vpack.c.bf16 %v365_v53, %v364_v50  ;;  %1214 = vmatprep.subr.bf16.mxu1 %v1607_v1  ;;  %v500_v7 = vld [vmem:[#allocation2 + $0x82] sm:$0xff] }
  0xb8   : > { %607 = vst.msk [vmem:[#allocation3 + $0x28] sm:$0xff] %vm312_vm0, %v1984_v48  ;;  %v371_v56 = vpack.c.bf16 %v366_v54, %v365_v53  ;;  %v470_v3 = vpack.c.bf16 %v465_v62, %v366_v54  ;;  %v565_v6 = vld [vmem:[#allocation2 + $0x71] sm:$0xff]  ;;  %v434_v9 = vld [vmem:[#allocation2 + $0x80] sm:$0xff]  ;;  %v604_v10 = vpack.c.bf16 %v600_v8, %v500_v7  ;;  %v504_v14 = vpack.c.bf16 %v500_v7, %v1974_v45  ;;  %v1157_v57 = vld [vmem:[#allocation9] ss:$0 sm:$0xff] }
  0xb9   : > { %543 = vrot.lane.b32.xlu1 %v535_v29, %s1612_s28  ;;  %509 = vrot.lane.b32.xlu0 %v501_v46, %s1613_s6  ;;  %v438_v11 = vpack.c.bf16 %v434_v9, %v1972_v44  ;;  %v467_v12 = vld [vmem:[#allocation2 + $0x81] sm:$0xff]  ;;  %v567_v16 = vld [vmem:[#allocation2 + $0x91] sm:$0xff]  ;;  %v538_v17 = vpack.c.bf16 %v534_v15, %v434_v9 }
  0xba   : > { %723 = vmatpush1.bf16.msra.mxu0 %v1343_v59  ;;  %1223 = vmatpush1.bf16.msra.mxu1 %v1343_v59  ;;  %608 = vst.msk [vmem:[#allocation3 + $0x38] sm:$0xff] %vm312_vm0, %v604_v10  ;;  %v471_v13 = vpack.c.bf16 %v467_v12, %v565_v6  ;;  %v571_v18 = vpack.c.bf16 %v567_v16, %v467_v12 }
  0xbb   : > { %v610_v55 = vld [vmem:[#allocation3 + $0x8] sm:$0xff]  ;;  %724 = vmatprep.subr.bf16.mxu0 %v1607_v1  ;;  %1215 = vmatprep.subr.bf16.mxu1 %v1607_v1  ;;  %v570_v1 = vpack.c.bf16 %v565_v6, %v465_v62 }
  0xbc   : > { %1167 = vmatprep.mubr.msk.bf16.mxu0 %vm312_vm0, %v610_v55  ;;  %v612_v29 = vld [vmem:[#allocation3 + $0x18] sm:$0xff] }
  0xbd   : > { %379 = vrot.lane.b32.xlu1 %v370_v51, %s1609_s26  ;;  %576 = vrot.lane.b32.xlu0 %v370_v51, %s1614_s30 }
  0xbe   : > { %725 = vmatpush1.bf16.msra.mxu0 %v1344_v63  ;;  %1224 = vmatpush1.bf16.msra.mxu1 %v1344_v63 }
  0xbf   : > { %v614_v5 = vld [vmem:[#allocation3 + $0x28] sm:$0xff] }
  0xc0   : > { %1169 = vmatprep.mubr.msk.bf16.mxu1 %vm312_vm0, %v614_v5 }
  0xc1   : > { %412 = vrot.lane.b32.xlu1 %v403_v34, %s1611_s27  ;;  %381 = vrot.lane.b32.xlu0 %v371_v56, %s1609_s26  ;;  %v616_v46 = vld [vmem:[#allocation3 + $0x38] sm:$0xff] }
  0xc5   : > { %445 = vrot.lane.b32.xlu1 %v436_v58, %s1608_s24  ;;  %414 = vrot.lane.b32.xlu0 %v404_v40, %s1611_s27 }
  0xc9   : > { %478 = vrot.lane.b32.xlu1 %v469_v60, %s2228_s23  ;;  %447 = vrot.lane.b32.xlu0 %v437_v61, %s1608_s24 }
  0xcd   : > { %511 = vrot.lane.b32.xlu1 %v502_v2, %s1613_s6  ;;  %480 = vrot.lane.b32.xlu0 %v470_v3, %s2228_s23 }
  0xd1   : > { %545 = vrot.lane.b32.xlu1 %v1965_v42, %s1612_s28  ;;  %513 = vrot.lane.b32.xlu0 %v503_v4, %s1613_s6 }
  0xd5   : > { %578 = vrot.lane.b32.xlu1 %v371_v56, %s1614_s30  ;;  %547 = vrot.lane.b32.xlu0 %v1980_v47, %s1612_s28 }
  0xd9   : > { %580 = vrot.lane.b32.xlu0 %v570_v1, %s1614_s30  ;;  %383 = vrot.lane.b32.xlu1 %v570_v1, %s1609_s26 }
  0xdd   : > { %416 = vrot.lane.b32.xlu0 %v1984_v48, %s1611_s27  ;;  %449 = vrot.lane.b32.xlu1 %v438_v11, %s1608_s24 }
  0xe1   : > { %482 = vrot.lane.b32.xlu0 %v471_v13, %s2228_s23  ;;  %515 = vrot.lane.b32.xlu1 %v504_v14, %s1613_s6 }
  0xe5   : > { %549 = vrot.lane.b32.xlu0 %v538_v17, %s1612_s28  ;;  %582 = vrot.lane.b32.xlu1 %v571_v18, %s1614_s30 }
 0x123   : > { %v444_v19 = vpop.permute.xlu1 %443  ;;  %v378_v20 = vpop.permute.xlu0 %377 }
 0x124   : > { %390 = vst.msk [vmem:[#allocation3] sm:$0xff] %vm389_vm3, %v378_v20 }
 0x127   : > { %v477_v21 = vpop.permute.xlu1 %476  ;;  %v411_v22 = vpop.permute.xlu0 %410 }
 0x128   : > { %423 = vst.msk [vmem:[#allocation3] sm:$0xff] %vm422_vm4, %v411_v22 }
 0x129   : > { %456 = vst.msk [vmem:[#allocation3] sm:$0xff] %vm455_vm5, %v444_v19 }
 0x12a   : > { %489 = vst.msk [vmem:[#allocation3] sm:$0xff] %vm488_vm6, %v477_v21 }
 0x12b   : > { %v544_v23 = vpop.permute.xlu1 %543  ;;  %v510_v24 = vpop.permute.xlu0 %509 }
 0x12c   : > { %522 = vst.msk [vmem:[#allocation3] sm:$0xff] %vm521_vm7, %v510_v24 }
 0x12d   : > { %556 = vst.msk [vmem:[#allocation3] sm:$0xff] %vm555_vm8, %v544_v23 }
 0x12f   : > { %v380_v25 = vpop.permute.xlu1 %379  ;;  %v577_v26 = vpop.permute.xlu0 %576 }
 0x130   : > { %391 = vst.msk [vmem:[#allocation3 + $0x10] sm:$0xff] %vm389_vm3, %v380_v25 }
 0x131   : > { %589 = vst.msk [vmem:[#allocation3] sm:$0xff] %vm588_vm9, %v577_v26 }
 0x133   : > { %v413_v27 = vpop.permute.xlu1 %412  ;;  %v382_v28 = vpop.permute.xlu0 %381 }
 0x134   : > { %424 = vst.msk [vmem:[#allocation3 + $0x10] sm:$0xff] %vm422_vm4, %v413_v27 }
 0x135   : > { %392 = vst.msk [vmem:[#allocation3 + $0x20] sm:$0xff] %vm389_vm3, %v382_v28 }
 0x137   : > { %v446_v30 = vpop.permute.xlu1 %445  ;;  %v415_v31 = vpop.permute.xlu0 %414 }
 0x138   : > { %v609_v32 = vld [vmem:[#allocation3] sm:$0xff]  ;;  %457 = vst.msk [vmem:[#allocation3 + $0x10] sm:$0xff] %vm455_vm5, %v446_v30 }
 0x139   : > { %425 = vst.msk [vmem:[#allocation3 + $0x20] sm:$0xff] %vm422_vm4, %v415_v31  ;;  %741 = vmatmul.mubr.bf16.vlgmr.msra.gmra.mrb[0].mxu0 %v609_v32 }
 0x13a   : > { %1168 = vmatprep.mubr.msk.bf16.mxu0 %vm312_vm0, %v612_v29 }
 0x13b   : > { %v479_v33 = vpop.permute.xlu1 %478  ;;  %v448_v34 = vpop.permute.xlu0 %447 }
 0x13c   : > { %490 = vst.msk [vmem:[#allocation3 + $0x10] sm:$0xff] %vm488_vm6, %v479_v33 }
 0x13d   : > { %458 = vst.msk [vmem:[#allocation3 + $0x20] sm:$0xff] %vm455_vm5, %v448_v34 }
 0x13f   : > { %v512_v35 = vpop.permute.xlu1 %511  ;;  %v481_v36 = vpop.permute.xlu0 %480 }
 0x140   : > { %523 = vst.msk [vmem:[#allocation3 + $0x10] sm:$0xff] %vm521_vm7, %v512_v35 }
 0x141   : > { %491 = vst.msk [vmem:[#allocation3 + $0x20] sm:$0xff] %vm488_vm6, %v481_v36 }
 0x143   : > { %v546_v37 = vpop.permute.xlu1 %545  ;;  %v514_v38 = vpop.permute.xlu0 %513 }
 0x144   : > { %557 = vst.msk [vmem:[#allocation3 + $0x10] sm:$0xff] %vm555_vm8, %v546_v37 }
 0x145   : > { %524 = vst.msk [vmem:[#allocation3 + $0x20] sm:$0xff] %vm521_vm7, %v514_v38 }
 0x147   : > { %v579_v39 = vpop.permute.xlu1 %578  ;;  %v548_v40 = vpop.permute.xlu0 %547 }
 0x148   : > { %590 = vst.msk [vmem:[#allocation3 + $0x10] sm:$0xff] %vm588_vm9, %v579_v39 }
 0x149   : > { %558 = vst.msk [vmem:[#allocation3 + $0x20] sm:$0xff] %vm555_vm8, %v548_v40  ;;  %v824_v40 = vlaneseq }
 0x14b   : > { %v581_v41 = vpop.permute.xlu0 %580  ;;  %v384_v42 = vpop.permute.xlu1 %383 }
 0x14c   : > { %591 = vst.msk [vmem:[#allocation3 + $0x20] sm:$0xff] %vm588_vm9, %v581_v41 }
 0x14d   : > { %393 = vst.msk [vmem:[#allocation3 + $0x30] sm:$0xff] %vm389_vm3, %v384_v42 }
 0x14f   : > { %v417_v43 = vpop.permute.xlu0 %416  ;;  %v450_v44 = vpop.permute.xlu1 %449  ;;  %v611_v45 = vld [vmem:[#allocation3 + $0x10] sm:$0xff] }
 0x150   : > { %426 = vst.msk [vmem:[#allocation3 + $0x30] sm:$0xff] %vm422_vm4, %v417_v43  ;;  %749 = vmatmul.mubr.bf16.gmra.mrb[4].mxu0 %v611_v45 }
 0x151   : > { %459 = vst.msk [vmem:[#allocation3 + $0x30] sm:$0xff] %vm455_vm5, %v450_v44 }
 0x153   : > { %v483_v47 = vpop.permute.xlu0 %482  ;;  %v516_v48 = vpop.permute.xlu1 %515  ;;  %v613_v49 = vld [vmem:[#allocation3 + $0x20] sm:$0xff] }
 0x154   : > { %492 = vst.msk [vmem:[#allocation3 + $0x30] sm:$0xff] %vm488_vm6, %v483_v47  ;;  %757 = vmatmul.mubr.bf16.vlgmr.msra.gmra.mrb[0].mxu1 %v613_v49 }
 0x155   : > { %525 = vst.msk [vmem:[#allocation3 + $0x30] sm:$0xff] %vm521_vm7, %v516_v48  ;;  %1170 = vmatprep.mubr.msk.bf16.mxu1 %vm312_vm0, %v616_v46 }
 0x157   : > { %v550_v50 = vpop.permute.xlu0 %549  ;;  %v583_v51 = vpop.permute.xlu1 %582 }
 0x158   : > { %559 = vst.msk [vmem:[#allocation3 + $0x30] sm:$0xff] %vm555_vm8, %v550_v50 }
 0x159   : > { %592 = vst.msk [vmem:[#allocation3 + $0x30] sm:$0xff] %vm588_vm9, %v583_v51 }
 0x160   : > { %v615_v52 = vld [vmem:[#allocation3 + $0x30] sm:$0xff] }
 0x161   : > { %765 = vmatmul.mubr.bf16.gmra.mrb[4].mxu1 %v615_v52  ;;  %v2129_v52 = vand.u32 127, %v824_v40 }
 0x163   : > { %vm826_vm11 = vcmp.ge.s32.totalorder %v2129_v52, 32  ;;  %v1172_v52 = vld [vmem:[#allocation12] ss:$0 sm:$0xff] }
 0x20c   : > { %v742_v53 = vpop.f32.mrb[0].mxu0 }
 0x20d   : > { %v744_v54 = vpop.f32.mrb[1].mxu0  ;;  %v2075_v59 = vadd.f32 %v1157_v57, %v742_v53 }
 0x20e   : > { %v745_v55 = vpop.f32.mrb[2].mxu0 }
 0x20f   : > { %v747_v56 = vpop.f32.mrb[3].mxu0  ;;  %v2073_v58 = vadd.f32 %v1157_v57, %v745_v55  ;;  %v795_v2 = vmul.f32 %v2075_v59, %v2075_v59  ;;  %v774_v7 = vsel %vm773_vm10, %v2075_v59, 0.0 }
 0x211   : > { %v796_v60 = vmul.f32 %v2073_v58, %v2073_v58  ;;  %v775_v3 = vsel %vm773_vm10, %v2073_v58, 0.0  ;;  %v803_v13 = vsel %vm773_vm10, %v795_v2, 0.0 }
 0x212   : > { %v776_v11 = vadd.f32 %v775_v3, %v774_v7 }
 0x213   : > { %v804_v8 = vsel %vm773_vm10, %v796_v60, 0.0 }
 0x214   : > { %v805_v18 = vadd.f32 %v804_v8, %v803_v13 }
 0x223   : > { %v750_v61 = vpop.f32.mrb[4].mxu0 }
 0x224   : > { %v2079_v62 = vadd.f32 %v1157_v57, %v750_v61  ;;  %v752_v63 = vpop.f32.mrb[5].mxu0 }
 0x225   : > { %v753_v4 = vpop.f32.mrb[6].mxu0  ;;  %v1171_v63 = vsel %vm826_vm11, 1.0, %v1606_v0 }
 0x226   : > { %v797_v5 = vmul.f32 %v2079_v62, %v2079_v62  ;;  %v2087_v6 = vadd.f32 %v1157_v57, %v753_v4  ;;  %v755_v1 = vpop.f32.mrb[7].mxu0  ;;  %v777_v9 = vsel %vm773_vm10, %v2079_v62, 0.0 }
 0x227   : > { %v758_v10 = vpop.f32.mrb[0].mxu1  ;;  %v778_v19 = vadd.f32 %v777_v9, %v776_v11 }
 0x228   : > { %v760_v12 = vpop.f32.mrb[1].mxu1  ;;  %v806_v14 = vsel %vm773_vm10, %v797_v5, 0.0  ;;  %v798_v15 = vmul.f32 %v2087_v6, %v2087_v6  ;;  %v2098_v16 = vadd.f32 %v1157_v57, %v758_v10  ;;  %v779_v21 = vsel %vm773_vm10, %v2087_v6, 0.0 }
 0x229   : > { %v761_v17 = vpop.f32.mrb[2].mxu1  ;;  %v807_v22 = vadd.f32 %v806_v14, %v805_v18  ;;  %v780_v26 = vadd.f32 %v779_v21, %v778_v19  ;;  %v829_v5 = vsub.f32 1.0, %v1171_v63 }
 0x22a   : > { %v763_v20 = vpop.f32.mrb[3].mxu1  ;;  %v808_v23 = vsel %vm773_vm10, %v798_v15, 0.0  ;;  %v799_v24 = vmul.f32 %v2098_v16, %v2098_v16  ;;  %v2105_v25 = vadd.f32 %v1157_v57, %v761_v17  ;;  %v781_v27 = vsel %vm773_vm10, %v2098_v16, 0.0 }
 0x22b   : > { %v809_v28 = vadd.f32 %v808_v23, %v807_v22  ;;  %v782_v31 = vadd.f32 %v781_v27, %v780_v26 }
 0x22c   : > { %v810_v29 = vsel %vm773_vm10, %v799_v24, 0.0  ;;  %v800_v30 = vmul.f32 %v2105_v25, %v2105_v25  ;;  %v783_v32 = vsel %vm773_vm10, %v2105_v25, 0.0 }
 0x22d   : > { %v811_v33 = vadd.f32 %v810_v29, %v809_v28  ;;  %v784_v38 = vadd.f32 %v783_v32, %v782_v31 }
 0x22e   : > { %v812_v35 = vsel %vm773_vm10, %v800_v30, 0.0 }
 0x22f   : > { %v813_v45 = vadd.f32 %v812_v35, %v811_v33 }
 0x234   : > { %v766_v34 = vpop.f32.mrb[4].mxu1 }
 0x235   : > { %v2115_v36 = vadd.f32 %v1157_v57, %v766_v34  ;;  %v768_v37 = vpop.f32.mrb[5].mxu1 }
 0x236   : > { %v769_v39 = vpop.f32.mrb[6].mxu1 }
 0x237   : > { %v785_v41 = vsel %vm773_vm10, %v2115_v36, 0.0  ;;  %v801_v42 = vmul.f32 %v2115_v36, %v2115_v36  ;;  %v2121_v43 = vadd.f32 %v1157_v57, %v769_v39  ;;  %v771_v44 = vpop.f32.mrb[7].mxu1 }
 0x238   : > { %v786_v46 = vadd.f32 %v785_v41, %v784_v38 }
 0x239   : > { %v814_v47 = vsel %vm773_vm10, %v801_v42, 0.0  ;;  %v787_v48 = vsel %vm773_vm10, %v2121_v43, 0.0  ;;  %v802_v49 = vmul.f32 %v2121_v43, %v2121_v43 }
 0x23a   : > { %v815_v50 = vadd.f32 %v814_v47, %v813_v45  ;;  %v788_v51 = vadd.f32 %v787_v48, %v786_v46 }
 0x23b   : > { %v816_v53 = vsel %vm773_vm10, %v802_v49, 0.0 }
 0x23c   : > { %v789_v54 = vrot.slane %v788_v51, 4  ;;  %v817_v55 = vadd.f32 %v816_v53, %v815_v50 }
 0x23e   : > { %v790_v56 = vadd.f32 %v789_v54, %v788_v51  ;;  %v818_v57 = vrot.slane %v817_v55, 4 }
 0x240   : > { %v791_v60 = vrot.slane %v790_v56, 2  ;;  %v819_v61 = vadd.f32 %v818_v57, %v817_v55 }
 0x242   : > { %v792_v2 = vadd.f32 %v791_v60, %v790_v56  ;;  %v820_v3 = vrot.slane %v819_v61, 2  ;;  %v916_v60 = vshrl.u32 %v824_v40, 7 }
 0x244   : > { %v793_v4 = vrot.slane %v792_v2, 1  ;;  %v821_v1 = vadd.f32 %v820_v3, %v819_v61  ;;  %v917_v3 = vsub.s32 0, %v916_v60 }
 0x246   : > { %v794_v7 = vadd.f32 %v793_v4, %v792_v2  ;;  %v822_v8 = vrot.slane %v821_v1, 1 }
 0x248   : > { %v842_v9 = vmul.f32 %v1171_v63, %v794_v7  ;;  %v830_v10 = vmul.f32 %v829_v5, %v794_v7  ;;  %v823_v11 = vadd.f32 %v822_v8, %v821_v1 }
 0x24a   : > { %v843_v12 = vsel %vm831_vm12, %v842_v9, 0.0  ;;  %v832_v13 = vsel %vm831_vm12, %v830_v10, 0.0  ;;  %v853_v14 = vmul.f32 %v829_v5, %v823_v11  ;;  %v864_v17 = vmul.f32 %v1171_v63, %v823_v11  ;;  %v913_v63 = vld [vmem:[#allocation10] sm:$0x1] }
 0x24b   : > { %844 = vadd.xlane.f32.xlu1 %v843_v12  ;;  %833 = vadd.xlane.f32.xlu0 %v832_v13 }
 0x24c   : > { %v854_v15 = vsel %vm831_vm12, %v853_v14, 0.0  ;;  %v865_v0 = vsel %vm831_vm12, %v864_v17, 0.0 }
 0x24f   : > { %855 = vadd.xlane.f32.xlu0 %v854_v15 }
 0x253   : > { %866 = vadd.xlane.f32.xlu0 %v865_v0 }
 0x2d8   : > { %v845_v18 = vpop.xlane.xlu1 %844  ;;  %v834_v19 = vpop.xlane.xlu0 %833 }
 0x2d9   : > { %v846_v20 = vrot.slane %v845_v18, 4  ;;  %v835_v21 = vrot.slane %v834_v19, 4 }
 0x2db   : > { %v847_v22 = vadd.f32 %v846_v20, %v845_v18  ;;  %v836_v23 = vadd.f32 %v835_v21, %v834_v19 }
 0x2dc   : > { %v856_v24 = vpop.xlane.xlu0 %855 }
 0x2dd   : > { %v848_v26 = vrot.slane %v847_v22, 2  ;;  %v837_v27 = vrot.slane %v836_v23, 2  ;;  %v857_v28 = vrot.slane %v856_v24, 4 }
 0x2df   : > { %v849_v29 = vadd.f32 %v848_v26, %v847_v22  ;;  %v858_v30 = vadd.f32 %v857_v28, %v856_v24  ;;  %v838_v31 = vadd.f32 %v837_v27, %v836_v23 }
 0x2e0   : > { %v867_v32 = vpop.xlane.xlu0 %866 }
 0x2e1   : > { %v859_v33 = vrot.slane %v858_v30, 2  ;;  %v868_v34 = vrot.slane %v867_v32, 4  ;;  %v839_v35 = vrot.slane %v838_v31, 1  ;;  %v850_v37 = vrot.slane %v849_v29, 1 }
 0x2e3   : > { %v869_v38 = vadd.f32 %v868_v34, %v867_v32  ;;  %v840_v39 = vadd.f32 %v839_v35, %v838_v31  ;;  %v851_v41 = vadd.f32 %v850_v37, %v849_v29  ;;  %v860_v42 = vadd.f32 %v859_v33, %v858_v30 }
 0x2e5   : > { %v870_v44 = vrot.slane %v869_v38, 2  ;;  %1225 = vpush %v840_v39  ;;  %v861_v45 = vrot.slane %v860_v42, 1 }
 0x2e6   : > { %1227 = vpush %v851_v41 }
 0x2e7   : > { %v871_v46 = vadd.f32 %v870_v44, %v869_v38  ;;  %v862_v47 = vadd.f32 %v861_v45, %v860_v42 }
 0x2e9   : > { %1229 = vpush %v862_v47  ;;  %v872_v48 = vrot.slane %v871_v46, 1 }
 0x2eb   : > { %v873_v49 = vadd.f32 %v872_v48, %v871_v46 }
 0x2ed   : > { %1231 = vpush %v873_v49 }
 0x316   : > { %s1226_s16 = spop %1225 }
 0x317   : > { %s877_s12 = smul.f32 0.00048828125, %s1226_s16  ;;  %s1228_s8 = spop %1227 }
 0x318   : > { %s880_s29 = smul.f32 0.00048828125, %s1228_s8  ;;  %s1187_s8 = sshll.u32 %s1668_s22, 9 }
 0x319   : > { %v892_v50 = vstv %s877_s12  ;;  %s884_s13 = smul.f32 %s877_s12, %s877_s12  ;;  %s2168_s22 = scalar_lea.hbm %s2224_s5, %s1187_s8 }
 0x31a   : > { %v891_v51 = vstv %s880_s29  ;;  %s1230_s15 = spop %1229  ;;  %s889_s26 = smul.f32 %s880_s29, %s880_s29 }
 0x31b   : > { %v893_v53 = vsel %vm826_vm11, %v891_v51, %v892_v50  ;;  %s883_s17 = smul.f32 0.00048828125, %s1230_s15  ;;  %s1016_s15 = scalar_lea.sflag [#allocation6], %s1865_s7 }
 0x31c   : > { %v905_v1 = vsub.f32 %v2075_v59, %v893_v53  ;;  %v906_v7 = vsub.f32 %v2073_v58, %v893_v53  ;;  %v907_v8 = vsub.f32 %v2079_v62, %v893_v53  ;;  %v908_v9 = vsub.f32 %v2087_v6, %v893_v53 }
 0x31d   : > { %s885_s24 = ssub.f32 %s883_s17, %s884_s13  ;;  %v909_v40 = vsub.f32 %v2098_v16, %v893_v53  ;;  %v910_v11 = vsub.f32 %v2105_v25, %v893_v53  ;;  %v911_v12 = vsub.f32 %v2115_v36, %v893_v53  ;;  %v912_v13 = vsub.f32 %v2121_v43, %v893_v53 }
 0x31e   : > { %s1232_s27 = spop %1231 }
 0x31f   : > { %s888_s28 = smul.f32 0.00048828125, %s1232_s27  ;;  %s898_s6 = sadd.f32 1e-05, %s885_s24 }
 0x320   : > { %s1615_s24 = smov [#allocation13]  }
 0x321   : > { %s890_s30 = ssub.f32 %s888_s28, %s889_s26  ;;  %v899_v54 = vstv %s898_s6  ;;  %s1527_s26 = sshll.u32 %s1615_s24, 4  ;;  %s1528_s26 = int_to_ptr.vmem [resolvable:$false] %s1527_s26 }
 0x322   : > { %s1529_s27 = scalar_lea.vmem %s1528_s26, 1024 }
 0x323   : > { %s894_s23 = sadd.f32 1e-05, %s890_s30 }
 0x325   : > { %v895_v55 = vstv %s894_s23  ;;  %s294_s23 = scalar_lea.vmem [#allocation13], %s1151_s9 }
 0x326   : > { %1345 = vrsqrt.f32 %v895_v55  ;;  %s1029_s29 = sshll.u32 %s294_s23, 4  ;;  %s2171_s29 = int_to_ptr.vmem [resolvable:$true] %s1029_s29 }
 0x327   : > { %1347 = vrsqrt.f32 %v899_v54  ;;  %s1523_s17 = scalar_lea.vmem %s2171_s29, 512  ;;  %p1530_p12 = scmp.lt.s32.totalorder %s2171_s29, %s1528_s26 }
 0x328   : > { %p1524_p3 = scmp.ne.s32.totalorder %s2171_s29, %s1523_s17  ;;  %p1531_p1 = scmp.lt.s32.totalorder %s1529_s27, %s1523_s17 }
 0x32a   : > { %p1525_p5 = pnand %p1524_p3, %p1810_p10  ;;  %p1532_p2 = por %p1531_p1, %p1530_p12 }
 0x32c   : > { %p1526_p7 = pneg %p1525_p5 }
 0x32e   : > { %p1533_p13 = pnand %p1532_p2, %p1526_p7 }
 0x330   : > { %v1346_v56 = vpop.eup %1345 }
 0x331   : > { %v1348_v57 = vpop.eup %1347  ;;  %1233 = vpush %v1346_v56 }
 0x332   : > { %1235 = vpush %v1348_v57 }
 0x362   : > { %s1234_s16 = spop %1233 }
 0x363   : > { %v902_v61 = vstv %s1234_s16  ;;  %s1236_s12 = spop %1235 }
 0x364   : > { %v903_v2 = vstv %s1236_s12 }
 0x365   : > { %v904_v4 = vsel %vm826_vm11, %v902_v61, %v903_v2 }
 0x366   : > { %v914_v5 = vmul.f32 %v913_v63, %v904_v4 }
 0x368   : > { %v918_v10 = vrot.slane %v914_v5, %v917_v3 }
 0x36a   : > { %v919_v14 = vmul.f32 %v918_v10, %v905_v1  ;;  %v920_v15 = vmul.f32 %v918_v10, %v906_v7  ;;  %v921_v17 = vmul.f32 %v918_v10, %v907_v8  ;;  %v922_v59 = vmul.f32 %v918_v10, %v908_v9 }
 0x36b   : > { %v923_v0 = vmul.f32 %v918_v10, %v909_v40  ;;  %v924_v58 = vmul.f32 %v918_v10, %v910_v11  ;;  %v925_v18 = vmul.f32 %v918_v10, %v911_v12  ;;  %v926_v62 = vmul.f32 %v918_v10, %v912_v13 }
 0x36c   : > { %v934_v19 = vadd.f32 %v1172_v52, %v919_v14  ;;  %v935_v6 = vadd.f32 %v1172_v52, %v920_v15  ;;  %v936_v20 = vadd.f32 %v1172_v52, %v921_v17  ;;  %v937_v21 = vadd.f32 %v1172_v52, %v922_v59 }
 0x36d   : > { %v938_v16 = vadd.f32 %v1172_v52, %v923_v0  ;;  %v939_v22 = vadd.f32 %v1172_v52, %v924_v58  ;;  %v2149_v25 = vadd.f32 %v1172_v52, %v925_v18  ;;  %v2151_v24 = vadd.f32 %v1172_v52, %v926_v62 }
 0x36e   : > { %v1173_v36 = vmul.f32 -1.442695, %v934_v19  ;;  %v1174_v23 = vmul.f32 -1.442695, %v935_v6  ;;  %v1175_v43 = vmul.f32 -1.442695, %v936_v20 }
 0x36f   : > { %v1176_v26 = vmul.f32 -1.442695, %v937_v21  ;;  %v1177_v27 = vmul.f32 -1.442695, %v938_v16  ;;  %v1178_v28 = vmul.f32 -1.442695, %v939_v22 }
 0x370   : > { %1349 = vpow2.f32 %v1173_v36  ;;  %v1179_v29 = vmul.f32 -1.442695, %v2149_v25  ;;  %v1180_v30 = vmul.f32 -1.442695, %v2151_v24 }
 0x371   : > { %1351 = vpow2.f32 %v1174_v23 }
 0x372   : > { %1353 = vpow2.f32 %v1175_v43 }
 0x373   : > { %1355 = vpow2.f32 %v1176_v26 }
 0x374   : > { %1357 = vpow2.f32 %v1177_v27 }
 0x375   : > { %1359 = vpow2.f32 %v1178_v28 }
 0x376   : > { %1361 = vpow2.f32 %v1179_v29 }
 0x377   : > { %1363 = vpow2.f32 %v1180_v30 }
 0x37a   : > { %v1350_v31 = vpop.eup %1349 }
 0x37b   : > { %v1352_v32 = vpop.eup %1351  ;;  %v966_v33 = vadd.f32 1.0, %v1350_v31 }
 0x37c   : > { %v1354_v34 = vpop.eup %1353  ;;  %v967_v35 = vadd.f32 1.0, %v1352_v32 }
 0x37d   : > { %v1356_v37 = vpop.eup %1355  ;;  %v968_v38 = vadd.f32 1.0, %v1354_v34  ;;  %1365 = vrcp.f32 %v966_v33 }
 0x37e   : > { %v1358_v39 = vpop.eup %1357  ;;  %v969_v41 = vadd.f32 1.0, %v1356_v37  ;;  %1367 = vrcp.f32 %v967_v35 }
 0x37f   : > { %v1360_v42 = vpop.eup %1359  ;;  %v970_v44 = vadd.f32 1.0, %v1358_v39  ;;  %1369 = vrcp.f32 %v968_v38 }
 0x380   : > { %v1362_v45 = vpop.eup %1361  ;;  %v971_v46 = vadd.f32 1.0, %v1360_v42  ;;  %1371 = vrcp.f32 %v969_v41 }
 0x381   : > { %v1364_v47 = vpop.eup %1363  ;;  %v972_v48 = vadd.f32 1.0, %v1362_v45  ;;  %1373 = vrcp.f32 %v970_v44 }
 0x382   : > { %v973_v49 = vadd.f32 1.0, %v1364_v47  ;;  %1375 = vrcp.f32 %v971_v46 }
 0x383   : > { %1377 = vrcp.f32 %v972_v48 }
 0x384   : > { %1379 = vrcp.f32 %v973_v49 }
 0x387   : > { %v1366_v50 = vpop.eup %1365 }
 0x388   : > { %v1368_v51 = vpop.eup %1367  ;;  %v990_v53 = vmul.f32 %v1366_v50, %v934_v19 }
 0x389   : > { %v1370_v54 = vpop.eup %1369  ;;  %v991_v55 = vmul.f32 %v1368_v51, %v935_v6 }
 0x38a   : > { %v1372_v56 = vpop.eup %1371  ;;  %v992_v57 = vmul.f32 %v1370_v54, %v936_v20  ;;  %v998_v60 = vpack.c.bf16 %v990_v53, %v990_v53 }
 0x38b   : > { %v1374_v61 = vpop.eup %1373  ;;  %v993_v63 = vmul.f32 %v1372_v56, %v937_v21  ;;  %v999_v2 = vpack.c.bf16 %v991_v55, %v991_v55 }
 0x38c   : > { %v1376_v3 = vpop.eup %1375  ;;  %v994_v4 = vmul.f32 %v1374_v61, %v938_v16  ;;  %v1000_v5 = vpack.c.bf16 %v992_v57, %v992_v57  ;;  %1007 = vst.msk [vmem:[%s294_s23] sm:$0xf] %vm1006_vm13, %v998_v60 }
 0x38d   : > { %v1378_v1 = vpop.eup %1377  ;;  %v995_v7 = vmul.f32 %v1376_v3, %v939_v22  ;;  %v1001_v8 = vpack.c.bf16 %v993_v63, %v993_v63  ;;  %1008 = vst.msk [vmem:[%s294_s23 + $0x4] sm:$0xf] %vm1006_vm13, %v999_v2 }
 0x38e   : > { %v1380_v9 = vpop.eup %1379  ;;  %v996_v10 = vmul.f32 %v1378_v1, %v2149_v25  ;;  %v1002_v40 = vpack.c.bf16 %v994_v4, %v994_v4  ;;  %1009 = vst.msk [vmem:[%s294_s23 + $0x8] sm:$0xf] %vm1006_vm13, %v1000_v5 }
 0x38f   : > { %v997_v11 = vmul.f32 %v1380_v9, %v2151_v24  ;;  %v1003_v12 = vpack.c.bf16 %v995_v7, %v995_v7  ;;  %1010 = vst.msk [vmem:[%s294_s23 + $0xc] sm:$0xf] %vm1006_vm13, %v1001_v8 }
 0x390   : > { %v1004_v13 = vpack.c.bf16 %v996_v10, %v996_v10  ;;  %1011 = vst.msk [vmem:[%s294_s23 + $0x10] sm:$0xf] %vm1006_vm13, %v1002_v40 }
 0x391   : > { %v1005_v52 = vpack.c.bf16 %v997_v11, %v997_v11  ;;  %1012 = vst.msk [vmem:[%s294_s23 + $0x14] sm:$0xf] %vm1006_vm13, %v1003_v12 }
 0x392   : > { %1013 = vst.msk [vmem:[%s294_s23 + $0x18] sm:$0xf] %vm1006_vm13, %v1004_v13 }
 0x393   : > { %1014 = vst.msk [vmem:[%s294_s23 + $0x1c] sm:$0xf] %vm1006_vm13, %v1005_v52 }
 0x394   : > { %1536 = shalt.err (!%p1533_p13)
}
 0x395   : > { %s1537_s28 = scalar_lea.hbm %s2168_s22, 512  ;;  %s1541_s16 = scalar_lea.hbm %s2224_s5, 1024 }
 0x396   : > { %p1538_p9 = scmp.ne.s32.totalorder %s2168_s22, %s1537_s28  ;;  %p1542_p6 = scmp.lt.u32.totalorder %s2168_s22, %s2224_s5 }
 0x397   : > { %p1543_p4 = scmp.lt.u32.totalorder %s1541_s16, %s1537_s28  ;;  %p1545_p3 = scmp.lt.u32.totalorder %s1537_s28, %s2168_s22 }
 0x398   : > { %p1539_p0 = pnand %p1538_p9, %p1810_p10 }
 0x399   : > { %p1544_p8 = por %p1543_p4, %p1542_p6 }
 0x39a   : > { %p1540_p11 = pneg %p1539_p0 }
 0x39b   : > { %p1546_p5 = por %p1545_p3, %p1544_p8 }
 0x39d   : > { %p1547_p7 = pnand %p1546_p5, %p1540_p11 }
 0x39f   : > { %1550 = shalt.err (!%p1547_p7)
}
 0x3a0   : > { %s1616_s8 = smov 4   ;;  %s2243_s9 = smov 64  }
 0x3a1   : > { %1255 = dma.vmem_to_hbm [thread:$0]  (%p1810_p10), %s2171_s29, 512, %s2168_s22, %s1016_s15, %s2243_s9, %s2243_s9, %s1616_s8  }
 0x3a2 PF: > { %s1044_s13 = sand.u32 1, %s1585_s18   ;;  %p2244_p12 = scmp.ne.s32.totalorder %s2230_s25, 0 }
 0x3a3   : > { %p2245_p1 = scmp.ge.s32.totalorder %s1597_s21, 2  ;;  %s1045_s17 = scalar_lea.sflag [#allocation6], %s1044_s13 }
 0x3a5   : > { %p1275_p2 = pnand %p2245_p1, %p2244_p12 }
 0x3a7   : > { %1580 = dma.done.wait (!%p1275_p2), %s1045_s17, 512  }
 0x3a8   : > { %1582 = vsyncadd (!%p1275_p2), %s1045_s17, 4294966784  ;;  %p20_p13 = scmp.ge.s32.totalorder %s1800_s14, 4   ;;  %s2246_s18 = smov %s1589_s19 }
 0x3a9   : > { %s2247_s19 = smov %s1593_s20  ;;  %s2248_s20 = smov %s1816_s11 }
 0x3aa   : > { %s2249_s21 = smov %s1800_s14  ;;  %22 = sbr.rel (!%p20_p13) target bundleno = 7 (0x7), region = 104 }
 0x3b1   :  { %1050 = vsyncpa [#allocation5], 1 }
 0x3b2   :  { %1052 = vsyncpa [#allocation5 + $0x1], 1 }
 0x3b3   :  { %1053 = vsyncpa [#allocation8], 1 }
 0x3b4   :  { %1054 = vsyncpa [#allocation11], 1 }
 0x3b5   :  { %1055 = vsyncpa [#allocation6], 1 }
 0x3b6   :  { %1057 = vsyncpa [#allocation6 + $0x1], 1 }

// kernel: decoder_forward.3
= control target key start
LH: loop header
LB: loop body
LE: loop exit
PB: predicated region body
PF: predicated region fallthrough
CT: control target
= control target key end

     0   :  { %s5750_s0 = inlined_call_operand.hbm [shape: bf16[2,16,16,16], index: 0, kind: input, shape index: {}]   ;;  %s5751_s1 = inlined_call_operand.hbm [shape: bf16[2,16,16,16], index: 1, kind: input, shape index: {}]   ;;  %s5752_s2 = inlined_call_operand.hbm [shape: bf16[144,16], index: 2, kind: input, shape index: {}]   ;;  %s5753_s3 = inlined_call_operand.hbm [shape: f32[1,16], index: 3, kind: input, shape index: {}]   ;;  %s5754_s4 = inlined_call_operand.hbm [shape: f32[1,16], index: 4, kind: input, shape index: {}]   ;;  %s5755_s5 = inlined_call_operand.hbm [shape: f32[1,16], index: 5, kind: input, shape index: {}]   ;;  %s5756_s6 = inlined_call_operand.hbm [shape: bf16[16,4], index: 6, kind: input, shape index: {}]   ;;  %s5757_s7 = inlined_call_operand.hbm [shape: f32[1,4], index: 7, kind: input, shape index: {}]   ;;  %s5758_s8 = inlined_call_operand.hbm [shape: f32[2,16,16,4], index: 8, kind: output, shape index: {}]  }
   0x1   :  { %5769 = sst [smem:[#allocation29_spill]] %s5752_s2 }
   0x2   :  { %5770 = sst [smem:[#allocation30_spill]] %s5753_s3 }
   0x3   :  { %5771 = sst [smem:[#allocation31_spill]] %s5754_s4 }
   0x4   :  { %5772 = sst [smem:[#allocation32_spill]] %s5755_s5 }
   0x5   :  { %5773 = sst [smem:[#allocation33_spill]] %s5756_s6 }
   0x6   :  { %13 = vsyncpa [#allocation5], 0 }
   0x7   :  { %15 = vsyncpa [#allocation5 + $0x1], 0 }
   0x8   :  { %16 = vsyncpa [#allocation8], 0 }
   0x9   :  { %18 = vsyncpa [#allocation8 + $0x1], 0 }
   0xa   :  { %19 = vsyncpa [#allocation11], 0 }
   0xb   :  { %20 = vsyncpa [#allocation14], 0 }
   0xc   :  { %21 = vsyncpa [#allocation17], 0 }
   0xd   :  { %22 = vsyncpa [#allocation6], 0 }
   0xe   :  { %24 = vsyncpa [#allocation6 + $0x1], 0  ;;  %s4054_s27 = smov 0   ;;  %s4056_s28 = smov 0  }
   0xf   :  { %s4058_s29 = smov 0   ;;  %s4060_s30 = smov 0  }
  0x10 LB: > { %s3987_s9 = smov [#allocation9]   ;;  %s4075_s11 = sadd.s32 4294967295, %s3985_s30   ;;  %s3985_s30 = sphi %s4060_s30, %s5811_s30   ;;  %s3981_s29 = sphi %s4058_s29, %s5810_s29   ;;  %s3977_s28 = sphi %s4056_s28, %s5809_s28   ;;  %s3973_s27 = sphi %s4054_s27, %s5808_s27  }
  0x11   : > { %s251_s10 = sshll.u32 %s3987_s9, 4  ;;  %p3055_p0 = scmp.ge.s32.totalorder %s3985_s30, 1  ;;  %s4080_s10 = int_to_ptr.vmem [resolvable:$true] %s251_s10 }
  0x12   : > { %p5761_p1 = scmp.eq.s32.totalorder %s4075_s11, 0  ;;  %p239_p2 = scmp.lt.s32.totalorder %s3985_s30, 3 }
  0x13   : > { %s3988_s13 = smov [#allocation10]   ;;  %s3989_s16 = smov [#allocation13]  }
  0x14   : > { %p4082_p3 = pnand %p3055_p0, %p239_p2  ;;  %s265_s14 = sshll.u32 %s3988_s13, 4  ;;  %s4095_s14 = int_to_ptr.vmem [resolvable:$true] %s265_s14 }
  0x15   : > { %s287_s17 = sshll.u32 %s3989_s16, 4  ;;  %s5776_s2 = sld [smem:[#allocation29_spill]]  ;;  %s4097_s17 = int_to_ptr.vmem [resolvable:$true] %s287_s17 }
  0x16   : > { %s5774_s12 = scalar_select %p4082_p3, 1, 0 }
  0x17   : > { %p3434_p5 = pneg %p4082_p3 }
  0x19   : > { %p4091_p6 = pnand %p3434_p5, %p5761_p1 }
  0x1b   : > { %s3671_s20 = scalar_lea.hbm %s5776_s2, 1152  ;;  %p4107_p8 = pneg %p4091_p6 }
  0x1c   : > { %p3672_p7 = scmp.ne.s32.totalorder %s5776_s2, %s3671_s20  ;;  %p3678_p11 = scmp.lt.u32.totalorder %s3671_s20, %s5776_s2 }
  0x1e   : > { %p3674_p9 = pnand %p4107_p8, %p3672_p7 }
  0x20   : > { %p3675_p10 = pneg %p3674_p9 }
  0x22   : > { %p3680_p12 = pnand %p3678_p11, %p3675_p10 }
  0x24   : > { %3683 = shalt.err (!%p3680_p12)
}
  0x25   : > { %s3684_s26 = scalar_lea.vmem %s4080_s10, 1152  ;;  %p3692_p5 = scmp.lt.s32.totalorder %s4080_s10, %s4080_s10 }
  0x26   : > { %p3685_p13 = scmp.ne.s32.totalorder %s4080_s10, %s3684_s26  ;;  %p3693_p4 = scmp.lt.s32.totalorder %s3684_s26, %s3684_s26 }
  0x28   : > { %p3687_p0 = pnand %p3685_p13, %p4107_p8  ;;  %p3694_p7 = por %p3693_p4, %p3692_p5 }
  0x2a   : > { %p3688_p2 = pneg %p3687_p0 }
  0x2c   : > { %p3695_p9 = pnand %p3694_p7, %p3688_p2 }
  0x2e   : > { %3698 = shalt.err (!%p3695_p9)
}
  0x2f   : > { %s5759_s9 = smov 64   ;;  %s5763_s13 = smov 4  }
  0x30   : > { %3437 = dma.hbm_to_vmem [thread:$0]  (!%p4091_p6), %s5776_s2, 1152, %s4080_s10, [#allocation8], %s5759_s9, %s5759_s9, %s5763_s13  }
  0x31   : > { %s5778_s3 = sld [smem:[#allocation30_spill]] }
  0x37   : > { %s3699_s21 = scalar_lea.hbm %s5778_s3, 16 }
  0x38   : > { %p3700_p4 = scmp.ne.s32.totalorder %s5778_s3, %s3699_s21  ;;  %p3706_p12 = scmp.lt.u32.totalorder %s3699_s21, %s5778_s3 }
  0x3a   : > { %p3702_p10 = pnand %p3700_p4, %p4107_p8 }
  0x3c   : > { %p3703_p11 = pneg %p3702_p10 }
  0x3e   : > { %p3708_p13 = pnand %p3706_p12, %p3703_p11 }
  0x40   : > { %3711 = shalt.err (!%p3708_p13)
}
  0x41   : > { %s3712_s10 = scalar_lea.vmem %s4095_s14, 16  ;;  %s3719_s16 = scalar_lea.vmem %s4095_s14, 32 }
  0x42   : > { %p3713_p0 = scmp.ne.s32.totalorder %s4095_s14, %s3712_s10  ;;  %p3720_p7 = scmp.lt.s32.totalorder %s4095_s14, %s4095_s14 }
  0x43   : > { %p3721_p9 = scmp.lt.s32.totalorder %s3719_s16, %s3712_s10 }
  0x44   : > { %p3715_p2 = pnand %p3713_p0, %p4107_p8 }
  0x45   : > { %p3722_p4 = por %p3721_p9, %p3720_p7 }
  0x46   : > { %p3716_p5 = pneg %p3715_p2 }
  0x48   : > { %p3723_p10 = pnand %p3722_p4, %p3716_p5 }
  0x4a   : > { %3726 = shalt.err (!%p3723_p10)
}
  0x4b   : > { %3440 = dma.hbm_to_vmem [thread:$0]  (!%p4091_p6), %s5778_s3, 16, %s4095_s14, [#allocation11]  }
  0x4c   : > { %s5779_s5 = sld [smem:[#allocation32_spill]] }
  0x52   : > { %s3727_s22 = scalar_lea.hbm %s5779_s5, 16 }
  0x53   : > { %p3728_p11 = scmp.ne.s32.totalorder %s5779_s5, %s3727_s22  ;;  %p3734_p0 = scmp.lt.u32.totalorder %s3727_s22, %s5779_s5 }
  0x55   : > { %p3730_p12 = pnand %p3728_p11, %p4107_p8 }
  0x57   : > { %p3731_p13 = pneg %p3730_p12 }
  0x59   : > { %p3736_p2 = pnand %p3734_p0, %p3731_p13 }
  0x5b   : > { %3739 = shalt.err (!%p3736_p2)
}
  0x5c   : > { %s3740_s14 = scalar_lea.vmem %s4097_s17, 16  ;;  %s3747_s16 = scalar_lea.vmem %s4097_s17, 32 }
  0x5d   : > { %p3741_p5 = scmp.ne.s32.totalorder %s4097_s17, %s3740_s14  ;;  %p3748_p4 = scmp.lt.s32.totalorder %s4097_s17, %s4097_s17 }
  0x5e   : > { %p3749_p10 = scmp.lt.s32.totalorder %s3747_s16, %s3740_s14 }
  0x5f   : > { %p3743_p7 = pnand %p3741_p5, %p4107_p8 }
  0x60   : > { %p3750_p11 = por %p3749_p10, %p3748_p4 }
  0x61   : > { %p3744_p9 = pneg %p3743_p7 }
  0x63   : > { %p3751_p12 = pnand %p3750_p11, %p3744_p9 }
  0x65   : > { %3754 = shalt.err (!%p3751_p12)
}
  0x66   : > { %3446 = dma.hbm_to_vmem [thread:$0]  (!%p4091_p6), %s5779_s5, 16, %s4097_s17, [#allocation14]  }
  0x67   : > { %s3992_s20 = smov [#allocation12]   ;;  %s3993_s22 = smov [#allocation15]  }
  0x68   : > { %s276_s21 = sshll.u32 %s3992_s20, 4  ;;  %s297_s24 = sshll.u32 %s3993_s22, 4  ;;  %s277_s21 = int_to_ptr.vmem [resolvable:$true] %s276_s21  ;;  %s298_s24 = int_to_ptr.vmem [resolvable:$true] %s297_s24 }
  0x69   : > { %s5780_s4 = sld [smem:[#allocation31_spill]] }
  0x6f   : > { %s3755_s10 = scalar_lea.hbm %s5780_s4, 16 }
  0x70   : > { %p3756_p13 = scmp.ne.s32.totalorder %s5780_s4, %s3755_s10  ;;  %p3762_p5 = scmp.lt.u32.totalorder %s3755_s10, %s5780_s4 }
  0x72   : > { %p3758_p0 = pnand %p3756_p13, %p4107_p8 }
  0x74   : > { %p3759_p2 = pneg %p3758_p0 }
  0x76   : > { %p3764_p7 = pnand %p3762_p5, %p3759_p2 }
  0x78   : > { %3767 = shalt.err (!%p3764_p7)
}
  0x79   : > { %s3768_s17 = scalar_lea.vmem %s277_s21, 16  ;;  %s3775_s19 = scalar_lea.vmem %s277_s21, 32 }
  0x7a   : > { %p3769_p9 = scmp.ne.s32.totalorder %s277_s21, %s3768_s17  ;;  %p3776_p11 = scmp.lt.s32.totalorder %s277_s21, %s277_s21 }
  0x7b   : > { %p3777_p12 = scmp.lt.s32.totalorder %s3775_s19, %s3768_s17 }
  0x7c   : > { %p3771_p4 = pnand %p3769_p9, %p4107_p8 }
  0x7d   : > { %p3778_p1 = por %p3777_p12, %p3776_p11 }
  0x7e   : > { %p3772_p10 = pneg %p3771_p4 }
  0x80   : > { %p3779_p3 = pnand %p3778_p1, %p3772_p10 }
  0x82   : > { %3782 = shalt.err (!%p3779_p3)
}
  0x83   : > { %3443 = dma.hbm_to_vmem [thread:$0]  (!%p4091_p6), %s5780_s4, 16, %s277_s21, [#allocation11]  }
  0x84   : > { %s5781_s6 = sld [smem:[#allocation33_spill]] }
  0x8a   : > { %s3783_s26 = scalar_lea.hbm %s5781_s6, 128 }
  0x8b   : > { %p3784_p13 = scmp.ne.s32.totalorder %s5781_s6, %s3783_s26  ;;  %p3790_p3 = scmp.lt.u32.totalorder %s3783_s26, %s5781_s6 }
  0x8d   : > { %p3786_p0 = pnand %p3784_p13, %p4107_p8 }
  0x8f   : > { %p3787_p1 = pneg %p3786_p0 }
  0x91   : > { %p3792_p2 = pnand %p3790_p3, %p3787_p1 }
  0x93   : > { %3795 = shalt.err (!%p3792_p2)
}
  0x94   : > { %s3796_s17 = scalar_lea.vmem %s298_s24, 128  ;;  %p3804_p4 = scmp.lt.s32.totalorder %s298_s24, %s298_s24 }
  0x95   : > { %p3797_p5 = scmp.ne.s32.totalorder %s298_s24, %s3796_s17  ;;  %p3805_p10 = scmp.lt.s32.totalorder %s3796_s17, %s3796_s17 }
  0x97   : > { %p3799_p7 = pnand %p3797_p5, %p4107_p8  ;;  %p3806_p11 = por %p3805_p10, %p3804_p4 }
  0x99   : > { %p3800_p9 = pneg %p3799_p7 }
  0x9b   : > { %p3807_p12 = pnand %p3806_p11, %p3800_p9 }
  0x9d   : > { %3810 = shalt.err (!%p3807_p12)
}
  0x9e   : > { %s5782_s21 = smov 64   ;;  %s3994_s22 = smov [#allocation16]  }
  0x9f   : > { %3449 = dma.hbm_to_vmem [thread:$0]  (!%p4091_p6), %s5781_s6, 128, %s298_s24, [#allocation14], %s5782_s21, %s5782_s21, %s5763_s13  }
  0xa0   : > { %s311_s9 = sshll.u32 %s3994_s22, 4  ;;  %s3811_s10 = scalar_lea.hbm %s5757_s7, 16  ;;  %s312_s9 = int_to_ptr.vmem [resolvable:$true] %s311_s9 }
  0xa1   : > { %p3812_p13 = scmp.ne.s32.totalorder %s5757_s7, %s3811_s10  ;;  %p3818_p3 = scmp.lt.u32.totalorder %s3811_s10, %s5757_s7 }
  0xa3   : > { %p3814_p0 = pnand %p3812_p13, %p4107_p8 }
  0xa5   : > { %p3815_p1 = pneg %p3814_p0 }
  0xa7   : > { %p3820_p2 = pnand %p3818_p3, %p3815_p1 }
  0xa9   : > { %3823 = shalt.err (!%p3820_p2)
}
  0xaa   : > { %s3824_s24 = scalar_lea.vmem %s312_s9, 16  ;;  %s3831_s19 = scalar_lea.vmem %s312_s9, 32 }
  0xab   : > { %p3825_p5 = scmp.ne.s32.totalorder %s312_s9, %s3824_s24  ;;  %p3832_p4 = scmp.lt.s32.totalorder %s312_s9, %s312_s9 }
  0xac   : > { %p3833_p10 = scmp.lt.s32.totalorder %s3831_s19, %s3824_s24 }
  0xad   : > { %p3827_p7 = pnand %p3825_p5, %p4107_p8 }
  0xae   : > { %p3834_p11 = por %p3833_p10, %p3832_p4 }
  0xaf   : > { %p3828_p9 = pneg %p3827_p7 }
  0xb1   : > { %p3835_p12 = pnand %p3834_p11, %p3828_p9 }
  0xb3   : > { %3838 = shalt.err (!%p3835_p12)
}
  0xb4   : > { %3452 = dma.hbm_to_vmem [thread:$0]  (!%p4091_p6), %s5757_s7, 16, %s312_s9, [#allocation17]  }
  0xb5   : > { %s3054_s23 = sadd.s32 4294967294, %s3985_s30   ;;  %s4238_s15 = sadd.s32 1, %s3985_s30  }
  0xb6   : > { %s34_s25 = ssub.s32 %s3985_s30, %s4238_s15  ;;  %s37_s26 = sadd.s32 1, %s3981_s29 }
  0xb7   : > { %p35_p8 = scmp.eq.s32.totalorder %s34_s25, 0  ;;  %p44_p13 = scmp.ne.s32.totalorder %s3981_s29, %s3977_s28 }
  0xb8   : > { %p45_p0 = scmp.eq.s32.totalorder %s3985_s30, 0  ;;  %p50_p1 = scmp.ne.s32.totalorder %s3977_s28, %s3973_s27 }
  0xb9   : > { %s4249_s10 = scalar_select %p35_p8, %s3981_s29, %s37_s26  }
  0xba   : > { %p4251_p3 = por %p45_p0, %p44_p13  ;;  %p5784_p2 = scmp.eq.s32.totalorder %s4075_s11, 0 }
  0xbb   : > { %p226_p5 = scmp.eq.s32.totalorder %s4075_s11, 1  ;;  %p232_p7 = scmp.eq.s32.totalorder %s3054_s23, 1 }
  0xbc   : > { %p4257_p6 = por %p5784_p2, %p50_p1  ;;  %p3470_p9 = scmp.lt.s32.totalorder %s3985_s30, 2 }
  0xbd   : > { %s322_s16 = sand.u32 1, %s3981_s29   ;;  %p4264_p4 = por %p226_p5, %p44_p13 }
  0xbe   : > { %p4268_p10 = por %p232_p7, %p50_p1  ;;  %s3063_s24 = sshll.u32 %s322_s16, 7 }
  0xbf   : > { %s5786_s18 = scalar_select %p4264_p4, 1, 0 }
  0xc0   : > { %s5787_s17 = scalar_select %p4268_p10, 1, 0 }
  0xc1   : > { %s3162_s19 = sshll.u32 %s3985_s30, 11  ;;  %s326_s23 = scalar_lea.vmem [#allocation4], %s3063_s24 }
  0xc2   : > { %s4276_s25 = scalar_lea.hbm %s5750_s0, %s3162_s19  ;;  %s333_s26 = sshll.u32 %s326_s23, 4  ;;  %s4278_s26 = int_to_ptr.vmem [resolvable:$true] %s333_s26 }
  0xc3   : > { %p4282_p11 = pnand %p3470_p9, %p4251_p3  ;;  %s4289_s20 = scalar_lea.hbm %s5751_s1, %s3162_s19 }
  0xc4   : > { %s347_s22 = scalar_lea.vmem [#allocation7], %s3063_s24  ;;  %s4293_s5 = scalar_lea.sflag [#allocation5], %s322_s16 }
  0xc5   : > { %s4291_s4 = sshll.u32 %s347_s22, 4  ;;  %s3839_s23 = scalar_lea.hbm %s4276_s25, 2048  ;;  %s4325_s4 = int_to_ptr.vmem [resolvable:$true] %s4291_s4 }
  0xc6   : > { %p3840_p12 = scmp.ne.s32.totalorder %s4276_s25, %s3839_s23  ;;  %p3841_p8 = pneg %p4282_p11 }
  0xc7   : > { %s3844_s2 = scalar_lea.hbm %s5750_s0, 4096  ;;  %p3845_p1 = scmp.lt.u32.totalorder %s4276_s25, %s5750_s0 }
  0xc8   : > { %p3842_p13 = pnand %p3841_p8, %p3840_p12  ;;  %p3846_p3 = scmp.lt.u32.totalorder %s3844_s2, %s3839_s23 }
  0xc9   : > { %p3848_p5 = scmp.lt.u32.totalorder %s3839_s23, %s4276_s25 }
  0xca   : > { %p3843_p0 = pneg %p3842_p13  ;;  %p3847_p2 = por %p3846_p3, %p3845_p1 }
  0xcc   : > { %p3849_p7 = por %p3848_p5, %p3847_p2 }
  0xce   : > { %p3850_p9 = pnand %p3849_p7, %p3843_p0 }
  0xd0   : > { %3853 = shalt.err (!%p3850_p9)
}
  0xd1   : > { %s3854_s16 = scalar_lea.vmem %s4278_s26, 2048  ;;  %s3995_s6 = smov [#allocation4]  }
  0xd2   : > { %p3855_p12 = scmp.ne.s32.totalorder %s4278_s26, %s3854_s16  ;;  %s3859_s24 = sshll.u32 %s3995_s6, 4  ;;  %s3860_s24 = int_to_ptr.vmem [resolvable:$false] %s3859_s24 }
  0xd3   : > { %s3861_s22 = scalar_lea.vmem %s3860_s24, 4096  ;;  %p3862_p4 = scmp.lt.s32.totalorder %s4278_s26, %s3860_s24 }
  0xd4   : > { %p3857_p13 = pnand %p3855_p12, %p3841_p8  ;;  %p3863_p1 = scmp.lt.s32.totalorder %s3861_s22, %s3854_s16 }
  0xd6   : > { %p3858_p10 = pneg %p3857_p13  ;;  %p3864_p3 = por %p3863_p1, %p3862_p4 }
  0xd8   : > { %p3865_p2 = pnand %p3864_p3, %p3858_p10 }
  0xda   : > { %3868 = shalt.err (!%p3865_p2)
}
  0xdb   : > { %s5789_s23 = smov 4   ;;  %s343_s14 = sand.u32 1, %s3985_s30  }
  0xdc   : > { %3456 = dma.hbm_to_vmem [thread:$0]  (!%p4282_p11), %s4276_s25, 2048, %s4278_s26, %s4293_s5, %s5782_s21, %s5782_s21, %s5789_s23  }
  0xdd   : > { %s4328_s2 = scalar_lea.sflag [#allocation8], %s343_s14  ;;  %s3869_s3 = scalar_lea.hbm %s4289_s20, 2048 }
  0xde   : > { %p3870_p4 = scmp.ne.s32.totalorder %s4289_s20, %s3869_s3  ;;  %s3874_s6 = scalar_lea.hbm %s5751_s1, 4096 }
  0xdf   : > { %p3875_p5 = scmp.lt.u32.totalorder %s4289_s20, %s5751_s1  ;;  %p3876_p7 = scmp.lt.u32.totalorder %s3874_s6, %s3869_s3 }
  0xe0   : > { %p3872_p10 = pnand %p3870_p4, %p3841_p8  ;;  %p3878_p12 = scmp.lt.u32.totalorder %s3869_s3, %s4289_s20 }
  0xe1   : > { %p3877_p9 = por %p3876_p7, %p3875_p5 }
  0xe2   : > { %p3873_p0 = pneg %p3872_p10 }
  0xe3   : > { %p3879_p13 = por %p3878_p12, %p3877_p9 }
  0xe5   : > { %p3880_p1 = pnand %p3879_p13, %p3873_p0 }
  0xe7   : > { %3883 = shalt.err (!%p3880_p1)
}
  0xe8   : > { %s3884_s5 = scalar_lea.vmem %s4325_s4, 2048  ;;  %s3996_s25 = smov [#allocation7]  }
  0xe9   : > { %p3885_p3 = scmp.ne.s32.totalorder %s4325_s4, %s3884_s5  ;;  %s3889_s26 = sshll.u32 %s3996_s25, 4  ;;  %s3890_s26 = int_to_ptr.vmem [resolvable:$false] %s3889_s26 }
  0xea   : > { %s3891_s14 = scalar_lea.vmem %s3890_s26, 4096  ;;  %p3892_p10 = scmp.lt.s32.totalorder %s4325_s4, %s3890_s26 }
  0xeb   : > { %p3887_p2 = pnand %p3885_p3, %p3841_p8  ;;  %p3893_p5 = scmp.lt.s32.totalorder %s3891_s14, %s3884_s5 }
  0xed   : > { %p3888_p4 = pneg %p3887_p2  ;;  %p3894_p7 = por %p3893_p5, %p3892_p10 }
  0xef   : > { %p3895_p9 = pnand %p3894_p7, %p3888_p4 }
  0xf1   : > { %3898 = shalt.err (!%p3895_p9)
}
  0xf2   : > { %3459 = dma.hbm_to_vmem [thread:$0]  (!%p4282_p11), %s4289_s20, 2048, %s4325_s4, %s4328_s2, %s5782_s21, %s5782_s21, %s5789_s23  }
  0xf3   : > { %p5790_p8 = scmp.ne.s32.totalorder %s5774_s12, 0 }
  0xf5   : > { %366 = sbr.rel (%p5790_p8) target bundleno = 1517 (0x5ed), region = 52 }
  0xfc   : > { %s4360_s3 = sand.u32 1, %s3977_s28  }
  0xfd   : > { %s3070_s19 = sshll.u32 %s4360_s3, 7  ;;  %s369_s16 = scalar_lea.sflag [#allocation5], %s4360_s3 }
  0xfe   : > { %s4364_s6 = scalar_lea.vmem [#allocation4], %s3070_s19 }
  0xff   : > { %3944 = dma.done.wait (%p4257_p6), %s369_s16, 2048  }
 0x100   : > { %3946 = vsyncadd (%p4257_p6), %s369_s16, 4294965248  ;;  %s377_s4 = sand.u32 1, %s4075_s11   ;;  %s4371_s13 = scalar_lea.vmem [#allocation7], %s3070_s19 }
 0x101   : > { %s378_s12 = scalar_lea.sflag [#allocation8], %s377_s4 }
 0x102   : > { %3948 = dma.done.wait (%p4257_p6), %s378_s12, 2048  }
 0x103   : > { %3950 = vsyncadd (%p4257_p6), %s378_s12, 4294965248  ;;  %p5791_p11 = scmp.eq.s32.totalorder %s4075_s11, 0 }
 0x105   : > { %3952 = dma.done.wait (%p5791_p11), [#allocation8], 1152   ;;  %p5792_p0 = pmov %p5791_p11 }
 0x107   : > { %3954 = vsyncadd (%p5792_p0), [#allocation8], 4294966144  ;;  %p5793_p12 = pmov %p5792_p0 }
 0x108   : > { %p5794_p13 = pmov %p5792_p0 }
 0x109   : > { %3956 = dma.done.wait (%p5793_p12), [#allocation11], 32  }
 0x10a   : > { %3958 = vsyncadd (%p5794_p13), [#allocation11], 4294967264  ;;  %p5795_p1 = pmov %p5792_p0 }
 0x10b   : > { %p5796_p3 = pmov %p5792_p0 }
 0x10c   : > { %3960 = dma.done.wait (%p5795_p1), [#allocation14], 144  }
 0x10d   : > { %3962 = vsyncadd (%p5796_p3), [#allocation14], 4294967152  ;;  %p5797_p6 = pmov %p5792_p0 }
 0x10e   : > { %p5798_p2 = pmov %p5792_p0 }
 0x10f   : > { %3964 = dma.done.wait (%p5797_p6), [#allocation17], 16  }
 0x110   : > { %3966 = vsyncadd (%p5798_p2), [#allocation17], 4294967280  ;;  %vm604_vm0 = vcmask 130048   ;;  %vm607_vm1 = vcmask 123904   ;;  %v3997_v0 = vmov 0.0   ;;  %vm614_vm2 = vcmask 122880  }
 0x111   : > { %605 = vst.msk [vmem:[#allocation2] sm:$0xff] %vm604_vm0, %v3997_v0  ;;  %606 = vst.msk [vmem:[#allocation2 + $0x8] sm:$0xff] %vm604_vm0, %v3997_v0  ;;  %v3998_v1 = vmov 0   ;;  %v3166_v2 = vld [vmem:[%s4364_s6] sm:$0xff]   ;;  %v3293_v4 = vld [vmem:[%s4364_s6 + $0x8] sm:$0xff]   ;;  %s3999_s21 = smov 16  }
 0x112   : > { %608 = vst.msk [vmem:[#allocation2 + $0x10] sm:$0x3] %vm607_vm1, %v3997_v0  ;;  %612 = vst.msk [vmem:[#allocation2 + $0x1a8] sm:$0x3] %vm607_vm1, %v3997_v0  ;;  %1870 = vmatprep.subr.bf16.mxu0 %v3998_v1  ;;  %3374 = vmatprep.subr.bf16.mxu1 %v3998_v1  ;;  %v3230_v3 = vld [vmem:[%s4371_s13] sm:$0xff]   ;;  %v3167_v8 = vunpack.c.l.bf16 %v3166_v2  ;;  %v3168_v9 = vunpack.c.h.bf16 %v3166_v2  ;;  %v3171_v14 = vunpack.c.l.bf16 %v3293_v4  ;;  %v3172_v15 = vunpack.c.h.bf16 %v3293_v4  ;;  %v3308_v16 = vld [vmem:[%s4371_s13 + $0x8] sm:$0xff]  }
 0x113   : > { %610 = vst.msk [vmem:[#allocation2 + $0x198] sm:$0xff] %vm604_vm0, %v3997_v0  ;;  %611 = vst.msk [vmem:[#allocation2 + $0x1a0] sm:$0xff] %vm604_vm0, %v3997_v0  ;;  %v3231_v10 = vunpack.c.l.bf16 %v3230_v3  ;;  %v3232_v11 = vunpack.c.h.bf16 %v3230_v3  ;;  %v3294_v17 = vld [vmem:[%s4364_s6 + $0x10] sm:$0xff]   ;;  %v3235_v21 = vunpack.c.l.bf16 %v3308_v16  ;;  %v3295_v23 = vld [vmem:[%s4364_s6 + $0x18] sm:$0xff]   ;;  %v3236_v25 = vunpack.c.h.bf16 %v3308_v16  ;;  %s4000_s9 = smov 32   ;;  %s4001_s20 = smov 80  }
 0x114   : > { %631 = vst.msk [vmem:[#allocation2 + $0x29] sm:$0x1] %vm614_vm2, %v3997_v0  ;;  %615 = vst.msk [vmem:[#allocation2 + $0x18] sm:$0x1] %vm614_vm2, %v3997_v0  ;;  %v3309_v22 = vld [vmem:[%s4371_s13 + $0x10] sm:$0xff]   ;;  %v3310_v24 = vld [vmem:[%s4371_s13 + $0x18] sm:$0xff]   ;;  %v3175_v26 = vunpack.c.l.bf16 %v3294_v17  ;;  %v3176_v27 = vunpack.c.h.bf16 %v3294_v17  ;;  %v3179_v33 = vunpack.c.l.bf16 %v3295_v23  ;;  %v3180_v34 = vunpack.c.h.bf16 %v3295_v23 }
 0x115   : > { %616 = vst.msk [vmem:[#allocation2 + $0x30] sm:$0x1] %vm614_vm2, %v3997_v0  ;;  %617 = vst.msk [vmem:[#allocation2 + $0x48] sm:$0x1] %vm614_vm2, %v3997_v0  ;;  %v572_v19 = vadd.f32 %v3231_v10, %v3167_v8  ;;  %v573_v20 = vadd.f32 %v3232_v11, %v3168_v9  ;;  %v3239_v28 = vunpack.c.l.bf16 %v3309_v22  ;;  %v3296_v29 = vld [vmem:[%s4364_s6 + $0x20] sm:$0xff]   ;;  %v574_v31 = vadd.f32 %v3235_v21, %v3171_v14  ;;  %v3297_v35 = vld [vmem:[%s4364_s6 + $0x28] sm:$0xff]  }
 0x116   : > { %618 = vst.msk [vmem:[#allocation2 + $0x60] sm:$0x1] %vm614_vm2, %v3997_v0  ;;  %619 = vst.msk [vmem:[#allocation2 + $0x78] sm:$0x1] %vm614_vm2, %v3997_v0  ;;  %v3311_v30 = vld [vmem:[%s4371_s13 + $0x20] sm:$0xff]   ;;  %v3240_v32 = vunpack.c.h.bf16 %v3309_v22  ;;  %v3312_v36 = vld [vmem:[%s4371_s13 + $0x28] sm:$0xff]   ;;  %v575_v37 = vadd.f32 %v3236_v25, %v3172_v15  ;;  %v3243_v39 = vunpack.c.l.bf16 %v3310_v24  ;;  %v3244_v40 = vunpack.c.h.bf16 %v3310_v24 }
 0x117   : > { %620 = vst.msk [vmem:[#allocation2 + $0x90] sm:$0x1] %vm614_vm2, %v3997_v0  ;;  %621 = vst.msk [vmem:[#allocation2 + $0xa8] sm:$0x1] %vm614_vm2, %v3997_v0  ;;  %v576_v38 = vadd.f32 %v3239_v28, %v3175_v26  ;;  %v3298_v41 = vld [vmem:[%s4364_s6 + $0x30] sm:$0xff]   ;;  %v3183_v44 = vunpack.c.l.bf16 %v3296_v29  ;;  %v3184_v45 = vunpack.c.h.bf16 %v3296_v29  ;;  %v3247_v46 = vunpack.c.l.bf16 %v3311_v30  ;;  %v3299_v47 = vld [vmem:[%s4364_s6 + $0x38] sm:$0xff]  }
 0x118   : > { %622 = vst.msk [vmem:[#allocation2 + $0xc0] sm:$0x1] %vm614_vm2, %v3997_v0  ;;  %623 = vst.msk [vmem:[#allocation2 + $0xd8] sm:$0x1] %vm614_vm2, %v3997_v0  ;;  %v743_v5 = vld [vmem:[#allocation2 + $0x1] sm:$0xff]  ;;  %v577_v43 = vadd.f32 %v3240_v32, %v3176_v27  ;;  %v3529_v48 = vld [vmem:[#allocation9] sm:$0xff]   ;;  %v578_v49 = vadd.f32 %v3243_v39, %v3179_v33  ;;  %v579_v50 = vadd.f32 %v3244_v40, %v3180_v34  ;;  %v3248_v51 = vunpack.c.h.bf16 %v3311_v30 }
 0x119   : > { %624 = vst.msk [vmem:[#allocation2 + $0xf0] sm:$0x1] %vm614_vm2, %v3997_v0  ;;  %625 = vst.msk [vmem:[#allocation2 + $0x108] sm:$0x1] %vm614_vm2, %v3997_v0  ;;  %v744_v6 = vld [vmem:[#allocation2 + $0x9] sm:$0xff]  ;;  %v3313_v42 = vld [vmem:[%s4371_s13 + $0x30] sm:$0xff]   ;;  %v3187_v52 = vunpack.c.l.bf16 %v3297_v35  ;;  %v580_v54 = vadd.f32 %v3247_v46, %v3183_v44  ;;  %v3188_v55 = vunpack.c.h.bf16 %v3297_v35  ;;  %v3251_v56 = vunpack.c.l.bf16 %v3312_v36  ;;  %1871 = vmatpush1.bf16.msra.mxu0 %v3529_v48  ;;  %3383 = vmatpush1.bf16.msra.mxu1 %v3529_v48 }
 0x11a   : > { %626 = vst.msk [vmem:[#allocation2 + $0x120] sm:$0x1] %vm614_vm2, %v3997_v0  ;;  %627 = vst.msk [vmem:[#allocation2 + $0x138] sm:$0x1] %vm614_vm2, %v3997_v0  ;;  %v872_v7 = vld [vmem:[#allocation2 + $0x2] sm:$0xff]  ;;  %v775_v12 = vpack.c.bf16 %v744_v6, %v743_v5  ;;  %v873_v13 = vld [vmem:[#allocation2 + $0xa] sm:$0xff]  ;;  %v3252_v57 = vunpack.c.h.bf16 %v3312_v36  ;;  %v581_v59 = vadd.f32 %v3248_v51, %v3184_v45  ;;  %v3191_v60 = vunpack.c.l.bf16 %v3298_v41  ;;  %1872 = vmatprep.subr.bf16.mxu0 %v3998_v1 }
 0x11b   : > { %628 = vst.msk [vmem:[#allocation2 + $0x150] sm:$0x1] %vm614_vm2, %v3997_v0  ;;  %629 = vst.msk [vmem:[#allocation2 + $0x168] sm:$0x1] %vm614_vm2, %v3997_v0  ;;  %v904_v18 = vpack.c.bf16 %v873_v13, %v872_v7  ;;  %v3314_v53 = vld [vmem:[%s4371_s13 + $0x38] sm:$0xff]   ;;  %v3530_v58 = vld [vmem:[#allocation9 + $0x8] sm:$0xff]   ;;  %v3192_v61 = vunpack.c.h.bf16 %v3298_v41  ;;  %v3255_v62 = vunpack.c.l.bf16 %v3313_v42  ;;  %3375 = vmatprep.subr.bf16.mxu1 %v3998_v1  ;;  %v582_v4 = vadd.f32 %v3251_v56, %v3187_v52 }
 0x11c   : > { %630 = vst.msk [vmem:[#allocation2 + $0x180] sm:$0x1] %vm614_vm2, %v3997_v0  ;;  %632 = vst.msk [vmem:[#allocation2 + $0x41] sm:$0x1] %vm614_vm2, %v3997_v0  ;;  %807 = vrot.lane.b32.xlu0 %v775_v12, %s3999_s21  ;;  %v4497_v63 = vld [vmem:[%s4364_s6 + $0x40] sm:$0xff]   ;;  %v4500_v3 = vld [vmem:[#allocation2 + $0x8] sm:$0xff]  ;;  %v583_v5 = vadd.f32 %v3252_v57, %v3188_v55  ;;  %v3256_v6 = vunpack.c.h.bf16 %v3313_v42  ;;  %v3195_v7 = vunpack.c.l.bf16 %v3299_v47  ;;  %v3196_v14 = vunpack.c.h.bf16 %v3299_v47 }
 0x11d   : > { %633 = vst.msk [vmem:[#allocation2 + $0x59] sm:$0x1] %vm614_vm2, %v3997_v0  ;;  %634 = vst.msk [vmem:[#allocation2 + $0x71] sm:$0x1] %vm614_vm2, %v3997_v0  ;;  %v3315_v2 = vld [vmem:[%s4371_s13 + $0x40] sm:$0xff]   ;;  %v3531_v8 = vld [vmem:[#allocation9 + $0x10] sm:$0xff]   ;;  %v584_v13 = vadd.f32 %v3255_v62, %v3191_v60  ;;  %v3259_v15 = vunpack.c.l.bf16 %v3314_v53  ;;  %v3260_v16 = vunpack.c.h.bf16 %v3314_v53  ;;  %v3199_v22 = vunpack.c.l.bf16 %v4497_v63  ;;  %1873 = vmatpush1.bf16.msra.mxu0 %v3530_v58  ;;  %3384 = vmatpush1.bf16.msra.mxu1 %v3530_v58 }
 0x11e   : > { %635 = vst.msk [vmem:[#allocation2 + $0x89] sm:$0x1] %vm614_vm2, %v3997_v0  ;;  %636 = vst.msk [vmem:[#allocation2 + $0xa1] sm:$0x1] %vm614_vm2, %v3997_v0  ;;  %v679_v9 = vld [vmem:[#allocation2] sm:$0xff]  ;;  %v585_v21 = vadd.f32 %v3256_v6, %v3192_v61  ;;  %v3200_v23 = vunpack.c.h.bf16 %v4497_v63  ;;  %1874 = vmatprep.subr.bf16.mxu0 %v3998_v1  ;;  %v3263_v32 = vunpack.c.l.bf16 %v3315_v2  ;;  %v3264_v33 = vunpack.c.h.bf16 %v3315_v2  ;;  %3376 = vmatprep.subr.bf16.mxu1 %v3998_v1  ;;  %s4002_s23 = smov 48  }
 0x11f   : > { %637 = vst.msk [vmem:[#allocation2 + $0xb9] sm:$0x1] %vm614_vm2, %v3997_v0  ;;  %638 = vst.msk [vmem:[#allocation2 + $0xd1] sm:$0x1] %vm614_vm2, %v3997_v0  ;;  %v586_v27 = vadd.f32 %v3259_v15, %v3195_v7  ;;  %v587_v28 = vadd.f32 %v3260_v16, %v3196_v14  ;;  %v711_v34 = vpack.c.bf16 %v4500_v3, %v679_v9  ;;  %v3532_v46 = vld [vmem:[#allocation9 + $0x18] sm:$0xff]   ;;  %s4003_s2 = smov 112  }
 0x120   : > { %639 = vst.msk [vmem:[#allocation2 + $0xe9] sm:$0x1] %vm614_vm2, %v3997_v0  ;;  %640 = vst.msk [vmem:[#allocation2 + $0x101] sm:$0x1] %vm614_vm2, %v3997_v0  ;;  %936 = vrot.lane.b32.xlu0 %v904_v18, %s4000_s9  ;;  %v588_v44 = vadd.f32 %v3263_v32, %v3199_v22  ;;  %v589_v45 = vadd.f32 %v3264_v33, %v3200_v23  ;;  %s4004_s24 = smov 64   ;;  %s4005_s22 = smov 96  }
 0x121   : > { %641 = vst.msk [vmem:[#allocation2 + $0x119] sm:$0x1] %vm614_vm2, %v3997_v0  ;;  %642 = vst.msk [vmem:[#allocation2 + $0x131] sm:$0x1] %vm614_vm2, %v3997_v0  ;;  %1875 = vmatpush1.bf16.msra.mxu0 %v3531_v8  ;;  %3385 = vmatpush1.bf16.msra.mxu1 %v3531_v8  ;;  %v3533_v61 = vld [vmem:[#allocation9 + $0x20] sm:$0xff]   ;;  %v3301_v63 = vld [vmem:[%s4364_s6 + $0x48] sm:$0xff]  }
 0x122   : > { %643 = vst.msk [vmem:[#allocation2 + $0x149] sm:$0x1] %vm614_vm2, %v3997_v0  ;;  %644 = vst.msk [vmem:[#allocation2 + $0x161] sm:$0x1] %vm614_vm2, %v3997_v0  ;;  %1876 = vmatprep.subr.bf16.mxu0 %v3998_v1  ;;  %3377 = vmatprep.subr.bf16.mxu1 %v3998_v1  ;;  %v3316_v2 = vld [vmem:[%s4371_s13 + $0x48] sm:$0xff]   ;;  %v3203_v3 = vunpack.c.l.bf16 %v3301_v63  ;;  %v3317_v14 = vld [vmem:[%s4371_s13 + $0x50] sm:$0xff]  }
 0x123   : > { %645 = vst.msk [vmem:[#allocation2 + $0x179] sm:$0x1] %vm614_vm2, %v3997_v0  ;;  %646 = vst.msk [vmem:[#allocation2 + $0x191] sm:$0x1] %vm614_vm2, %v3997_v0  ;;  %v3268_v6 = vunpack.c.h.bf16 %v3316_v2  ;;  %v3534_v7 = vld [vmem:[#allocation9 + $0x28] sm:$0xff]   ;;  %v3535_v16 = vld [vmem:[#allocation9 + $0x30] sm:$0xff]  }
 0x124   : > { %647 = vst.msk [vmem:[#allocation2 + $0x19] sm:$0xff] %vm604_vm0, %v572_v19  ;;  %648 = vst.msk [vmem:[#allocation2 + $0x21] sm:$0xff] %vm604_vm0, %v573_v20  ;;  %v3318_v23 = vld [vmem:[%s4371_s13 + $0x58] sm:$0xff]   ;;  %vm855_vm3 = vcmask 261248   ;;  %vm984_vm4 = vcmask 392448   ;;  %vm1113_vm5 = vcmask 523648  }
 0x125   : > { %649 = vst.msk [vmem:[#allocation2 + $0x31] sm:$0xff] %vm604_vm0, %v574_v31  ;;  %650 = vst.msk [vmem:[#allocation2 + $0x39] sm:$0xff] %vm604_vm0, %v575_v37  ;;  %1877 = vmatpush1.bf16.msra.mxu0 %v3532_v46  ;;  %3386 = vmatpush1.bf16.msra.mxu1 %v3532_v46  ;;  %vm1242_vm6 = vcmask 654848   ;;  %vm1371_vm7 = vcmask 786048   ;;  %vm1501_vm8 = vcmask 917248   ;;  %vm1630_vm9 = vcmask 1048448  }
 0x126   : > { %651 = vst.msk [vmem:[#allocation2 + $0x49] sm:$0xff] %vm604_vm0, %v576_v38  ;;  %652 = vst.msk [vmem:[#allocation2 + $0x51] sm:$0xff] %vm604_vm0, %v577_v43  ;;  %1878 = vmatprep.subr.bf16.mxu0 %v3998_v1  ;;  %3378 = vmatprep.subr.bf16.mxu1 %v3998_v1  ;;  %vm2854_vm11 = vcmask 31744   ;;  %p5805_p10 = scmp.ne.s32.totalorder %s5786_s18, 0 }
 0x127   : > { %653 = vst.msk [vmem:[#allocation2 + $0x61] sm:$0xff] %vm604_vm0, %v578_v49  ;;  %654 = vst.msk [vmem:[#allocation2 + $0x69] sm:$0xff] %vm604_vm0, %v579_v50 }
 0x128   : > { %655 = vst.msk [vmem:[#allocation2 + $0x79] sm:$0xff] %vm604_vm0, %v580_v54  ;;  %656 = vst.msk [vmem:[#allocation2 + $0x81] sm:$0xff] %vm604_vm0, %v581_v59 }
 0x129   : > { %657 = vst.msk [vmem:[#allocation2 + $0x91] sm:$0xff] %vm604_vm0, %v582_v4  ;;  %658 = vst.msk [vmem:[#allocation2 + $0x99] sm:$0xff] %vm604_vm0, %v583_v5  ;;  %1879 = vmatpush1.bf16.msra.mxu0 %v3533_v61  ;;  %v3204_v4 = vunpack.c.h.bf16 %v3301_v63  ;;  %v3267_v5 = vunpack.c.l.bf16 %v3316_v2  ;;  %3387 = vmatpush1.bf16.msra.mxu1 %v3533_v61 }
 0x12a   : > { %659 = vst.msk [vmem:[#allocation2 + $0xa9] sm:$0xff] %vm604_vm0, %v584_v13  ;;  %660 = vst.msk [vmem:[#allocation2 + $0xb1] sm:$0xff] %vm604_vm0, %v585_v21  ;;  %1880 = vmatprep.subr.bf16.mxu0 %v3998_v1  ;;  %3379 = vmatprep.subr.bf16.mxu1 %v3998_v1 }
 0x12b   : > { %v1259_v10 = vld [vmem:[#allocation2 + $0x1a] sm:$0xff]  ;;  %v1260_v11 = vld [vmem:[#allocation2 + $0x22] sm:$0xff]  ;;  %661 = vst.msk [vmem:[#allocation2 + $0xc1] sm:$0xff] %vm604_vm0, %v586_v27  ;;  %662 = vst.msk [vmem:[#allocation2 + $0xc9] sm:$0xff] %vm604_vm0, %v587_v28  ;;  %v590_v9 = vadd.f32 %v3267_v5, %v3203_v3  ;;  %v3275_v27 = vunpack.c.l.bf16 %v3318_v23  ;;  %v3276_v28 = vunpack.c.h.bf16 %v3318_v23 }
 0x12c   : > { %v1001_v12 = vld [vmem:[#allocation2 + $0x18] sm:$0xff]  ;;  %v4505_v17 = vpack.c.bf16 %v1260_v11, %v1259_v10  ;;  %v1002_v18 = vld [vmem:[#allocation2 + $0x20] sm:$0xff]  ;;  %v1389_v26 = vld [vmem:[#allocation2 + $0x30] sm:$0xff]  ;;  %727 = vst.msk [vmem:[#allocation3] sm:$0xff] %vm604_vm0, %v711_v34  ;;  %v591_v10 = vadd.f32 %v3268_v6, %v3204_v4 }
 0x12d   : > { %v1130_v19 = vld [vmem:[#allocation2 + $0x19] sm:$0xff]  ;;  %v1131_v20 = vld [vmem:[#allocation2 + $0x21] sm:$0xff]  ;;  %v1033_v24 = vpack.c.bf16 %v1002_v18, %v1001_v12  ;;  %v1518_v25 = vld [vmem:[#allocation2 + $0x31] sm:$0xff]  ;;  %663 = vst.msk [vmem:[#allocation2 + $0xd9] sm:$0xff] %vm604_vm0, %v588_v44  ;;  %1881 = vmatpush1.bf16.msra.mxu0 %v3534_v7  ;;  %v3272_v18 = vunpack.c.h.bf16 %v3317_v14  ;;  %3388 = vmatpush1.bf16.msra.mxu1 %v3534_v7 }
 0x12e   : > { %1323 = vrot.lane.b32.xlu0 %v4505_v17, %s4001_s20  ;;  %v1519_v29 = vld [vmem:[#allocation2 + $0x39] sm:$0xff]  ;;  %v1391_v31 = vld [vmem:[#allocation2 + $0x48] sm:$0xff]  ;;  %v1162_v36 = vpack.c.bf16 %v1131_v20, %v1130_v19  ;;  %v1392_v38 = vld [vmem:[#allocation2 + $0x50] sm:$0xff]  ;;  %664 = vst.msk [vmem:[#allocation2 + $0xe1] sm:$0xff] %vm604_vm0, %v589_v45  ;;  %1882 = vmatprep.subr.bf16.mxu0 %v3998_v1 }
 0x12f   : > { %v1390_v30 = vld [vmem:[#allocation2 + $0x38] sm:$0xff]  ;;  %1065 = vrot.lane.b32.xlu1 %v1033_v24, %s4002_s23  ;;  %v4519_v35 = vpack.c.bf16 %v1519_v29, %v1518_v25  ;;  %728 = vst.msk [vmem:[#allocation3 + $0x10] sm:$0xff] %vm604_vm0, %v1033_v24  ;;  %v4524_v41 = vpack.c.bf16 %v1392_v38, %v1391_v31  ;;  %v1263_v43 = vld [vmem:[#allocation2 + $0x4a] sm:$0xff]  ;;  %v1393_v49 = vld [vmem:[#allocation2 + $0x60] sm:$0xff]  ;;  %3380 = vmatprep.subr.bf16.mxu1 %v3998_v1 }
 0x130   : > { %v1421_v37 = vpack.c.bf16 %v1390_v30, %v1389_v26  ;;  %v1261_v39 = vld [vmem:[#allocation2 + $0x32] sm:$0xff]  ;;  %v1262_v40 = vld [vmem:[#allocation2 + $0x3a] sm:$0xff]  ;;  %v1394_v50 = vld [vmem:[#allocation2 + $0x68] sm:$0xff]  ;;  %665 = vst.msk [vmem:[#allocation2 + $0xf1] sm:$0xff] %vm604_vm0, %v590_v9 }
 0x131   : > { %v4526_v42 = vpack.c.bf16 %v1262_v40, %v1261_v39  ;;  %v1264_v47 = vld [vmem:[#allocation2 + $0x52] sm:$0xff]  ;;  %730 = vst.msk [vmem:[#allocation3 + $0x30] sm:$0xff] %vm604_vm0, %v4524_v41  ;;  %v4543_v51 = vpack.c.bf16 %v1394_v50, %v1393_v49  ;;  %v1265_v52 = vld [vmem:[#allocation2 + $0x62] sm:$0xff]  ;;  %v1266_v53 = vld [vmem:[#allocation2 + $0x6a] sm:$0xff]  ;;  %1883 = vmatpush1.bf16.msra.mxu0 %v3535_v16  ;;  %3389 = vmatpush1.bf16.msra.mxu1 %v3535_v16 }
 0x132   : > { %729 = vst.msk [vmem:[#allocation3 + $0x20] sm:$0xff] %vm604_vm0, %v1421_v37  ;;  %1582 = vrot.lane.b32.xlu0 %v4519_v35, %s4003_s2  ;;  %v4533_v48 = vpack.c.bf16 %v1264_v47, %v1263_v43  ;;  %v4545_v54 = vpack.c.bf16 %v1266_v53, %v1265_v52  ;;  %v1267_v55 = vld [vmem:[#allocation2 + $0x7a] sm:$0xff]  ;;  %v1268_v56 = vld [vmem:[#allocation2 + $0x82] sm:$0xff]  ;;  %v1269_v58 = vld [vmem:[#allocation2 + $0x92] sm:$0xff]  ;;  %1884 = vmatprep.subr.bf16.mxu0 %v3998_v1 }
 0x133   : > { %1695 = vst.msk [vmem:[#allocation3 + $0x8] sm:$0xff] %vm604_vm0, %v4526_v42  ;;  %1194 = vrot.lane.b32.xlu1 %v1162_v36, %s4004_s24  ;;  %731 = vst.msk [vmem:[#allocation3 + $0x40] sm:$0xff] %vm604_vm0, %v4543_v51  ;;  %v4554_v57 = vpack.c.bf16 %v1268_v56, %v1267_v55  ;;  %v1270_v59 = vld [vmem:[#allocation2 + $0x9a] sm:$0xff]  ;;  %v1520_v62 = vld [vmem:[#allocation2 + $0x49] sm:$0xff]  ;;  %3381 = vmatprep.subr.bf16.mxu1 %v3998_v1 }
 0x134   : > { %1696 = vst.msk [vmem:[#allocation3 + $0x18] sm:$0xff] %vm604_vm0, %v4533_v48  ;;  %1697 = vst.msk [vmem:[#allocation3 + $0x28] sm:$0xff] %vm604_vm0, %v4545_v54  ;;  %v4560_v60 = vpack.c.bf16 %v1270_v59, %v1269_v58  ;;  %v1521_v8 = vld [vmem:[#allocation2 + $0x51] sm:$0xff]  ;;  %v3302_v11 = vld [vmem:[%s4364_s6 + $0x50] sm:$0xff]  }
 0x135   : > { %1698 = vst.msk [vmem:[#allocation3 + $0x38] sm:$0xff] %vm604_vm0, %v4554_v57  ;;  %v3207_v12 = vunpack.c.l.bf16 %v3302_v11  ;;  %v3208_v13 = vunpack.c.h.bf16 %v3302_v11  ;;  %v4582_v15 = vpack.c.bf16 %v1521_v8, %v1520_v62  ;;  %666 = vst.msk [vmem:[#allocation2 + $0xf9] sm:$0xff] %vm604_vm0, %v591_v10  ;;  %v3303_v20 = vld [vmem:[%s4364_s6 + $0x58] sm:$0xff]   ;;  %v3304_v24 = vld [vmem:[%s4364_s6 + $0x60] sm:$0xff]  }
 0x136   : > { %938 = vrot.lane.b32.xlu0 %v4505_v17, %s4000_s9  ;;  %1699 = vst.msk [vmem:[#allocation3 + $0x48] sm:$0xff] %vm604_vm0, %v4560_v60  ;;  %v3271_v17 = vunpack.c.l.bf16 %v3317_v14  ;;  %v3211_v21 = vunpack.c.l.bf16 %v3303_v20  ;;  %v3212_v22 = vunpack.c.h.bf16 %v3303_v20  ;;  %v3319_v29 = vld [vmem:[%s4371_s13 + $0x60] sm:$0xff]   ;;  %v3305_v30 = vld [vmem:[%s4364_s6 + $0x68] sm:$0xff]   ;;  %v3215_v32 = vunpack.c.l.bf16 %v3304_v24  ;;  %v3536_v38 = vld [vmem:[#allocation9 + $0x38] sm:$0xff]  }
 0x137   : > { %1453 = vrot.lane.b32.xlu1 %v1421_v37, %s4005_s22  ;;  %v593_v26 = vadd.f32 %v3272_v18, %v3208_v13  ;;  %v3320_v31 = vld [vmem:[%s4371_s13 + $0x68] sm:$0xff]   ;;  %v3216_v33 = vunpack.c.h.bf16 %v3304_v24  ;;  %v3279_v34 = vunpack.c.l.bf16 %v3319_v29  ;;  %v3220_v43 = vunpack.c.h.bf16 %v3305_v30  ;;  %v1405_v50 = vld [vmem:[#allocation2 + $0xf0] sm:$0xff]  ;;  %1885 = vmatpush1.bf16.msra.mxu0 %v3536_v38  ;;  %v1396_v11 = vld [vmem:[#allocation2 + $0x80] sm:$0xff] }
 0x138   : > { %v592_v25 = vadd.f32 %v3271_v17, %v3207_v12  ;;  %v594_v39 = vadd.f32 %v3275_v27, %v3211_v21  ;;  %v595_v40 = vadd.f32 %v3276_v28, %v3212_v22  ;;  %v3283_v46 = vunpack.c.l.bf16 %v3320_v31  ;;  %v3537_v52 = vld [vmem:[#allocation9 + $0x40] sm:$0xff]   ;;  %1886 = vmatprep.subr.bf16.mxu0 %v3998_v1  ;;  %3390 = vmatpush1.bf16.msra.mxu1 %v3536_v38  ;;  %v1395_v7 = vld [vmem:[#allocation2 + $0x78] sm:$0xff]  ;;  %v1525_v21 = vld [vmem:[#allocation2 + $0x81] sm:$0xff] }
 0x139   : > { %668 = vst.msk [vmem:[#allocation2 + $0x111] sm:$0xff] %vm604_vm0, %v593_v26  ;;  %v596_v44 = vadd.f32 %v3279_v34, %v3215_v32  ;;  %v3284_v47 = vunpack.c.h.bf16 %v3320_v31  ;;  %3382 = vmatprep.subr.bf16.mxu1 %v3998_v1  ;;  %v1524_v20 = vld [vmem:[#allocation2 + $0x79] sm:$0xff]  ;;  %v1526_v31 = vld [vmem:[#allocation2 + $0x91] sm:$0xff] }
 0x13a   : > { %1196 = vrot.lane.b32.xlu0 %v4519_v35, %s4004_s24  ;;  %v1712_v19 = vld [vmem:[#allocation3 + $0x8] sm:$0xff]  ;;  %667 = vst.msk [vmem:[#allocation2 + $0x109] sm:$0xff] %vm604_vm0, %v592_v25  ;;  %669 = vst.msk [vmem:[#allocation2 + $0x121] sm:$0xff] %vm604_vm0, %v594_v39  ;;  %v3306_v22 = vld [vmem:[%s4364_s6 + $0x70] sm:$0xff]  }
 0x13b   : > { %809 = vrot.lane.b32.xlu1 %v1162_v36, %s3999_s21  ;;  %3089 = vmatprep.mubr.msk.bf16.mxu0 %vm604_vm0, %v1712_v19  ;;  %v1522_v36 = vld [vmem:[#allocation2 + $0x61] sm:$0xff]  ;;  %670 = vst.msk [vmem:[#allocation2 + $0x129] sm:$0xff] %vm604_vm0, %v595_v40  ;;  %671 = vst.msk [vmem:[#allocation2 + $0x139] sm:$0xff] %vm604_vm0, %v596_v44  ;;  %v599_v55 = vadd.f32 %v3284_v47, %v3220_v43  ;;  %v1424_v19 = vpack.c.bf16 %v1396_v11, %v1395_v7  ;;  %v3223_v24 = vunpack.c.l.bf16 %v3306_v22  ;;  %v1527_v32 = vld [vmem:[#allocation2 + $0x99] sm:$0xff] }
 0x13c   : > { %v1406_v56 = vld [vmem:[#allocation2 + $0xf8] sm:$0xff]  ;;  %1887 = vmatpush1.bf16.msra.mxu0 %v3537_v52  ;;  %3391 = vmatpush1.bf16.msra.mxu1 %v3537_v52  ;;  %v3321_v23 = vld [vmem:[%s4371_s13 + $0x70] sm:$0xff]   ;;  %v3224_v25 = vunpack.c.h.bf16 %v3306_v22  ;;  %v1397_v38 = vld [vmem:[#allocation2 + $0x90] sm:$0xff] }
 0x13d   : > { %v1277_v58 = vld [vmem:[#allocation2 + $0xf2] sm:$0xff]  ;;  %v1278_v59 = vld [vmem:[#allocation2 + $0xfa] sm:$0xff]  ;;  %v4613_v61 = vpack.c.bf16 %v1406_v56, %v1405_v50  ;;  %674 = vst.msk [vmem:[#allocation2 + $0x159] sm:$0xff] %vm604_vm0, %v599_v55  ;;  %v3287_v26 = vunpack.c.l.bf16 %v3321_v23  ;;  %v3288_v27 = vunpack.c.h.bf16 %v3321_v23  ;;  %v3307_v47 = vld [vmem:[%s4364_s6 + $0x78] sm:$0xff]  }
 0x13e   : > { %1455 = vrot.lane.b32.xlu0 %v4524_v41, %s4005_s22  ;;  %v4616_v62 = vpack.c.bf16 %v1278_v59, %v1277_v58  ;;  %v1398_v39 = vld [vmem:[#allocation2 + $0x98] sm:$0xff]  ;;  %v3228_v50 = vunpack.c.h.bf16 %v3307_v47  ;;  %v3322_v52 = vld [vmem:[%s4371_s13 + $0x78] sm:$0xff]   ;;  %v694_v22 = vld [vmem:[#allocation2 + $0xb0] sm:$0xff] }
 0x13f   : > { %1067 = vrot.lane.b32.xlu1 %v1421_v37, %s4002_s23  ;;  %v1523_v37 = vld [vmem:[#allocation2 + $0x69] sm:$0xff]  ;;  %737 = vst.msk [vmem:[#allocation3 + $0xa0] sm:$0xff] %vm604_vm0, %v4613_v61  ;;  %v600_v28 = vadd.f32 %v3287_v26, %v3223_v24  ;;  %v1425_v44 = vpack.c.bf16 %v1398_v39, %v1397_v38  ;;  %v1658_v55 = vld [vmem:[#allocation2 + $0xb2] sm:$0xff]  ;;  %v3291_v56 = vunpack.c.l.bf16 %v3322_v52  ;;  %v3292_v58 = vunpack.c.h.bf16 %v3322_v52  ;;  %v1530_v23 = vld [vmem:[#allocation2 + $0xc1] sm:$0xff] }
 0x140   : > { %v4606_v49 = vpack.c.bf16 %v1523_v37, %v1522_v36  ;;  %1703 = vst.msk [vmem:[#allocation3 + $0x88] sm:$0xff] %vm604_vm0, %v4616_v62  ;;  %v1280_v63 = vld [vmem:[#allocation2 + $0x112] sm:$0xff]  ;;  %v1554_v37 = vpack.c.bf16 %v1527_v32, %v1526_v31  ;;  %v1399_v59 = vld [vmem:[#allocation2 + $0xa8] sm:$0xff]  ;;  %v695_v31 = vld [vmem:[#allocation2 + $0xc0] sm:$0xff] }
 0x141   : > { %v1409_v9 = vld [vmem:[#allocation2 + $0x120] sm:$0xff]  ;;  %675 = vst.msk [vmem:[#allocation2 + $0x169] sm:$0xff] %vm604_vm0, %v600_v28  ;;  %v1271_v11 = vld [vmem:[#allocation2 + $0xaa] sm:$0xff] }
 0x142   : > { %811 = vrot.lane.b32.xlu0 %v4519_v35, %s3999_s21  ;;  %v3280_v35 = vunpack.c.h.bf16 %v3319_v29  ;;  %v896_v2 = vld [vmem:[#allocation2 + $0x122] sm:$0xff]  ;;  %v897_v4 = vld [vmem:[#allocation2 + $0x12a] sm:$0xff]  ;;  %v1025_v5 = vld [vmem:[#allocation2 + $0x138] sm:$0xff]  ;;  %v601_v29 = vadd.f32 %v3288_v27, %v3224_v25 }
 0x143   : > { %1325 = vrot.lane.b32.xlu1 %v4526_v42, %s4001_s20  ;;  %v4633_v8 = vpack.c.bf16 %v897_v4, %v896_v2  ;;  %v1410_v10 = vld [vmem:[#allocation2 + $0x128] sm:$0xff]  ;;  %v603_v4 = vadd.f32 %v3292_v58, %v3228_v50  ;;  %v1401_v27 = vld [vmem:[#allocation2 + $0xc0] sm:$0xff]  ;;  %v1534_v58 = vld [vmem:[#allocation2 + $0xf1] sm:$0xff] }
 0x144   : > { %v597_v45 = vadd.f32 %v3280_v35, %v3216_v33  ;;  %v4641_v12 = vpack.c.bf16 %v1410_v10, %v1409_v9  ;;  %676 = vst.msk [vmem:[#allocation2 + $0x171] sm:$0xff] %vm604_vm0, %v601_v29  ;;  %v1286_v35 = vld [vmem:[#allocation2 + $0x15a] sm:$0xff]  ;;  %v1528_v9 = vld [vmem:[#allocation2 + $0xa9] sm:$0xff]  ;;  %v1529_v10 = vld [vmem:[#allocation2 + $0xb1] sm:$0xff] }
 0x145   : > { %1705 = vst.msk [vmem:[#allocation3 + $0xa8] sm:$0xff] %vm604_vm0, %v4633_v8  ;;  %678 = vst.msk [vmem:[#allocation2 + $0x189] sm:$0xff] %vm604_vm0, %v603_v4  ;;  %v1531_v24 = vld [vmem:[#allocation2 + $0xc9] sm:$0xff] }
 0x146   : > { %1069 = vrot.lane.b32.xlu0 %v4524_v41, %s4002_s23  ;;  %v3219_v41 = vunpack.c.l.bf16 %v3305_v30  ;;  %672 = vst.msk [vmem:[#allocation2 + $0x141] sm:$0xff] %vm604_vm0, %v597_v45  ;;  %739 = vst.msk [vmem:[#allocation3 + $0xc0] sm:$0xff] %vm604_vm0, %v4641_v12  ;;  %v690_v30 = vld [vmem:[#allocation2 + $0x80] sm:$0xff]  ;;  %v691_v45 = vld [vmem:[#allocation2 + $0x90] sm:$0xff]  ;;  %v1556_v26 = vpack.c.bf16 %v1531_v24, %v1530_v23 }
 0x147   : > { %1584 = vrot.lane.b32.xlu1 %v4582_v15, %s4003_s2  ;;  %v696_v32 = vld [vmem:[#allocation2 + $0xc8] sm:$0xff] }
 0x148   : > { %v598_v53 = vadd.f32 %v3283_v46, %v3219_v41  ;;  %v1415_v40 = vld [vmem:[#allocation2 + $0x168] sm:$0xff]  ;;  %v692_v46 = vld [vmem:[#allocation2 + $0x98] sm:$0xff] }
 0x149   : > { %v1276_v50 = vld [vmem:[#allocation2 + $0xe2] sm:$0xff] }
 0x14a   : > { %1327 = vrot.lane.b32.xlu0 %v4533_v48, %s4001_s20  ;;  %673 = vst.msk [vmem:[#allocation2 + $0x151] sm:$0xff] %vm604_vm0, %v598_v53  ;;  %v1657_v53 = vld [vmem:[#allocation2 + $0xaa] sm:$0xff] }
 0x14b   : > { %940 = vrot.lane.b32.xlu1 %v4526_v42, %s4000_s9  ;;  %v1279_v42 = vld [vmem:[#allocation2 + $0x10a] sm:$0xff] }
 0x14c   : > { %v4629_v3 = vpack.c.bf16 %v1280_v63, %v1279_v42  ;;  %v1416_v41 = vld [vmem:[#allocation2 + $0x170] sm:$0xff]  ;;  %v1684_v63 = vpack.c.bf16 %v1658_v55, %v1657_v53  ;;  %v697_v55 = vld [vmem:[#allocation2 + $0xd8] sm:$0xff] }
 0x14d   : > { %v1026_v6 = vld [vmem:[#allocation2 + $0x140] sm:$0xff]  ;;  %v4683_v43 = vpack.c.bf16 %v1416_v41, %v1415_v40  ;;  %v1400_v42 = vld [vmem:[#allocation2 + $0xb0] sm:$0xff] }
 0x14e   : > { %1586 = vrot.lane.b32.xlu0 %v4606_v49, %s4003_s2  ;;  %v4635_v1 = vpack.c.bf16 %v1026_v6, %v1025_v5  ;;  %1704 = vst.msk [vmem:[#allocation3 + $0x98] sm:$0xff] %vm604_vm0, %v4629_v3  ;;  %v1283_v13 = vld [vmem:[#allocation2 + $0x13a] sm:$0xff]  ;;  %v1284_v14 = vld [vmem:[#allocation2 + $0x142] sm:$0xff]  ;;  %1700 = vst.msk [vmem:[#allocation3 + $0x58] sm:$0xff] %vm604_vm0, %v1684_v63  ;;  %v1426_v5 = vpack.c.bf16 %v1400_v42, %v1399_v59 }
 0x14f   : > { %1198 = vrot.lane.b32.xlu1 %v4582_v15, %s4004_s24  ;;  %v4643_v16 = vpack.c.bf16 %v1284_v14, %v1283_v13  ;;  %742 = vst.msk [vmem:[#allocation3 + $0xf0] sm:$0xff] %vm604_vm0, %v4683_v43  ;;  %v1288_v6 = vld [vmem:[#allocation2 + $0x172] sm:$0xff]  ;;  %v1555_v13 = vpack.c.bf16 %v1529_v10, %v1528_v9  ;;  %v1290_v29 = vld [vmem:[#allocation2 + $0x18a] sm:$0xff]  ;;  %v1273_v40 = vld [vmem:[#allocation2 + $0xc2] sm:$0xff] }
 0x150   : > { %740 = vst.msk [vmem:[#allocation3 + $0xd0] sm:$0xff] %vm604_vm0, %v4635_v1  ;;  %v1272_v14 = vld [vmem:[#allocation2 + $0xb2] sm:$0xff]  ;;  %v1274_v41 = vld [vmem:[#allocation2 + $0xca] sm:$0xff] }
 0x151   : > { %v1414_v17 = vld [vmem:[#allocation2 + $0x158] sm:$0xff]  ;;  %1706 = vst.msk [vmem:[#allocation3 + $0xb8] sm:$0xff] %vm604_vm0, %v4643_v16  ;;  %v1408_v9 = vld [vmem:[#allocation2 + $0x110] sm:$0xff] }
 0x152   : > { %942 = vrot.lane.b32.xlu0 %v4533_v48, %s4000_s9  ;;  %v1413_v48 = vld [vmem:[#allocation2 + $0x150] sm:$0xff]  ;;  %v1535_v59 = vld [vmem:[#allocation2 + $0xf9] sm:$0xff] }
 0x153   : > { %1457 = vrot.lane.b32.xlu1 %v4543_v51, %s4005_s22  ;;  %v4649_v18 = vpack.c.bf16 %v1414_v17, %v1413_v48  ;;  %v1285_v34 = vld [vmem:[#allocation2 + $0x152] sm:$0xff]  ;;  %v1659_v48 = vld [vmem:[#allocation2 + $0xc2] sm:$0xff]  ;;  %v1660_v17 = vld [vmem:[#allocation2 + $0xca] sm:$0xff]  ;;  %v1558_v63 = vpack.c.bf16 %v1535_v59, %v1534_v58 }
 0x154   : > { %v4675_v36 = vpack.c.bf16 %v1286_v35, %v1285_v34  ;;  %v1662_v34 = vld [vmem:[#allocation2 + $0xe2] sm:$0xff]  ;;  %v1403_v35 = vld [vmem:[#allocation2 + $0xd8] sm:$0xff] }
 0x155   : > { %741 = vst.msk [vmem:[#allocation3 + $0xe0] sm:$0xff] %vm604_vm0, %v4649_v18 }
 0x156   : > { %1200 = vrot.lane.b32.xlu0 %v4606_v49, %s4004_s24  ;;  %1707 = vst.msk [vmem:[#allocation3 + $0xc8] sm:$0xff] %vm604_vm0, %v4675_v36 }
 0x157   : > { %813 = vrot.lane.b32.xlu1 %v4582_v15, %s3999_s21  ;;  %v1553_v15 = vpack.c.bf16 %v1525_v21, %v1524_v20  ;;  %v1297_v20 = vpack.c.bf16 %v1272_v14, %v1271_v11  ;;  %v693_v21 = vld [vmem:[#allocation2 + $0xa8] sm:$0xff] }
 0x158   : > { %v718_v25 = vpack.c.bf16 %v694_v22, %v693_v21  ;;  %v1714_v22 = vld [vmem:[#allocation3 + $0x18] sm:$0xff] }
 0x15a   : > { %1459 = vrot.lane.b32.xlu0 %v1424_v19, %s4005_s22  ;;  %734 = vst.msk [vmem:[#allocation3 + $0x70] sm:$0xff] %vm604_vm0, %v718_v25 }
 0x15b   : > { %1071 = vrot.lane.b32.xlu1 %v4543_v51, %s4002_s23  ;;  %v689_v51 = vld [vmem:[#allocation2 + $0x78] sm:$0xff] }
 0x15c   : > { %v716_v33 = vpack.c.bf16 %v690_v30, %v689_v51 }
 0x15e   : > { %815 = vrot.lane.b32.xlu0 %v4606_v49, %s3999_s21  ;;  %732 = vst.msk [vmem:[#allocation3 + $0x50] sm:$0xff] %vm604_vm0, %v716_v33  ;;  %v3227_v49 = vunpack.c.l.bf16 %v3307_v47  ;;  %v719_v33 = vpack.c.bf16 %v696_v32, %v695_v31  ;;  %v702_v32 = vld [vmem:[#allocation2 + $0x110] sm:$0xff] }
 0x15f   : > { %1329 = vrot.lane.b32.xlu1 %v4545_v54, %s4001_s20 }
 0x160   : > { %v602_v2 = vadd.f32 %v3291_v56, %v3227_v49  ;;  %735 = vst.msk [vmem:[#allocation3 + $0x80] sm:$0xff] %vm604_vm0, %v719_v33  ;;  %v1275_v49 = vld [vmem:[#allocation2 + $0xda] sm:$0xff] }
 0x161   : > { %v1299_v53 = vpack.c.bf16 %v1276_v50, %v1275_v49  ;;  %v698_v56 = vld [vmem:[#allocation2 + $0xe0] sm:$0xff]  ;;  %v1542_v49 = vld [vmem:[#allocation2 + $0x151] sm:$0xff] }
 0x162   : > { %1073 = vrot.lane.b32.xlu0 %v1424_v19, %s4002_s23  ;;  %677 = vst.msk [vmem:[#allocation2 + $0x181] sm:$0xff] %vm604_vm0, %v602_v2  ;;  %v1685_v19 = vpack.c.bf16 %v1660_v17, %v1659_v48  ;;  %v720_v42 = vpack.c.bf16 %v698_v56, %v697_v55  ;;  %v1543_v50 = vld [vmem:[#allocation2 + $0x159] sm:$0xff] }
 0x163   : > { %1588 = vrot.lane.b32.xlu1 %v1553_v15, %s4003_s2  ;;  %v1562_v56 = vpack.c.bf16 %v1543_v50, %v1542_v49 }
 0x164   : > { %1701 = vst.msk [vmem:[#allocation3 + $0x68] sm:$0xff] %vm604_vm0, %v1685_v19  ;;  %736 = vst.msk [vmem:[#allocation3 + $0x90] sm:$0xff] %vm604_vm0, %v720_v42  ;;  %v1536_v19 = vld [vmem:[#allocation2 + $0x109] sm:$0xff] }
 0x166   : > { %1331 = vrot.lane.b32.xlu0 %v4554_v57, %s4001_s20 }
 0x167   : > { %944 = vrot.lane.b32.xlu1 %v4545_v54, %s4000_s9  ;;  %v717_v54 = vpack.c.bf16 %v692_v46, %v691_v45  ;;  %v1532_v45 = vld [vmem:[#allocation2 + $0xd9] sm:$0xff]  ;;  %v1533_v46 = vld [vmem:[#allocation2 + $0xe1] sm:$0xff] }
 0x168   : > { %v1557_v47 = vpack.c.bf16 %v1533_v46, %v1532_v45 }
 0x169   : > { %733 = vst.msk [vmem:[#allocation3 + $0x60] sm:$0xff] %vm604_vm0, %v717_v54  ;;  %v1289_v28 = vld [vmem:[#allocation2 + $0x182] sm:$0xff] }
 0x16a   : > { %1590 = vrot.lane.b32.xlu0 %v1554_v37, %s4003_s2  ;;  %v4716_v51 = vpack.c.bf16 %v1290_v29, %v1289_v28 }
 0x16b   : > { %1202 = vrot.lane.b32.xlu1 %v1553_v15, %s4004_s24 }
 0x16c   : > { %1709 = vst.msk [vmem:[#allocation3 + $0xe8] sm:$0xff] %vm604_vm0, %v4716_v51 }
 0x16e   : > { %946 = vrot.lane.b32.xlu0 %v4554_v57, %s4000_s9  ;;  %v1287_v57 = vld [vmem:[#allocation2 + $0x16a] sm:$0xff] }
 0x16f   : > { %1461 = vrot.lane.b32.xlu1 %v1425_v44, %s4005_s22  ;;  %v4701_v7 = vpack.c.bf16 %v1288_v6, %v1287_v57  ;;  %v1407_v6 = vld [vmem:[#allocation2 + $0x108] sm:$0xff] }
 0x171   : > { %1708 = vst.msk [vmem:[#allocation3 + $0xd8] sm:$0xff] %vm604_vm0, %v4701_v7 }
 0x172   : > { %1204 = vrot.lane.b32.xlu0 %v1554_v37, %s4004_s24 }
 0x173   : > { %817 = vrot.lane.b32.xlu1 %v1553_v15, %s3999_s21  ;;  %v1402_v15 = vld [vmem:[#allocation2 + $0xc8] sm:$0xff] }
 0x174   : > { %v1427_v30 = vpack.c.bf16 %v1402_v15, %v1401_v27 }
 0x176   : > { %1463 = vrot.lane.b32.xlu0 %v1426_v5, %s4005_s22 }
 0x177   : > { %1075 = vrot.lane.b32.xlu1 %v1425_v44, %s4002_s23  ;;  %v1298_v44 = vpack.c.bf16 %v1274_v41, %v1273_v40 }
 0x17a   : > { %819 = vrot.lane.b32.xlu0 %v1554_v37, %s3999_s21  ;;  %v1404_v37 = vld [vmem:[#allocation2 + $0xe0] sm:$0xff] }
 0x17b   : > { %1333 = vrot.lane.b32.xlu1 %v4560_v60, %s4001_s20  ;;  %v1428_v39 = vpack.c.bf16 %v1404_v37, %v1403_v35  ;;  %v1155_v35 = vld [vmem:[#allocation2 + $0x141] sm:$0xff]  ;;  %v1716_v37 = vld [vmem:[#allocation3 + $0x28] sm:$0xff] }
 0x17e   : > { %1077 = vrot.lane.b32.xlu0 %v1426_v5, %s4002_s23 }
 0x17f   : > { %1592 = vrot.lane.b32.xlu1 %v1555_v13, %s4003_s2 }
 0x182   : > { %1335 = vrot.lane.b32.xlu0 %v1297_v20, %s4001_s20 }
 0x183   : > { %948 = vrot.lane.b32.xlu1 %v4560_v60, %s4000_s9  ;;  %v1661_v60 = vld [vmem:[#allocation2 + $0xda] sm:$0xff] }
 0x184   : > { %v1686_v38 = vpack.c.bf16 %v1662_v34, %v1661_v60  ;;  %v1154_v34 = vld [vmem:[#allocation2 + $0x139] sm:$0xff] }
 0x185   : > { %v4786_v40 = vpack.c.bf16 %v1155_v35, %v1154_v34 }
 0x186   : > { %1594 = vrot.lane.b32.xlu0 %v1556_v26, %s4003_s2  ;;  %1702 = vst.msk [vmem:[#allocation3 + $0x78] sm:$0xff] %vm604_vm0, %v1686_v38 }
 0x187   : > { %1206 = vrot.lane.b32.xlu1 %v1555_v13, %s4004_s24 }
 0x18a   : > { %950 = vrot.lane.b32.xlu0 %v1297_v20, %s4000_s9  ;;  %v1537_v20 = vld [vmem:[#allocation2 + $0x111] sm:$0xff] }
 0x18b   : > { %1465 = vrot.lane.b32.xlu1 %v1427_v30, %s4005_s22  ;;  %v1559_v24 = vpack.c.bf16 %v1537_v20, %v1536_v19  ;;  %v1546_v20 = vld [vmem:[#allocation2 + $0x181] sm:$0xff] }
 0x18e   : > { %1208 = vrot.lane.b32.xlu0 %v1556_v26, %s4004_s24  ;;  %v808_v54 = vpop.permute.xlu0 %807 }
 0x18f   : > { %821 = vrot.lane.b32.xlu1 %v1555_v13, %s3999_s21  ;;  %856 = vst.msk [vmem:[#allocation3] sm:$0xff] %vm855_vm3, %v808_v54  ;;  %v1430_v13 = vpack.c.bf16 %v1408_v9, %v1407_v6  ;;  %v1736_v54 = vld [vmem:[#allocation3 + $0xc8] sm:$0xff] }
 0x190   : > { %3101 = vmatprep.mubr.msk.bf16.mxu1 %vm604_vm0, %v1736_v54 }
 0x192   : > { %1467 = vrot.lane.b32.xlu0 %v1428_v39, %s4005_s22  ;;  %v937_v52 = vpop.permute.xlu0 %936 }
 0x193   : > { %1079 = vrot.lane.b32.xlu1 %v1427_v30, %s4002_s23  ;;  %985 = vst.msk [vmem:[#allocation3] sm:$0xff] %vm984_vm4, %v937_v52 }
 0x196   : > { %823 = vrot.lane.b32.xlu0 %v1556_v26, %s3999_s21  ;;  %v767_v26 = vld [vmem:[#allocation2 + $0x121] sm:$0xff] }
 0x197   : > { %1337 = vrot.lane.b32.xlu1 %v1298_v44, %s4001_s20 }
 0x19a   : > { %1081 = vrot.lane.b32.xlu0 %v1428_v39, %s4002_s23 }
 0x19b   : > { %1596 = vrot.lane.b32.xlu1 %v1557_v47, %s4003_s2 }
 0x19e   : > { %1339 = vrot.lane.b32.xlu0 %v1299_v53, %s4001_s20 }
 0x19f   : > { %952 = vrot.lane.b32.xlu1 %v1298_v44, %s4000_s9 }
 0x1a0   : > { %v1324_v2 = vpop.permute.xlu0 %1323 }
 0x1a1   : > { %v1066_v4 = vpop.permute.xlu1 %1065 }
 0x1a2   : > { %1114 = vst.msk [vmem:[#allocation3] sm:$0xff] %vm1113_vm5, %v1066_v4  ;;  %1598 = vrot.lane.b32.xlu0 %v1558_v63, %s4003_s2 }
 0x1a3   : > { %1210 = vrot.lane.b32.xlu1 %v1557_v47, %s4004_s24 }
 0x1a4   : > { %v1583_v5 = vpop.permute.xlu0 %1582 }
 0x1a5   : > { %v1195_v57 = vpop.permute.xlu1 %1194 }
 0x1a6   : > { %1243 = vst.msk [vmem:[#allocation3] sm:$0xff] %vm1242_vm6, %v1195_v57  ;;  %954 = vrot.lane.b32.xlu0 %v1299_v53, %s4000_s9  ;;  %v1718_v53 = vld [vmem:[#allocation3 + $0x38] sm:$0xff] }
 0x1a7   : > { %1469 = vrot.lane.b32.xlu1 %v4613_v61, %s4005_s22  ;;  %1372 = vst.msk [vmem:[#allocation3] sm:$0xff] %vm1371_vm7, %v1324_v2 }
 0x1a8   : > { %v939_v10 = vpop.permute.xlu0 %938 }
 0x1a9   : > { %v1454_v11 = vpop.permute.xlu1 %1453 }
 0x1aa   : > { %1502 = vst.msk [vmem:[#allocation3] sm:$0xff] %vm1501_vm8, %v1454_v11  ;;  %1212 = vrot.lane.b32.xlu0 %v1558_v63, %s4004_s24  ;;  %v1545_v11 = vld [vmem:[#allocation2 + $0x171] sm:$0xff] }
 0x1ab   : > { %1631 = vst.msk [vmem:[#allocation3] sm:$0xff] %vm1630_vm9, %v1583_v5  ;;  %825 = vrot.lane.b32.xlu1 %v1557_v47, %s3999_s21  ;;  %v1720_v5 = vld [vmem:[#allocation3 + $0x48] sm:$0xff] }
 0x1ac   : > { %v1197_v14 = vpop.permute.xlu0 %1196 }
 0x1ad   : > { %v810_v48 = vpop.permute.xlu1 %809 }
 0x1ae   : > { %857 = vst.msk [vmem:[#allocation3 + $0x10] sm:$0xff] %vm855_vm3, %v810_v48  ;;  %1471 = vrot.lane.b32.xlu0 %v1430_v13, %s4005_s22 }
 0x1af   : > { %986 = vst.msk [vmem:[#allocation3 + $0x10] sm:$0xff] %vm984_vm4, %v939_v10  ;;  %1083 = vrot.lane.b32.xlu1 %v4613_v61, %s4002_s23  ;;  %v768_v61 = vld [vmem:[#allocation2 + $0x129] sm:$0xff] }
 0x1b0   : > { %v1456_v17 = vpop.permute.xlu0 %1455  ;;  %v4768_v15 = vpack.c.bf16 %v768_v61, %v767_v26  ;;  %v1544_v10 = vld [vmem:[#allocation2 + $0x169] sm:$0xff]  ;;  %v1417_v26 = vld [vmem:[#allocation2 + $0x180] sm:$0xff] }
 0x1b1   : > { %v1068_v21 = vpop.permute.xlu1 %1067  ;;  %v1563_v48 = vpack.c.bf16 %v1545_v11, %v1544_v10  ;;  %v1732_v11 = vld [vmem:[#allocation3 + $0xa8] sm:$0xff] }
 0x1b2   : > { %1115 = vst.msk [vmem:[#allocation3 + $0x10] sm:$0xff] %vm1113_vm5, %v1068_v21  ;;  %v1711_v23 = vld [vmem:[#allocation3] sm:$0xff]  ;;  %827 = vrot.lane.b32.xlu0 %v1558_v63, %s3999_s21 }
 0x1b3   : > { %1244 = vst.msk [vmem:[#allocation3 + $0x10] sm:$0xff] %vm1242_vm6, %v1197_v14  ;;  %1903 = vmatmul.mubr.bf16.vlgmr.msra.gmra.mrb[0].mxu0 %v1711_v23  ;;  %1341 = vrot.lane.b32.xlu1 %v4616_v62, %s4001_s20  ;;  %v1547_v21 = vld [vmem:[#allocation2 + $0x189] sm:$0xff] }
 0x1b4   : > { %v812_v25 = vpop.permute.xlu0 %811  ;;  %3090 = vmatprep.mubr.msk.bf16.mxu0 %vm604_vm0, %v1714_v22 }
 0x1b5   : > { %858 = vst.msk [vmem:[#allocation3 + $0x20] sm:$0xff] %vm855_vm3, %v812_v25  ;;  %v1326_v27 = vpop.permute.xlu1 %1325 }
 0x1b6   : > { %1373 = vst.msk [vmem:[#allocation3 + $0x10] sm:$0xff] %vm1371_vm7, %v1326_v27  ;;  %956 = vrot.lane.b32.xlu0 %v4616_v62, %s4000_s9  ;;  %v701_v62 = vld [vmem:[#allocation2 + $0x108] sm:$0xff] }
 0x1b7   : > { %1503 = vst.msk [vmem:[#allocation3 + $0x10] sm:$0xff] %vm1501_vm8, %v1456_v17  ;;  %1600 = vrot.lane.b32.xlu1 %v1559_v24, %s4003_s2  ;;  %v722_v33 = vpack.c.bf16 %v702_v32, %v701_v62  ;;  %v1419_v62 = vld [vmem:[#allocation2 + $0x198] sm:$0xff]  ;;  %v1420_v32 = vld [vmem:[#allocation2 + $0x1a0] sm:$0xff] }
 0x1b8   : > { %v1070_v28 = vpop.permute.xlu0 %1069 }
 0x1b9   : > { %v1585_v29 = vpop.permute.xlu1 %1584  ;;  %738 = vst.msk [vmem:[#allocation3 + $0xb0] sm:$0xff] %vm604_vm0, %v722_v33 }
 0x1ba   : > { %1632 = vst.msk [vmem:[#allocation3 + $0x10] sm:$0xff] %vm1630_vm9, %v1585_v29  ;;  %1085 = vrot.lane.b32.xlu0 %v1430_v13, %s4002_s23  ;;  %v1722_v13 = vld [vmem:[#allocation3 + $0x58] sm:$0xff] }
 0x1bb   : > { %831 = vrot.lane.b32.xlu1 %v4768_v15, %s3999_s21 }
 0x1bc   : > { %v1328_v30 = vpop.permute.xlu0 %1327 }
 0x1bd   : > { %v941_v31 = vpop.permute.xlu1 %940 }
 0x1be   : > { %987 = vst.msk [vmem:[#allocation3 + $0x20] sm:$0xff] %vm984_vm4, %v941_v31  ;;  %1214 = vrot.lane.b32.xlu0 %v1559_v24, %s4004_s24  ;;  %v1678_v31 = vld [vmem:[#allocation2 + $0x1a2] sm:$0xff] }
 0x1bf   : > { %1116 = vst.msk [vmem:[#allocation3 + $0x20] sm:$0xff] %vm1113_vm5, %v1070_v28  ;;  %960 = vrot.lane.b32.xlu1 %v4633_v8, %s4000_s9  ;;  %v1724_v28 = vld [vmem:[#allocation3 + $0x68] sm:$0xff] }
 0x1c0   : > { %v1587_v60 = vpop.permute.xlu0 %1586 }
 0x1c1   : > { %v1199_v38 = vpop.permute.xlu1 %1198  ;;  %v1713_v39 = vld [vmem:[#allocation3 + $0x10] sm:$0xff] }
 0x1c2   : > { %1245 = vst.msk [vmem:[#allocation3 + $0x20] sm:$0xff] %vm1242_vm6, %v1199_v38  ;;  %1911 = vmatmul.mubr.bf16.gmra.mrb[4].mxu0 %v1713_v39  ;;  %1343 = vrot.lane.b32.xlu0 %v4629_v3, %s4001_s20  ;;  %v1548_v39 = vld [vmem:[#allocation2 + $0x199] sm:$0xff] }
 0x1c3   : > { %1374 = vst.msk [vmem:[#allocation3 + $0x20] sm:$0xff] %vm1371_vm7, %v1328_v30  ;;  %1089 = vrot.lane.b32.xlu1 %v4635_v1, %s4002_s23  ;;  %3091 = vmatprep.mubr.msk.bf16.mxu0 %vm604_vm0, %v1716_v37 }
 0x1c4   : > { %v943_v41 = vpop.permute.xlu0 %942 }
 0x1c5   : > { %v1458_v44 = vpop.permute.xlu1 %1457 }
 0x1c6   : > { %1504 = vst.msk [vmem:[#allocation3 + $0x20] sm:$0xff] %vm1501_vm8, %v1458_v44  ;;  %1473 = vrot.lane.b32.xlu0 %v4641_v12, %s4005_s22  ;;  %v1726_v44 = vld [vmem:[#allocation3 + $0x78] sm:$0xff] }
 0x1c7   : > { %1633 = vst.msk [vmem:[#allocation3 + $0x20] sm:$0xff] %vm1630_vm9, %v1587_v60  ;;  %1218 = vrot.lane.b32.xlu1 %v4786_v40, %s4004_s24 }
 0x1c8   : > { %v1201_v45 = vpop.permute.xlu0 %1200 }
 0x1c9   : > { %v814_v46 = vpop.permute.xlu1 %813 }
 0x1ca   : > { %859 = vst.msk [vmem:[#allocation3 + $0x30] sm:$0xff] %vm855_vm3, %v814_v46  ;;  %1602 = vrot.lane.b32.xlu0 %v4768_v15, %s4003_s2 }
 0x1cb   : > { %988 = vst.msk [vmem:[#allocation3 + $0x30] sm:$0xff] %vm984_vm4, %v943_v41  ;;  %1347 = vrot.lane.b32.xlu1 %v4643_v16, %s4001_s20 }
 0x1cc   : > { %v1460_v47 = vpop.permute.xlu0 %1459 }
 0x1cd   : > { %v1072_v52 = vpop.permute.xlu1 %1071 }
 0x1ce   : > { %1117 = vst.msk [vmem:[#allocation3 + $0x30] sm:$0xff] %vm1113_vm5, %v1072_v52  ;;  %829 = vrot.lane.b32.xlu0 %v1559_v24, %s3999_s21  ;;  %v1715_v55 = vld [vmem:[#allocation3 + $0x20] sm:$0xff]  ;;  %v1564_v24 = vpack.c.bf16 %v1547_v21, %v1546_v20 }
 0x1cf   : > { %1246 = vst.msk [vmem:[#allocation3 + $0x30] sm:$0xff] %vm1242_vm6, %v1201_v45  ;;  %1477 = vrot.lane.b32.xlu1 %v4649_v18, %s4005_s22  ;;  %1919 = vmatmul.mubr.bf16.gmra.mrb[8].mxu0 %v1715_v55  ;;  %v1728_v55 = vld [vmem:[#allocation3 + $0x88] sm:$0xff] }
 0x1d0   : > { %v816_v58 = vpop.permute.xlu0 %815  ;;  %3092 = vmatprep.mubr.msk.bf16.mxu0 %vm604_vm0, %v1718_v53 }
 0x1d1   : > { %860 = vst.msk [vmem:[#allocation3 + $0x40] sm:$0xff] %vm855_vm3, %v816_v58  ;;  %v1330_v59 = vpop.permute.xlu1 %1329 }
 0x1d2   : > { %1375 = vst.msk [vmem:[#allocation3 + $0x30] sm:$0xff] %vm1371_vm7, %v1330_v59  ;;  %958 = vrot.lane.b32.xlu0 %v4629_v3, %s4000_s9 }
 0x1d3   : > { %1505 = vst.msk [vmem:[#allocation3 + $0x30] sm:$0xff] %vm1501_vm8, %v1460_v47  ;;  %1606 = vrot.lane.b32.xlu1 %v1562_v56, %s4003_s2 }
 0x1d4   : > { %v1074_v42 = vpop.permute.xlu0 %1073 }
 0x1d5   : > { %v1589_v63 = vpop.permute.xlu1 %1588 }
 0x1d6   : > { %1634 = vst.msk [vmem:[#allocation3 + $0x30] sm:$0xff] %vm1630_vm9, %v1589_v63  ;;  %1087 = vrot.lane.b32.xlu0 %v4641_v12, %s4002_s23 }
 0x1d7   : > { %833 = vrot.lane.b32.xlu1 %v4786_v40, %s3999_s21 }
 0x1d8   : > { %v1332_v2 = vpop.permute.xlu0 %1331 }
 0x1d9   : > { %v945_v4 = vpop.permute.xlu1 %944 }
 0x1da   : > { %989 = vst.msk [vmem:[#allocation3 + $0x40] sm:$0xff] %vm984_vm4, %v945_v4  ;;  %1216 = vrot.lane.b32.xlu0 %v4768_v15, %s4004_s24 }
 0x1db   : > { %1118 = vst.msk [vmem:[#allocation3 + $0x40] sm:$0xff] %vm1113_vm5, %v1074_v42  ;;  %962 = vrot.lane.b32.xlu1 %v4643_v16, %s4000_s9 }
 0x1dc   : > { %v1591_v3 = vpop.permute.xlu0 %1590 }
 0x1dd   : > { %v1203_v57 = vpop.permute.xlu1 %1202  ;;  %v1717_v6 = vld [vmem:[#allocation3 + $0x30] sm:$0xff] }
 0x1de   : > { %1247 = vst.msk [vmem:[#allocation3 + $0x40] sm:$0xff] %vm1242_vm6, %v1203_v57  ;;  %1927 = vmatmul.mubr.bf16.gmra.mrb[12].mxu0 %v1717_v6  ;;  %1345 = vrot.lane.b32.xlu0 %v4633_v8, %s4001_s20 }
 0x1df   : > { %1376 = vst.msk [vmem:[#allocation3 + $0x40] sm:$0xff] %vm1371_vm7, %v1332_v2  ;;  %1091 = vrot.lane.b32.xlu1 %v4649_v18, %s4002_s23  ;;  %3093 = vmatprep.mubr.msk.bf16.mxu0 %vm604_vm0, %v1720_v5  ;;  %v1730_v5 = vld [vmem:[#allocation3 + $0x98] sm:$0xff] }
 0x1e0   : > { %v947_v12 = vpop.permute.xlu0 %946 }
 0x1e1   : > { %v1462_v9 = vpop.permute.xlu1 %1461 }
 0x1e2   : > { %1506 = vst.msk [vmem:[#allocation3 + $0x40] sm:$0xff] %vm1501_vm8, %v1462_v9  ;;  %1475 = vrot.lane.b32.xlu0 %v4635_v1, %s4005_s22 }
 0x1e3   : > { %1635 = vst.msk [vmem:[#allocation3 + $0x40] sm:$0xff] %vm1630_vm9, %v1591_v3  ;;  %1220 = vrot.lane.b32.xlu1 %v1562_v56, %s4004_s24 }
 0x1e4   : > { %v1205_v16 = vpop.permute.xlu0 %1204 }
 0x1e5   : > { %v818_v8 = vpop.permute.xlu1 %817 }
 0x1e6   : > { %861 = vst.msk [vmem:[#allocation3 + $0x50] sm:$0xff] %vm855_vm3, %v818_v8  ;;  %1604 = vrot.lane.b32.xlu0 %v4786_v40, %s4003_s2  ;;  %v1549_v40 = vld [vmem:[#allocation2 + $0x1a1] sm:$0xff] }
 0x1e7   : > { %990 = vst.msk [vmem:[#allocation3 + $0x50] sm:$0xff] %vm984_vm4, %v947_v12  ;;  %1349 = vrot.lane.b32.xlu1 %v4675_v36, %s4001_s20  ;;  %v1565_v46 = vpack.c.bf16 %v1549_v40, %v1548_v39 }
 0x1e8   : > { %v1464_v18 = vpop.permute.xlu0 %1463 }
 0x1e9   : > { %v1076_v1 = vpop.permute.xlu1 %1075 }
 0x1ea   : > { %1119 = vst.msk [vmem:[#allocation3 + $0x50] sm:$0xff] %vm1113_vm5, %v1076_v1  ;;  %v1719_v14 = vld [vmem:[#allocation3 + $0x40] sm:$0xff]  ;;  %835 = vrot.lane.b32.xlu0 %v1562_v56, %s3999_s21 }
 0x1eb   : > { %1248 = vst.msk [vmem:[#allocation3 + $0x50] sm:$0xff] %vm1242_vm6, %v1205_v16  ;;  %1479 = vrot.lane.b32.xlu1 %v4683_v43, %s4005_s22  ;;  %1935 = vmatmul.mubr.bf16.gmra.mrb[16].mxu0 %v1719_v14 }
 0x1ec   : > { %v820_v17 = vpop.permute.xlu0 %819  ;;  %3094 = vmatprep.mubr.msk.bf16.mxu0 %vm604_vm0, %v1722_v13 }
 0x1ed   : > { %862 = vst.msk [vmem:[#allocation3 + $0x60] sm:$0xff] %vm855_vm3, %v820_v17  ;;  %v1334_v19 = vpop.permute.xlu1 %1333 }
 0x1ee   : > { %1377 = vst.msk [vmem:[#allocation3 + $0x50] sm:$0xff] %vm1371_vm7, %v1334_v19  ;;  %1093 = vrot.lane.b32.xlu0 %v4683_v43, %s4002_s23  ;;  %v1418_v43 = vld [vmem:[#allocation2 + $0x188] sm:$0xff] }
 0x1ef   : > { %1507 = vst.msk [vmem:[#allocation3 + $0x50] sm:$0xff] %vm1501_vm8, %v1464_v18  ;;  %1608 = vrot.lane.b32.xlu1 %v1563_v48, %s4003_s2  ;;  %v1435_v27 = vpack.c.bf16 %v1418_v43, %v1417_v26 }
 0x1f0   : > { %v1078_v22 = vpop.permute.xlu0 %1077 }
 0x1f1   : > { %v1593_v23 = vpop.permute.xlu1 %1592 }
 0x1f2   : > { %1636 = vst.msk [vmem:[#allocation3 + $0x50] sm:$0xff] %vm1630_vm9, %v1593_v23  ;;  %1351 = vrot.lane.b32.xlu0 %v4701_v7, %s4001_s20 }
 0x1f3   : > { %964 = vrot.lane.b32.xlu1 %v4675_v36, %s4000_s9  ;;  %v1677_v36 = vld [vmem:[#allocation2 + $0x19a] sm:$0xff] }
 0x1f4   : > { %v1336_v25 = vpop.permute.xlu0 %1335  ;;  %v1694_v33 = vpack.c.bf16 %v1678_v31, %v1677_v36 }
 0x1f5   : > { %v949_v61 = vpop.permute.xlu1 %948 }
 0x1f6   : > { %991 = vst.msk [vmem:[#allocation3 + $0x60] sm:$0xff] %vm984_vm4, %v949_v61  ;;  %1610 = vrot.lane.b32.xlu0 %v1564_v24, %s4003_s2 }
 0x1f7   : > { %1120 = vst.msk [vmem:[#allocation3 + $0x60] sm:$0xff] %vm1113_vm5, %v1078_v22  ;;  %1222 = vrot.lane.b32.xlu1 %v1563_v48, %s4004_s24 }
 0x1f8   : > { %v1595_v15 = vpop.permute.xlu0 %1594  ;;  %1710 = vst.msk [vmem:[#allocation3 + $0xf8] sm:$0xff] %vm604_vm0, %v1694_v33 }
 0x1f9   : > { %v1207_v29 = vpop.permute.xlu1 %1206  ;;  %v1721_v30 = vld [vmem:[#allocation3 + $0x50] sm:$0xff] }
 0x1fa   : > { %1249 = vst.msk [vmem:[#allocation3 + $0x60] sm:$0xff] %vm1242_vm6, %v1207_v29  ;;  %1943 = vmatmul.mubr.bf16.gmra.mrb[20].mxu0 %v1721_v30  ;;  %966 = vrot.lane.b32.xlu0 %v4701_v7, %s4000_s9  ;;  %v1436_v7 = vpack.c.bf16 %v1420_v32, %v1419_v62 }
 0x1fb   : > { %1378 = vst.msk [vmem:[#allocation3 + $0x60] sm:$0xff] %vm1371_vm7, %v1336_v25  ;;  %1481 = vrot.lane.b32.xlu1 %v1435_v27, %s4005_s22  ;;  %3095 = vmatprep.mubr.msk.bf16.mxu0 %vm604_vm0, %v1724_v28  ;;  %v1738_v28 = vld [vmem:[#allocation3 + $0xd8] sm:$0xff] }
 0x1fc   : > { %v951_v60 = vpop.permute.xlu0 %950 }
 0x1fd   : > { %v1466_v34 = vpop.permute.xlu1 %1465 }
 0x1fe   : > { %1508 = vst.msk [vmem:[#allocation3 + $0x60] sm:$0xff] %vm1501_vm8, %v1466_v34  ;;  %1224 = vrot.lane.b32.xlu0 %v1564_v24, %s4004_s24  ;;  %v1734_v24 = vld [vmem:[#allocation3 + $0xb8] sm:$0xff] }
 0x1ff   : > { %1637 = vst.msk [vmem:[#allocation3 + $0x60] sm:$0xff] %vm1630_vm9, %v1595_v15  ;;  %837 = vrot.lane.b32.xlu1 %v1563_v48, %s3999_s21 }
 0x200   : > { %v1209_v35 = vpop.permute.xlu0 %1208 }
 0x201   : > { %v822_v37 = vpop.permute.xlu1 %821 }
 0x202   : > { %863 = vst.msk [vmem:[#allocation3 + $0x70] sm:$0xff] %vm855_vm3, %v822_v37  ;;  %1483 = vrot.lane.b32.xlu0 %v1436_v7, %s4005_s22  ;;  %s3078_s22 = sshll.u32 %s4360_s3, 8 }
 0x203   : > { %992 = vst.msk [vmem:[#allocation3 + $0x70] sm:$0xff] %vm984_vm4, %v951_v60  ;;  %1095 = vrot.lane.b32.xlu1 %v1435_v27, %s4002_s23 }
 0x204   : > { %v1468_v38 = vpop.permute.xlu0 %1467 }
 0x205   : > { %v1080_v41 = vpop.permute.xlu1 %1079 }
 0x206   : > { %1121 = vst.msk [vmem:[#allocation3 + $0x70] sm:$0xff] %vm1113_vm5, %v1080_v41  ;;  %v1723_v45 = vld [vmem:[#allocation3 + $0x60] sm:$0xff] }
 0x207   : > { %1250 = vst.msk [vmem:[#allocation3 + $0x70] sm:$0xff] %vm1242_vm6, %v1209_v35  ;;  %1353 = vrot.lane.b32.xlu1 %v4716_v51, %s4001_s20  ;;  %1951 = vmatmul.mubr.bf16.gmra.mrb[24].mxu0 %v1723_v45 }
 0x208   : > { %v824_v54 = vpop.permute.xlu0 %823  ;;  %3096 = vmatprep.mubr.msk.bf16.mxu0 %vm604_vm0, %v1726_v44  ;;  %v1740_v44 = vld [vmem:[#allocation3 + $0xe8] sm:$0xff] }
 0x209   : > { %864 = vst.msk [vmem:[#allocation3 + $0x80] sm:$0xff] %vm855_vm3, %v824_v54  ;;  %v1338_v47 = vpop.permute.xlu1 %1337 }
 0x20a   : > { %1379 = vst.msk [vmem:[#allocation3 + $0x70] sm:$0xff] %vm1371_vm7, %v1338_v47 }
 0x20b   : > { %1509 = vst.msk [vmem:[#allocation3 + $0x70] sm:$0xff] %vm1501_vm8, %v1468_v38  ;;  %1612 = vrot.lane.b32.xlu1 %v1565_v46, %s4003_s2 }
 0x20c   : > { %v1082_v49 = vpop.permute.xlu0 %1081 }
 0x20d   : > { %v1597_v50 = vpop.permute.xlu1 %1596 }
 0x20e   : > { %1638 = vst.msk [vmem:[#allocation3 + $0x70] sm:$0xff] %vm1630_vm9, %v1597_v50 }
 0x210   : > { %v1340_v52 = vpop.permute.xlu0 %1339 }
 0x211   : > { %v953_v51 = vpop.permute.xlu1 %952 }
 0x212   : > { %993 = vst.msk [vmem:[#allocation3 + $0x80] sm:$0xff] %vm984_vm4, %v953_v51  ;;  %v1742_v51 = vld [vmem:[#allocation3 + $0xf8] sm:$0xff] }
 0x213   : > { %1122 = vst.msk [vmem:[#allocation3 + $0x80] sm:$0xff] %vm1113_vm5, %v1082_v49 }
 0x214   : > { %v1599_v53 = vpop.permute.xlu0 %1598 }
 0x215   : > { %v1211_v56 = vpop.permute.xlu1 %1210  ;;  %v1725_v58 = vld [vmem:[#allocation3 + $0x70] sm:$0xff] }
 0x216   : > { %1251 = vst.msk [vmem:[#allocation3 + $0x80] sm:$0xff] %vm1242_vm6, %v1211_v56  ;;  %1959 = vmatmul.mubr.bf16.gmra.mrb[28].mxu0 %v1725_v58 }
 0x217   : > { %1380 = vst.msk [vmem:[#allocation3 + $0x80] sm:$0xff] %vm1371_vm7, %v1340_v52  ;;  %3097 = vmatprep.mubr.msk.bf16.mxu0 %vm604_vm0, %v1728_v55 }
 0x218   : > { %v955_v59 = vpop.permute.xlu0 %954 }
 0x219   : > { %v1470_v42 = vpop.permute.xlu1 %1469 }
 0x21a   : > { %1510 = vst.msk [vmem:[#allocation3 + $0x80] sm:$0xff] %vm1501_vm8, %v1470_v42 }
 0x21b   : > { %1639 = vst.msk [vmem:[#allocation3 + $0x80] sm:$0xff] %vm1630_vm9, %v1599_v53 }
 0x21c   : > { %v1213_v63 = vpop.permute.xlu0 %1212 }
 0x21d   : > { %v826_v2 = vpop.permute.xlu1 %825 }
 0x21e   : > { %865 = vst.msk [vmem:[#allocation3 + $0x90] sm:$0xff] %vm855_vm3, %v826_v2 }
 0x21f   : > { %994 = vst.msk [vmem:[#allocation3 + $0x90] sm:$0xff] %vm984_vm4, %v955_v59 }
 0x220   : > { %v1472_v4 = vpop.permute.xlu0 %1471 }
 0x221   : > { %v1084_v3 = vpop.permute.xlu1 %1083 }
 0x222   : > { %1123 = vst.msk [vmem:[#allocation3 + $0x90] sm:$0xff] %vm1113_vm5, %v1084_v3  ;;  %v1727_v57 = vld [vmem:[#allocation3 + $0x80] sm:$0xff] }
 0x223   : > { %1252 = vst.msk [vmem:[#allocation3 + $0x90] sm:$0xff] %vm1242_vm6, %v1213_v63  ;;  %1967 = vmatmul.mubr.bf16.gmra.mrb[32].mxu0 %v1727_v57 }
 0x224   : > { %v828_v6 = vpop.permute.xlu0 %827  ;;  %3098 = vmatprep.mubr.msk.bf16.mxu0 %vm604_vm0, %v1730_v5 }
 0x225   : > { %866 = vst.msk [vmem:[#allocation3 + $0xa0] sm:$0xff] %vm855_vm3, %v828_v6  ;;  %v1342_v12 = vpop.permute.xlu1 %1341 }
 0x226   : > { %1381 = vst.msk [vmem:[#allocation3 + $0x90] sm:$0xff] %vm1371_vm7, %v1342_v12 }
 0x227   : > { %1511 = vst.msk [vmem:[#allocation3 + $0x90] sm:$0xff] %vm1501_vm8, %v1472_v4 }
 0x228   : > { %v957_v9 = vpop.permute.xlu0 %956 }
 0x229   : > { %995 = vst.msk [vmem:[#allocation3 + $0xa0] sm:$0xff] %vm984_vm4, %v957_v9  ;;  %v1601_v16 = vpop.permute.xlu1 %1600 }
 0x22a   : > { %1640 = vst.msk [vmem:[#allocation3 + $0x90] sm:$0xff] %vm1630_vm9, %v1601_v16 }
 0x22c   : > { %v1086_v8 = vpop.permute.xlu0 %1085 }
 0x22d   : > { %1124 = vst.msk [vmem:[#allocation3 + $0xa0] sm:$0xff] %vm1113_vm5, %v1086_v8  ;;  %v832_v18 = vpop.permute.xlu1 %831 }
 0x22e   : > { %868 = vst.msk [vmem:[#allocation3 + $0xc0] sm:$0xff] %vm855_vm3, %v832_v18 }
 0x230   : > { %v1215_v10 = vpop.permute.xlu0 %1214 }
 0x231   : > { %1253 = vst.msk [vmem:[#allocation3 + $0xa0] sm:$0xff] %vm1242_vm6, %v1215_v10  ;;  %v961_v1 = vpop.permute.xlu1 %960  ;;  %v1729_v13 = vld [vmem:[#allocation3 + $0x90] sm:$0xff] }
 0x232   : > { %997 = vst.msk [vmem:[#allocation3 + $0xc0] sm:$0xff] %vm984_vm4, %v961_v1  ;;  %1975 = vmatmul.mubr.bf16.gmra.mrb[36].mxu0 %v1729_v13 }
 0x233   : > { %3099 = vmatprep.mubr.msk.bf16.mxu0 %vm604_vm0, %v1732_v11 }
 0x234   : > { %v1344_v14 = vpop.permute.xlu0 %1343 }
 0x235   : > { %1382 = vst.msk [vmem:[#allocation3 + $0xa0] sm:$0xff] %vm1371_vm7, %v1344_v14  ;;  %v1090_v48 = vpop.permute.xlu1 %1089 }
 0x236   : > { %1126 = vst.msk [vmem:[#allocation3 + $0xc0] sm:$0xff] %vm1113_vm5, %v1090_v48 }
 0x238   : > { %v1474_v17 = vpop.permute.xlu0 %1473 }
 0x239   : > { %1512 = vst.msk [vmem:[#allocation3 + $0xa0] sm:$0xff] %vm1501_vm8, %v1474_v17  ;;  %v1219_v19 = vpop.permute.xlu1 %1218 }
 0x23a   : > { %1255 = vst.msk [vmem:[#allocation3 + $0xc0] sm:$0xff] %vm1242_vm6, %v1219_v19 }
 0x23c   : > { %v1603_v20 = vpop.permute.xlu0 %1602 }
 0x23d   : > { %1641 = vst.msk [vmem:[#allocation3 + $0xa0] sm:$0xff] %vm1630_vm9, %v1603_v20  ;;  %v1348_v21 = vpop.permute.xlu1 %1347 }
 0x23e   : > { %1384 = vst.msk [vmem:[#allocation3 + $0xc0] sm:$0xff] %vm1371_vm7, %v1348_v21 }
 0x240   : > { %v830_v22 = vpop.permute.xlu0 %829 }
 0x241   : > { %867 = vst.msk [vmem:[#allocation3 + $0xb0] sm:$0xff] %vm855_vm3, %v830_v22  ;;  %v1478_v23 = vpop.permute.xlu1 %1477 }
 0x242   : > { %1514 = vst.msk [vmem:[#allocation3 + $0xc0] sm:$0xff] %vm1501_vm8, %v1478_v23 }
 0x244   : > { %v959_v25 = vpop.permute.xlu0 %958  ;;  %v1731_v26 = vld [vmem:[#allocation3 + $0xa0] sm:$0xff] }
 0x245   : > { %996 = vst.msk [vmem:[#allocation3 + $0xb0] sm:$0xff] %vm984_vm4, %v959_v25  ;;  %v1607_v43 = vpop.permute.xlu1 %1606  ;;  %1983 = vmatmul.mubr.bf16.gmra.mrb[40].mxu0 %v1731_v26 }
 0x246   : > { %1643 = vst.msk [vmem:[#allocation3 + $0xc0] sm:$0xff] %vm1630_vm9, %v1607_v43  ;;  %3100 = vmatprep.mubr.msk.bf16.mxu0 %vm604_vm0, %v1734_v24 }
 0x248   : > { %v1088_v61 = vpop.permute.xlu0 %1087 }
 0x249   : > { %1125 = vst.msk [vmem:[#allocation3 + $0xb0] sm:$0xff] %vm1113_vm5, %v1088_v61  ;;  %v834_v27 = vpop.permute.xlu1 %833 }
 0x24a   : > { %869 = vst.msk [vmem:[#allocation3 + $0xd0] sm:$0xff] %vm855_vm3, %v834_v27 }
 0x24c   : > { %v1217_v15 = vpop.permute.xlu0 %1216 }
 0x24d   : > { %1254 = vst.msk [vmem:[#allocation3 + $0xb0] sm:$0xff] %vm1242_vm6, %v1217_v15  ;;  %v963_v29 = vpop.permute.xlu1 %962  ;;  %v1735_v30 = vld [vmem:[#allocation3 + $0xc0] sm:$0xff] }
 0x24e   : > { %998 = vst.msk [vmem:[#allocation3 + $0xd0] sm:$0xff] %vm984_vm4, %v963_v29  ;;  %1999 = vmatmul.mubr.bf16.vlgmr.msra.gmra.mrb[0].mxu1 %v1735_v30  ;;  %v4967_v29 = vld [vmem:[#allocation10] ss:$0 sm:$0xff] }
 0x24f   : > { %3102 = vmatprep.mubr.msk.bf16.mxu1 %vm604_vm0, %v1738_v28 }
 0x250   : > { %v1346_v36 = vpop.permute.xlu0 %1345 }
 0x251   : > { %1383 = vst.msk [vmem:[#allocation3 + $0xb0] sm:$0xff] %vm1371_vm7, %v1346_v36  ;;  %v1092_v31 = vpop.permute.xlu1 %1091 }
 0x252   : > { %1127 = vst.msk [vmem:[#allocation3 + $0xd0] sm:$0xff] %vm1113_vm5, %v1092_v31 }
 0x254   : > { %v1476_v62 = vpop.permute.xlu0 %1475 }
 0x255   : > { %1513 = vst.msk [vmem:[#allocation3 + $0xb0] sm:$0xff] %vm1501_vm8, %v1476_v62  ;;  %v1221_v32 = vpop.permute.xlu1 %1220 }
 0x256   : > { %1256 = vst.msk [vmem:[#allocation3 + $0xd0] sm:$0xff] %vm1242_vm6, %v1221_v32 }
 0x258   : > { %v1605_v33 = vpop.permute.xlu0 %1604 }
 0x259   : > { %1642 = vst.msk [vmem:[#allocation3 + $0xb0] sm:$0xff] %vm1630_vm9, %v1605_v33  ;;  %v1350_v60 = vpop.permute.xlu1 %1349 }
 0x25a   : > { %1385 = vst.msk [vmem:[#allocation3 + $0xd0] sm:$0xff] %vm1371_vm7, %v1350_v60 }
 0x25c   : > { %v836_v34 = vpop.permute.xlu0 %835 }
 0x25d   : > { %v1480_v7 = vpop.permute.xlu1 %1479  ;;  %870 = vst.msk [vmem:[#allocation3 + $0xe0] sm:$0xff] %vm855_vm3, %v836_v34 }
 0x25e   : > { %1515 = vst.msk [vmem:[#allocation3 + $0xd0] sm:$0xff] %vm1501_vm8, %v1480_v7 }
 0x260   : > { %v1733_v35 = vld [vmem:[#allocation3 + $0xb0] sm:$0xff]  ;;  %v1094_v37 = vpop.permute.xlu0 %1093 }
 0x261   : > { %v1609_v38 = vpop.permute.xlu1 %1608  ;;  %1991 = vmatmul.mubr.bf16.gmra.mrb[44].mxu0 %v1733_v35 }
 0x262   : > { %1644 = vst.msk [vmem:[#allocation3 + $0xd0] sm:$0xff] %vm1630_vm9, %v1609_v38 }
 0x264   : > { %v1352_v39 = vpop.permute.xlu0 %1351 }
 0x265   : > { %v965_v40 = vpop.permute.xlu1 %964 }
 0x266   : > { %999 = vst.msk [vmem:[#allocation3 + $0xe0] sm:$0xff] %vm984_vm4, %v965_v40 }
 0x267   : > { %1128 = vst.msk [vmem:[#allocation3 + $0xe0] sm:$0xff] %vm1113_vm5, %v1094_v37 }
 0x268   : > { %v1611_v41 = vpop.permute.xlu0 %1610 }
 0x269   : > { %v1223_v45 = vpop.permute.xlu1 %1222  ;;  %v1737_v46 = vld [vmem:[#allocation3 + $0xd0] sm:$0xff] }
 0x26a   : > { %1257 = vst.msk [vmem:[#allocation3 + $0xe0] sm:$0xff] %vm1242_vm6, %v1223_v45  ;;  %2007 = vmatmul.mubr.bf16.gmra.mrb[4].mxu1 %v1737_v46 }
 0x26b   : > { %1386 = vst.msk [vmem:[#allocation3 + $0xe0] sm:$0xff] %vm1371_vm7, %v1352_v39  ;;  %3103 = vmatprep.mubr.msk.bf16.mxu1 %vm604_vm0, %v1740_v44 }
 0x26c   : > { %v967_v54 = vpop.permute.xlu0 %966 }
 0x26d   : > { %v1482_v47 = vpop.permute.xlu1 %1481 }
 0x26e   : > { %1516 = vst.msk [vmem:[#allocation3 + $0xe0] sm:$0xff] %vm1501_vm8, %v1482_v47 }
 0x26f   : > { %1645 = vst.msk [vmem:[#allocation3 + $0xe0] sm:$0xff] %vm1630_vm9, %v1611_v41 }
 0x270   : > { %v1225_v50 = vpop.permute.xlu0 %1224 }
 0x271   : > { %v838_v49 = vpop.permute.xlu1 %837 }
 0x272   : > { %871 = vst.msk [vmem:[#allocation3 + $0xf0] sm:$0xff] %vm855_vm3, %v838_v49 }
 0x273   : > { %1000 = vst.msk [vmem:[#allocation3 + $0xf0] sm:$0xff] %vm984_vm4, %v967_v54 }
 0x274   : > { %v1484_v55 = vpop.permute.xlu0 %1483 }
 0x275   : > { %v1096_v52 = vpop.permute.xlu1 %1095 }
 0x276   : > { %1129 = vst.msk [vmem:[#allocation3 + $0xf0] sm:$0xff] %vm1113_vm5, %v1096_v52  ;;  %v1739_v53 = vld [vmem:[#allocation3 + $0xe0] sm:$0xff] }
 0x277   : > { %2015 = vmatmul.mubr.bf16.gmra.mrb[8].mxu1 %v1739_v53  ;;  %1258 = vst.msk [vmem:[#allocation3 + $0xf0] sm:$0xff] %vm1242_vm6, %v1225_v50 }
 0x278   : > { %3104 = vmatprep.mubr.msk.bf16.mxu1 %vm604_vm0, %v1742_v51 }
 0x279   : > { %v1354_v56 = vpop.permute.xlu1 %1353 }
 0x27a   : > { %1387 = vst.msk [vmem:[#allocation3 + $0xf0] sm:$0xff] %vm1371_vm7, %v1354_v56 }
 0x27b   : > { %1517 = vst.msk [vmem:[#allocation3 + $0xf0] sm:$0xff] %vm1501_vm8, %v1484_v55 }
 0x27d   : > { %v1613_v58 = vpop.permute.xlu1 %1612 }
 0x27e   : > { %1646 = vst.msk [vmem:[#allocation3 + $0xf0] sm:$0xff] %vm1630_vm9, %v1613_v58 }
 0x285   : > { %v1741_v59 = vld [vmem:[#allocation3 + $0xf0] sm:$0xff] }
 0x286   : > { %v1904_v42 = vpop.f32.mrb[0].mxu0  ;;  %2023 = vmatmul.mubr.bf16.gmra.mrb[12].mxu1 %v1741_v59 }
 0x287   : > { %v1906_v63 = vpop.f32.mrb[1].mxu0  ;;  %v4972_v62 = vadd.f32 %v4967_v29, %v1904_v42 }
 0x288   : > { %v1907_v2 = vpop.f32.mrb[2].mxu0 }
 0x289   : > { %v1909_v4 = vpop.f32.mrb[3].mxu0  ;;  %v4975_v32 = vadd.f32 %v4967_v29, %v1907_v2  ;;  %v2100_v60 = vmul.f32 %v4972_v62, %v4972_v62  ;;  %v2031_v7 = vsel %vm604_vm0, %v4972_v62, 0.0 }
 0x28b   : > { %v2101_v34 = vmul.f32 %v4975_v32, %v4975_v32  ;;  %v2032_v35 = vsel %vm604_vm0, %v4975_v32, 0.0  ;;  %v2132_v39 = vsel %vm604_vm0, %v2100_v60, 0.0 }
 0x28c   : > { %v2033_v45 = vadd.f32 %v2032_v35, %v2031_v7 }
 0x28d   : > { %v2133_v40 = vsel %vm604_vm0, %v2101_v34, 0.0 }
 0x28e   : > { %v2134_v47 = vadd.f32 %v2133_v40, %v2132_v39 }
 0x295   : > { %v1912_v3 = vpop.f32.mrb[4].mxu0 }
 0x296   : > { %v1914_v5 = vpop.f32.mrb[5].mxu0  ;;  %v4978_v33 = vadd.f32 %v4967_v29, %v1912_v3 }
 0x297   : > { %v1915_v57 = vpop.f32.mrb[6].mxu0 }
 0x298   : > { %v1917_v6 = vpop.f32.mrb[7].mxu0  ;;  %v2102_v37 = vmul.f32 %v4978_v33, %v4978_v33  ;;  %v4991_v38 = vadd.f32 %v4967_v29, %v1915_v57  ;;  %v2034_v41 = vsel %vm604_vm0, %v4978_v33, 0.0 }
 0x299   : > { %v2035_v49 = vadd.f32 %v2034_v41, %v2033_v45 }
 0x29a   : > { %v2135_v46 = vsel %vm604_vm0, %v2102_v37, 0.0  ;;  %v2103_v54 = vmul.f32 %v4991_v38, %v4991_v38  ;;  %v2036_v52 = vsel %vm604_vm0, %v4991_v38, 0.0 }
 0x29b   : > { %v2136_v56 = vadd.f32 %v2135_v46, %v2134_v47  ;;  %v2037_v4 = vadd.f32 %v2036_v52, %v2035_v49 }
 0x29c   : > { %v2137_v59 = vsel %vm604_vm0, %v2103_v54, 0.0 }
 0x29d   : > { %v2138_v57 = vadd.f32 %v2137_v59, %v2136_v56 }
 0x2a2   : > { %v1920_v12 = vpop.f32.mrb[8].mxu0 }
 0x2a3   : > { %v1922_v9 = vpop.f32.mrb[9].mxu0  ;;  %v4998_v44 = vadd.f32 %v4967_v29, %v1920_v12 }
 0x2a4   : > { %v1923_v16 = vpop.f32.mrb[10].mxu0 }
 0x2a5   : > { %v1925_v8 = vpop.f32.mrb[11].mxu0  ;;  %v2104_v51 = vmul.f32 %v4998_v44, %v4998_v44  ;;  %v5010_v53 = vadd.f32 %v4967_v29, %v1923_v16  ;;  %v2038_v42 = vsel %vm604_vm0, %v4998_v44, 0.0 }
 0x2a6   : > { %v2039_v6 = vadd.f32 %v2038_v42, %v2037_v4 }
 0x2a7   : > { %v2139_v3 = vsel %vm604_vm0, %v2104_v51, 0.0  ;;  %v2105_v5 = vmul.f32 %v5010_v53, %v5010_v53  ;;  %v2040_v12 = vsel %vm604_vm0, %v5010_v53, 0.0 }
 0x2a8   : > { %v2140_v8 = vadd.f32 %v2139_v3, %v2138_v57 }
 0x2b1   : > { %v1928_v18 = vpop.f32.mrb[12].mxu0 }
 0x2b2   : > { %v1930_v10 = vpop.f32.mrb[13].mxu0  ;;  %v5018_v63 = vadd.f32 %v4967_v29, %v1928_v18  ;;  %v2141_v18 = vsel %vm604_vm0, %v2105_v5, 0.0 }
 0x2b3   : > { %v1931_v11 = vpop.f32.mrb[14].mxu0 }
 0x2b4   : > { %v1933_v1 = vpop.f32.mrb[15].mxu0  ;;  %v2106_v9 = vmul.f32 %v5018_v63, %v5018_v63  ;;  %v5028_v16 = vadd.f32 %v4967_v29, %v1931_v11  ;;  %v2042_v10 = vsel %vm604_vm0, %v5018_v63, 0.0 }
 0x2b6   : > { %v2044_v11 = vsel %vm604_vm0, %v5028_v16, 0.0 }
 0x2be   : > { %v1936_v13 = vpop.f32.mrb[16].mxu0 }
 0x2bf   : > { %v1938_v14 = vpop.f32.mrb[17].mxu0  ;;  %v5034_v1 = vadd.f32 %v4967_v29, %v1936_v13 }
 0x2c0   : > { %v4951_v48 = vpop.f32.mrb[18].mxu0  ;;  %v2041_v14 = vadd.f32 %v2040_v12, %v2039_v6 }
 0x2c1   : > { %v1941_v17 = vpop.f32.mrb[19].mxu0 }
 0x2c2   : > { %v2143_v17 = vsel %vm604_vm0, %v2106_v9, 0.0 }
 0x2cd   : > { %v4953_v19 = vpop.f32.mrb[20].mxu0 }
 0x2ce   : > { %v1946_v20 = vpop.f32.mrb[21].mxu0 }
 0x2cf   : > { %v4955_v21 = vpop.f32.mrb[22].mxu0  ;;  %v2107_v20 = vmul.f32 %v5028_v16, %v5028_v16 }
 0x2d0   : > { %v1949_v22 = vpop.f32.mrb[23].mxu0  ;;  %v5063_v40 = vadd.f32 %v4967_v29, %v4955_v21 }
 0x2d1   : > { %v2142_v22 = vadd.f32 %v2141_v18, %v2140_v8 }
 0x2d2   : > { %v2111_v21 = vmul.f32 %v5063_v40, %v5063_v40  ;;  %v2052_v42 = vsel %vm604_vm0, %v5063_v40, 0.0 }
 0x2d3   : > { %v2144_v13 = vadd.f32 %v2143_v17, %v2142_v22 }
 0x2d4   : > { %v2153_v3 = vsel %vm604_vm0, %v2111_v21, 0.0 }
 0x2da   : > { %v4957_v23 = vpop.f32.mrb[24].mxu0 }
 0x2db   : > { %v1954_v24 = vpop.f32.mrb[25].mxu0  ;;  %v5070_v47 = vadd.f32 %v4967_v29, %v4957_v23 }
 0x2dc   : > { %v4959_v25 = vpop.f32.mrb[26].mxu0  ;;  %v2043_v24 = vadd.f32 %v2042_v10, %v2041_v14 }
 0x2dd   : > { %v1957_v26 = vpop.f32.mrb[27].mxu0  ;;  %v5083_v23 = vadd.f32 %v4967_v29, %v4959_v25  ;;  %v2054_v5 = vsel %vm604_vm0, %v5070_v47, 0.0 }
 0x2de   : > { %v2108_v26 = vmul.f32 %v5034_v1, %v5034_v1  ;;  %v2045_v60 = vadd.f32 %v2044_v11, %v2043_v24 }
 0x2df   : > { %v2113_v8 = vmul.f32 %v5083_v23, %v5083_v23  ;;  %v2056_v17 = vsel %vm604_vm0, %v5083_v23, 0.0 }
 0x2e0   : > { %v2147_v34 = vsel %vm604_vm0, %v2108_v26, 0.0 }
 0x2e1   : > { %v2157_v11 = vsel %vm604_vm0, %v2113_v8, 0.0 }
 0x2e9   : > { %v4961_v43 = vpop.f32.mrb[28].mxu0 }
 0x2ea   : > { %v1962_v61 = vpop.f32.mrb[29].mxu0  ;;  %v5090_v57 = vadd.f32 %v4967_v29, %v4961_v43 }
 0x2eb   : > { %v4963_v27 = vpop.f32.mrb[30].mxu0  ;;  %v5045_v61 = vadd.f32 %v4967_v29, %v4951_v48 }
 0x2ec   : > { %v1965_v15 = vpop.f32.mrb[31].mxu0  ;;  %v2114_v43 = vmul.f32 %v5090_v57, %v5090_v57  ;;  %v2058_v26 = vsel %vm604_vm0, %v5090_v57, 0.0 }
 0x2ed   : > { %v2145_v15 = vsel %vm604_vm0, %v2107_v20, 0.0  ;;  %v2109_v7 = vmul.f32 %v5045_v61, %v5045_v61  ;;  %v2048_v48 = vsel %vm604_vm0, %v5045_v61, 0.0  ;;  %v5105_v20 = vadd.f32 %v4967_v29, %v4963_v27 }
 0x2ee   : > { %v2146_v35 = vadd.f32 %v2145_v15, %v2144_v13 }
 0x2ef   : > { %v2149_v46 = vsel %vm604_vm0, %v2109_v7, 0.0  ;;  %v2060_v7 = vsel %vm604_vm0, %v5105_v20, 0.0 }
 0x2f0   : > { %v2148_v41 = vadd.f32 %v2147_v34, %v2146_v35 }
 0x2f2   : > { %v2150_v56 = vadd.f32 %v2149_v46, %v2148_v41 }
 0x2f6   : > { %v4965_v28 = vpop.f32.mrb[32].mxu0 }
 0x2f7   : > { %v1970_v30 = vpop.f32.mrb[33].mxu0  ;;  %v5112_v13 = vadd.f32 %v4967_v29, %v4965_v28 }
 0x2f8   : > { %v4969_v36 = vpop.f32.mrb[34].mxu0  ;;  %v2046_v30 = vsel %vm604_vm0, %v5034_v1, 0.0 }
 0x2f9   : > { %v1973_v31 = vpop.f32.mrb[35].mxu0  ;;  %v2047_v37 = vadd.f32 %v2046_v30, %v2045_v60  ;;  %v2159_v30 = vsel %vm604_vm0, %v2114_v43, 0.0  ;;  %v2115_v60 = vmul.f32 %v5105_v20, %v5105_v20  ;;  %v2116_v35 = vmul.f32 %v5112_v13, %v5112_v13 }
 0x2fa   : > { %v5052_v31 = vadd.f32 %v4967_v29, %v4953_v19 }
 0x2fb   : > { %v2049_v52 = vadd.f32 %v2048_v48, %v2047_v37  ;;  %v5123_v37 = vadd.f32 %v4967_v29, %v4969_v36  ;;  %v2161_v48 = vsel %vm604_vm0, %v2115_v60, 0.0  ;;  %v2163_v46 = vsel %vm604_vm0, %v2116_v35, 0.0 }
 0x2fc   : > { %v2110_v39 = vmul.f32 %v5052_v31, %v5052_v31  ;;  %v2050_v54 = vsel %vm604_vm0, %v5052_v31, 0.0 }
 0x2fd   : > { %v2051_v59 = vadd.f32 %v2050_v54, %v2049_v52  ;;  %v2117_v54 = vmul.f32 %v5123_v37, %v5123_v37  ;;  %v2064_v36 = vsel %vm604_vm0, %v5123_v37, 0.0 }
 0x2ff   : > { %v2053_v6 = vadd.f32 %v2052_v42, %v2051_v59 }
 0x301   : > { %v2055_v10 = vadd.f32 %v2054_v5, %v2053_v6 }
 0x303   : > { %v2057_v15 = vadd.f32 %v2056_v17, %v2055_v10 }
 0x305   : > { %v5003_v50 = vpop.f32.mrb[36].mxu0  ;;  %v2059_v27 = vadd.f32 %v2058_v26, %v2057_v15 }
 0x306   : > { %v1978_v55 = vpop.f32.mrb[37].mxu0  ;;  %v5130_v41 = vadd.f32 %v4967_v29, %v5003_v50 }
 0x307   : > { %v5012_v58 = vpop.f32.mrb[38].mxu0  ;;  %v2151_v55 = vsel %vm604_vm0, %v2110_v39, 0.0  ;;  %v2062_v39 = vsel %vm604_vm0, %v5112_v13, 0.0 }
 0x308   : > { %v1981_v2 = vpop.f32.mrb[39].mxu0  ;;  %v2152_v4 = vadd.f32 %v2151_v55, %v2150_v56  ;;  %v2118_v55 = vmul.f32 %v5130_v41, %v5130_v41  ;;  %v5141_v21 = vadd.f32 %v4967_v29, %v5012_v58  ;;  %v2165_v56 = vsel %vm604_vm0, %v2117_v54, 0.0 }
 0x309   : > { %v2112_v2 = vmul.f32 %v5070_v47, %v5070_v47  ;;  %v2066_v59 = vsel %vm604_vm0, %v5130_v41, 0.0 }
 0x30a   : > { %v2154_v18 = vadd.f32 %v2153_v3, %v2152_v4  ;;  %v2167_v4 = vsel %vm604_vm0, %v2118_v55, 0.0  ;;  %v2119_v3 = vmul.f32 %v5141_v21, %v5141_v21  ;;  %v2068_v8 = vsel %vm604_vm0, %v5141_v21, 0.0 }
 0x30b   : > { %v2155_v9 = vsel %vm604_vm0, %v2112_v2, 0.0 }
 0x30c   : > { %v2156_v24 = vadd.f32 %v2155_v9, %v2154_v18  ;;  %v2169_v43 = vsel %vm604_vm0, %v2119_v3, 0.0 }
 0x30e   : > { %v2158_v34 = vadd.f32 %v2157_v11, %v2156_v24 }
 0x310   : > { %v2160_v28 = vadd.f32 %v2159_v30, %v2158_v34 }
 0x312   : > { %v2162_v52 = vadd.f32 %v2161_v48, %v2160_v28 }
 0x314   : > { %v2164_v50 = vadd.f32 %v2163_v46, %v2162_v52 }
 0x316   : > { %v2166_v6 = vadd.f32 %v2165_v56, %v2164_v50 }
 0x318   : > { %v1984_v19 = vpop.f32.mrb[40].mxu0  ;;  %v2168_v10 = vadd.f32 %v2167_v4, %v2166_v6 }
 0x319   : > { %v1986_v45 = vpop.f32.mrb[41].mxu0  ;;  %v5147_v42 = vadd.f32 %v4967_v29, %v1984_v19 }
 0x31a   : > { %v5072_v49 = vpop.f32.mrb[42].mxu0  ;;  %v2061_v45 = vadd.f32 %v2060_v7, %v2059_v27  ;;  %v2170_v30 = vadd.f32 %v2169_v43, %v2168_v10 }
 0x31b   : > { %v1989_v51 = vpop.f32.mrb[43].mxu0  ;;  %v5158_v19 = vadd.f32 %v4967_v29, %v5072_v49 }
 0x31c   : > { %v2063_v51 = vadd.f32 %v2062_v39, %v2061_v45 }
 0x31d   : > { %v2121_v15 = vmul.f32 %v5158_v19, %v5158_v19  ;;  %v2072_v60 = vsel %vm604_vm0, %v5158_v19, 0.0 }
 0x31e   : > { %v2065_v2 = vadd.f32 %v2064_v36, %v2063_v51 }
 0x31f   : > { %v2173_v28 = vsel %vm604_vm0, %v2121_v15, 0.0 }
 0x320   : > { %v2067_v9 = vadd.f32 %v2066_v59, %v2065_v2 }
 0x321   : > { %v5092_v12 = vpop.f32.mrb[0].mxu1 }
 0x322   : > { %v2002_v25 = vpop.f32.mrb[1].mxu1  ;;  %v2069_v11 = vadd.f32 %v2068_v8, %v2067_v9  ;;  %v5184_v50 = vadd.f32 %v4967_v29, %v5092_v12 }
 0x323   : > { %v5097_v14 = vpop.f32.mrb[2].mxu1  ;;  %v2120_v25 = vmul.f32 %v5147_v42, %v5147_v42 }
 0x324   : > { %v2005_v22 = vpop.f32.mrb[3].mxu1  ;;  %v2124_v3 = vmul.f32 %v5184_v50, %v5184_v50  ;;  %v2078_v9 = vsel %vm604_vm0, %v5184_v50, 0.0 }
 0x325   : > { %v2070_v22 = vsel %vm604_vm0, %v5147_v42, 0.0  ;;  %v2171_v26 = vsel %vm604_vm0, %v2120_v25, 0.0 }
 0x326   : > { %v2071_v49 = vadd.f32 %v2070_v22, %v2069_v11  ;;  %v2172_v7 = vadd.f32 %v2171_v26, %v2170_v30  ;;  %v2179_v8 = vsel %vm604_vm0, %v2124_v3, 0.0 }
 0x328   : > { %v2073_v45 = vadd.f32 %v2072_v60, %v2071_v49  ;;  %v2174_v36 = vadd.f32 %v2173_v28, %v2172_v7 }
 0x334   : > { %v1992_v5 = vpop.f32.mrb[44].mxu0 }
 0x335   : > { %v1994_v58 = vpop.f32.mrb[45].mxu0  ;;  %v5164_v24 = vadd.f32 %v4967_v29, %v1992_v5  ;;  %v5193_v5 = vadd.f32 %v4967_v29, %v5097_v14 }
 0x336   : > { %v1995_v18 = vpop.f32.mrb[46].mxu0 }
 0x337   : > { %v1997_v17 = vpop.f32.mrb[47].mxu0  ;;  %v2122_v34 = vmul.f32 %v5164_v24, %v5164_v24  ;;  %v5174_v27 = vadd.f32 %v4967_v29, %v1995_v18  ;;  %v2074_v48 = vsel %vm604_vm0, %v5164_v24, 0.0  ;;  %v2125_v25 = vmul.f32 %v5193_v5, %v5193_v5 }
 0x338   : > { %v2075_v55 = vadd.f32 %v2074_v48, %v2073_v45  ;;  %v2080_v14 = vsel %vm604_vm0, %v5193_v5, 0.0 }
 0x339   : > { %v2175_v54 = vsel %vm604_vm0, %v2122_v34, 0.0  ;;  %v2123_v52 = vmul.f32 %v5174_v27, %v5174_v27  ;;  %v2076_v56 = vsel %vm604_vm0, %v5174_v27, 0.0  ;;  %v2181_v30 = vsel %vm604_vm0, %v2125_v25, 0.0 }
 0x33a   : > { %v2176_v59 = vadd.f32 %v2175_v54, %v2174_v36  ;;  %v2077_v4 = vadd.f32 %v2076_v56, %v2075_v55 }
 0x33b   : > { %v2177_v2 = vsel %vm604_vm0, %v2123_v52, 0.0 }
 0x33c   : > { %v2178_v6 = vadd.f32 %v2177_v2, %v2176_v59  ;;  %v2079_v58 = vadd.f32 %v2078_v9, %v2077_v4 }
 0x33d   : > { %v2008_v35 = vpop.f32.mrb[4].mxu1 }
 0x33e   : > { %v2010_v39 = vpop.f32.mrb[5].mxu1  ;;  %v5198_v12 = vadd.f32 %v4967_v29, %v2008_v35  ;;  %v2180_v10 = vadd.f32 %v2179_v8, %v2178_v6  ;;  %v2081_v26 = vadd.f32 %v2080_v14, %v2079_v58 }
 0x33f   : > { %v2011_v46 = vpop.f32.mrb[6].mxu1 }
 0x340   : > { %v2013_v51 = vpop.f32.mrb[7].mxu1  ;;  %v2126_v43 = vmul.f32 %v5198_v12, %v5198_v12  ;;  %v5208_v22 = vadd.f32 %v4967_v29, %v2011_v46  ;;  %v2082_v49 = vsel %vm604_vm0, %v5198_v12, 0.0  ;;  %v2182_v34 = vadd.f32 %v2181_v30, %v2180_v10 }
 0x341   : > { %v2083_v28 = vadd.f32 %v2082_v49, %v2081_v26 }
 0x342   : > { %v2183_v7 = vsel %vm604_vm0, %v2126_v43, 0.0  ;;  %v2127_v35 = vmul.f32 %v5208_v22, %v5208_v22  ;;  %v2084_v48 = vsel %vm604_vm0, %v5208_v22, 0.0 }
 0x343   : > { %v2184_v46 = vadd.f32 %v2183_v7, %v2182_v34  ;;  %v2085_v51 = vadd.f32 %v2084_v48, %v2083_v28 }
 0x344   : > { %v2185_v54 = vsel %vm604_vm0, %v2127_v35, 0.0 }
 0x345   : > { %v2186_v56 = vadd.f32 %v2185_v54, %v2184_v46 }
 0x34a   : > { %v2016_v18 = vpop.f32.mrb[8].mxu1 }
 0x34b   : > { %v2018_v17 = vpop.f32.mrb[9].mxu1  ;;  %v5214_v60 = vadd.f32 %v4967_v29, %v2016_v18  ;;  %v2201_v18 = vlaneseq }
 0x34c   : > { %v2019_v11 = vpop.f32.mrb[10].mxu1 }
 0x34d   : > { %v2021_v15 = vpop.f32.mrb[11].mxu1  ;;  %v2128_v39 = vmul.f32 %v5214_v60, %v5214_v60  ;;  %v5224_v45 = vadd.f32 %v4967_v29, %v2019_v11  ;;  %v2086_v52 = vsel %vm604_vm0, %v5214_v60, 0.0  ;;  %v5251_v35 = vand.u32 127, %v2201_v18 }
 0x34e   : > { %v2087_v59 = vadd.f32 %v2086_v52, %v2085_v51 }
 0x34f   : > { %v2187_v36 = vsel %vm604_vm0, %v2128_v39, 0.0  ;;  %v2129_v55 = vmul.f32 %v5224_v45, %v5224_v45  ;;  %v2088_v2 = vsel %vm604_vm0, %v5224_v45, 0.0  ;;  %vm2203_vm10 = vcmp.ge.s32.totalorder %v5251_v35, 8 }
 0x350   : > { %v2188_v4 = vadd.f32 %v2187_v36, %v2186_v56  ;;  %v2089_v8 = vadd.f32 %v2088_v2, %v2087_v59  ;;  %v3105_v51 = vsel %vm2203_vm10, 1.0, %v3997_v0 }
 0x351   : > { %v2189_v6 = vsel %vm604_vm0, %v2129_v55, 0.0  ;;  %v2206_v59 = vsub.f32 1.0, %v3105_v51 }
 0x352   : > { %v2190_v11 = vadd.f32 %v2189_v6, %v2188_v4 }
 0x359   : > { %v2024_v3 = vpop.f32.mrb[12].mxu1 }
 0x35a   : > { %v5236_v9 = vadd.f32 %v4967_v29, %v2024_v3  ;;  %v2026_v58 = vpop.f32.mrb[13].mxu1 }
 0x35b   : > { %v2027_v25 = vpop.f32.mrb[14].mxu1 }
 0x35c   : > { %v2090_v10 = vsel %vm604_vm0, %v5236_v9, 0.0  ;;  %v2130_v17 = vmul.f32 %v5236_v9, %v5236_v9  ;;  %v5243_v14 = vadd.f32 %v4967_v29, %v2027_v25  ;;  %v2029_v43 = vpop.f32.mrb[15].mxu1 }
 0x35d   : > { %v2091_v26 = vadd.f32 %v2090_v10, %v2089_v8 }
 0x35e   : > { %v2191_v15 = vsel %vm604_vm0, %v2130_v17, 0.0  ;;  %v2092_v30 = vsel %vm604_vm0, %v5243_v14, 0.0  ;;  %v2131_v49 = vmul.f32 %v5243_v14, %v5243_v14 }
 0x35f   : > { %v2192_v34 = vadd.f32 %v2191_v15, %v2190_v11  ;;  %v2093_v7 = vadd.f32 %v2092_v30, %v2091_v26 }
 0x360   : > { %v2193_v28 = vsel %vm604_vm0, %v2131_v49, 0.0 }
 0x361   : > { %v2094_v29 = vrot.slane %v2093_v7, 4  ;;  %v2194_v48 = vadd.f32 %v2193_v28, %v2192_v34 }
 0x363   : > { %v2095_v39 = vadd.f32 %v2094_v29, %v2093_v7  ;;  %v2195_v46 = vrot.slane %v2194_v48, 4 }
 0x365   : > { %v2096_v54 = vrot.slane %v2095_v39, 2  ;;  %v2196_v52 = vadd.f32 %v2195_v46, %v2194_v48 }
 0x367   : > { %v2097_v36 = vadd.f32 %v2096_v54, %v2095_v39  ;;  %v2197_v55 = vrot.slane %v2196_v52, 2 }
 0x369   : > { %v2098_v56 = vrot.slane %v2097_v36, 1  ;;  %v2198_v2 = vadd.f32 %v2197_v55, %v2196_v52 }
 0x36b   : > { %v2099_v4 = vadd.f32 %v2098_v56, %v2097_v36  ;;  %v2199_v3 = vrot.slane %v2198_v2, 1 }
 0x36d   : > { %v2218_v6 = vmul.f32 %v3105_v51, %v2099_v4  ;;  %v2207_v58 = vmul.f32 %v2206_v59, %v2099_v4  ;;  %v2200_v8 = vadd.f32 %v2199_v3, %v2198_v2 }
 0x36f   : > { %v2219_v25 = vsel %vm614_vm2, %v2218_v6, 0.0  ;;  %v2208_v10 = vsel %vm614_vm2, %v2207_v58, 0.0  ;;  %v2229_v17 = vmul.f32 %v2206_v59, %v2200_v8  ;;  %v2240_v0 = vmul.f32 %v3105_v51, %v2200_v8 }
 0x370   : > { %2220 = vadd.xlane.f32.xlu1 %v2219_v25  ;;  %2209 = vadd.xlane.f32.xlu0 %v2208_v10 }
 0x371   : > { %v2230_v43 = vsel %vm614_vm2, %v2229_v17, 0.0  ;;  %v2241_v11 = vsel %vm614_vm2, %v2240_v0, 0.0 }
 0x374   : > { %2231 = vadd.xlane.f32.xlu0 %v2230_v43 }
 0x378   : > { %2242 = vadd.xlane.f32.xlu0 %v2241_v11 }
 0x3fd   : > { %v2221_v26 = vpop.xlane.xlu1 %2220  ;;  %v2210_v15 = vpop.xlane.xlu0 %2209 }
 0x3fe   : > { %v2222_v30 = vrot.slane %v2221_v26, 4  ;;  %v2211_v49 = vrot.slane %v2210_v15, 4 }
 0x400   : > { %v2223_v34 = vadd.f32 %v2222_v30, %v2221_v26  ;;  %v2212_v7 = vadd.f32 %v2211_v49, %v2210_v15 }
 0x401   : > { %v2232_v28 = vpop.xlane.xlu0 %2231 }
 0x402   : > { %v2224_v29 = vrot.slane %v2223_v34, 2  ;;  %v2213_v48 = vrot.slane %v2212_v7, 2  ;;  %v2233_v39 = vrot.slane %v2232_v28, 4 }
 0x404   : > { %v2225_v46 = vadd.f32 %v2224_v29, %v2223_v34  ;;  %v2234_v54 = vadd.f32 %v2233_v39, %v2232_v28  ;;  %v2214_v52 = vadd.f32 %v2213_v48, %v2212_v7  ;;  %v3538_v7 = vld [vmem:[#allocation15] sm:$0xff]   ;;  %v2316_v28 = vshrl.u32 %v2201_v18, 7 }
 0x405   : > { %v2243_v36 = vpop.xlane.xlu0 %2242  ;;  %3340 = vmatprep.subr.bf16.mxu1 %v3538_v7 }
 0x406   : > { %v2235_v55 = vrot.slane %v2234_v54, 2  ;;  %v2244_v51 = vrot.slane %v2243_v36, 4  ;;  %v2215_v56 = vrot.slane %v2214_v52, 1  ;;  %v2226_v59 = vrot.slane %v2225_v46, 1  ;;  %3341 = vmatpush3.bf16.msra.mxu1 %v3538_v7 }
 0x407   : > { %v2317_v29 = vsub.s32 0, %v2316_v28 }
 0x408   : > { %v2245_v2 = vadd.f32 %v2244_v51, %v2243_v36  ;;  %v2216_v4 = vadd.f32 %v2215_v56, %v2214_v52  ;;  %v2227_v3 = vadd.f32 %v2226_v59, %v2225_v46  ;;  %v2236_v6 = vadd.f32 %v2235_v55, %v2234_v54  ;;  %v2313_v55 = vld [vmem:[#allocation12] sm:$0x1] }
 0x40a   : > { %v2246_v58 = vrot.slane %v2245_v2, 2  ;;  %3392 = vpush %v2216_v4  ;;  %v2237_v8 = vrot.slane %v2236_v6, 1 }
 0x40b   : > { %3394 = vpush %v2227_v3 }
 0x40c   : > { %v2247_v25 = vadd.f32 %v2246_v58, %v2245_v2  ;;  %v2238_v10 = vadd.f32 %v2237_v8, %v2236_v6 }
 0x40e   : > { %3396 = vpush %v2238_v10  ;;  %v2248_v17 = vrot.slane %v2247_v25, 1 }
 0x410   : > { %v2249_v43 = vadd.f32 %v2248_v17, %v2247_v25 }
 0x412   : > { %3398 = vpush %v2249_v43 }
 0x43b   : > { %s3393_s5 = spop %3392 }
 0x43c   : > { %s2253_s25 = smul.f32 0.00048828125, %s3393_s5  ;;  %s3395_s26 = spop %3394 }
 0x43d   : > { %s2256_s14 = smul.f32 0.00048828125, %s3395_s26  ;;  %s5603_s5 = scalar_lea.vmem [#allocation18], %s3078_s22 }
 0x43e   : > { %v2268_v0 = vstv %s2253_s25  ;;  %s2260_s19 = smul.f32 %s2253_s25, %s2253_s25  ;;  %s3164_s25 = sshll.u32 %s4075_s11, 12 }
 0x43f   : > { %v2267_v11 = vstv %s2256_s14  ;;  %s3397_s16 = spop %3396  ;;  %s2265_s12 = smul.f32 %s2256_s14, %s2256_s14 }
 0x440   : > { %v5264_v26 = vsel %vm2203_vm10, %v2267_v11, %v2268_v0  ;;  %s2259_s6 = smul.f32 0.00048828125, %s3397_s16  ;;  %s2901_s26 = sshll.u32 %s5603_s5, 4  ;;  %s5699_s26 = int_to_ptr.vmem [resolvable:$true] %s2901_s26 }
 0x441   : > { %v2281_v48 = vsub.f32 %v4972_v62, %v5264_v26  ;;  %v2282_v39 = vsub.f32 %v4975_v32, %v5264_v26  ;;  %v2283_v46 = vsub.f32 %v4978_v33, %v5264_v26  ;;  %v2284_v54 = vsub.f32 %v4991_v38, %v5264_v26  ;;  %s5697_s16 = scalar_lea.hbm %s5758_s8, %s3164_s25  ;;  %s2888_s11 = scalar_lea.sflag [#allocation6], %s4360_s3 }
 0x442   : > { %s2261_s4 = ssub.f32 %s2259_s6, %s2260_s19  ;;  %v2285_v52 = vsub.f32 %v4998_v44, %v5264_v26  ;;  %v2286_v36 = vsub.f32 %v5010_v53, %v5264_v26  ;;  %v2287_v18 = vsub.f32 %v5018_v63, %v5264_v26  ;;  %v2288_v62 = vsub.f32 %v5028_v16, %v5264_v26  ;;  %s3899_s6 = scalar_lea.vmem %s5699_s26, 4096 }
 0x443   : > { %s3399_s13 = spop %3398  ;;  %v2289_v32 = vsub.f32 %v5034_v1, %v5264_v26  ;;  %v2290_v33 = vsub.f32 %v5045_v61, %v5264_v26  ;;  %v2291_v38 = vsub.f32 %v5052_v31, %v5264_v26  ;;  %v2292_v44 = vsub.f32 %v5063_v40, %v5264_v26  ;;  %p3900_p4 = scmp.ne.s32.totalorder %s5699_s26, %s3899_s6 }
 0x444   : > { %s2264_s21 = smul.f32 0.00048828125, %s3399_s13  ;;  %s2274_s9 = sadd.f32 1e-05, %s2261_s4  ;;  %v2293_v63 = vsub.f32 %v5070_v47, %v5264_v26  ;;  %v2294_v16 = vsub.f32 %v5083_v23, %v5264_v26  ;;  %v2295_v1 = vsub.f32 %v5090_v57, %v5264_v26  ;;  %v2296_v61 = vsub.f32 %v5105_v20, %v5264_v26 }
 0x445   : > { %v2297_v31 = vsub.f32 %v5112_v13, %v5264_v26  ;;  %v2298_v40 = vsub.f32 %v5123_v37, %v5264_v26  ;;  %v2299_v47 = vsub.f32 %v5130_v41, %v5264_v26  ;;  %v2300_v23 = vsub.f32 %v5141_v21, %v5264_v26  ;;  %p3901_p5 = pnand %p3900_p4, %p5805_p10  ;;  %s4006_s4 = smov [#allocation18]  }
 0x446   : > { %s2266_s20 = ssub.f32 %s2264_s21, %s2265_s12  ;;  %v2275_v15 = vstv %s2274_s9  ;;  %v2301_v57 = vsub.f32 %v5147_v42, %v5264_v26  ;;  %v2302_v20 = vsub.f32 %v5158_v19, %v5264_v26  ;;  %v2303_v13 = vsub.f32 %v5164_v24, %v5264_v26  ;;  %s3903_s12 = sshll.u32 %s4006_s4, 4  ;;  %s3904_s12 = int_to_ptr.vmem [resolvable:$false] %s3903_s12 }
 0x447   : > { %v2304_v37 = vsub.f32 %v5174_v27, %v5264_v26  ;;  %v2305_v35 = vsub.f32 %v5184_v50, %v5264_v26  ;;  %v2306_v41 = vsub.f32 %v5193_v5, %v5264_v26  ;;  %v2307_v21 = vsub.f32 %v5198_v12, %v5264_v26  ;;  %p3902_p7 = pneg %p3901_p5  ;;  %s3905_s13 = scalar_lea.vmem %s3904_s12, 8192 }
 0x448   : > { %s2270_s23 = sadd.f32 1e-05, %s2266_s20  ;;  %v2308_v42 = vsub.f32 %v5208_v22, %v5264_v26  ;;  %v2309_v19 = vsub.f32 %v5214_v60, %v5264_v26  ;;  %v2310_v24 = vsub.f32 %v5224_v45, %v5264_v26  ;;  %v2311_v27 = vsub.f32 %v5236_v9, %v5264_v26  ;;  %p3906_p9 = scmp.lt.s32.totalorder %s5699_s26, %s3904_s12 }
 0x449   : > { %v2312_v50 = vsub.f32 %v5243_v14, %v5264_v26  ;;  %p3907_p8 = scmp.lt.s32.totalorder %s3905_s13, %s3899_s6 }
 0x44a   : > { %v2271_v30 = vstv %s2270_s23 }
 0x44b   : > { %3539 = vrsqrt.f32 %v2271_v30  ;;  %p3908_p11 = por %p3907_p8, %p3906_p9 }
 0x44c   : > { %3541 = vrsqrt.f32 %v2275_v15 }
 0x44d   : > { %p3909_p0 = pnand %p3908_p11, %p3902_p7 }
 0x455   : > { %v3540_v49 = vpop.eup %3539 }
 0x456   : > { %v3542_v34 = vpop.eup %3541  ;;  %3400 = vpush %v3540_v49 }
 0x457   : > { %3402 = vpush %v3542_v34 }
 0x487   : > { %s3401_s2 = spop %3400 }
 0x488   : > { %v2278_v53 = vstv %s3401_s2  ;;  %s3403_s24 = spop %3402 }
 0x489   : > { %v2279_v51 = vstv %s3403_s24 }
 0x48a   : > { %v2280_v56 = vsel %vm2203_vm10, %v2278_v53, %v2279_v51 }
 0x48b   : > { %v2314_v59 = vmul.f32 %v2313_v55, %v2280_v56 }
 0x48d   : > { %v2318_v2 = vrot.slane %v2314_v59, %v2317_v29 }
 0x48f   : > { %v2319_v5 = vmul.f32 %v2318_v2, %v2281_v48  ;;  %v2320_v4 = vmul.f32 %v2318_v2, %v2282_v39  ;;  %v2321_v3 = vmul.f32 %v2318_v2, %v2283_v46  ;;  %v2322_v12 = vmul.f32 %v2318_v2, %v2284_v54 }
 0x490   : > { %v2323_v6 = vmul.f32 %v2318_v2, %v2285_v52  ;;  %v2324_v58 = vmul.f32 %v2318_v2, %v2286_v36  ;;  %v2325_v22 = vmul.f32 %v2318_v2, %v2287_v18  ;;  %v2326_v8 = vmul.f32 %v2318_v2, %v2288_v62  ;;  %v5357_v18 = vld [vmem:[#allocation13] ss:$0 sm:$0xff] }
 0x491   : > { %v2327_v25 = vmul.f32 %v2318_v2, %v2289_v32  ;;  %v2328_v10 = vmul.f32 %v2318_v2, %v2290_v33  ;;  %v2329_v60 = vmul.f32 %v2318_v2, %v2291_v38  ;;  %v2330_v17 = vmul.f32 %v2318_v2, %v2292_v44 }
 0x492   : > { %v2331_v43 = vmul.f32 %v2318_v2, %v2293_v63  ;;  %v2332_v45 = vmul.f32 %v2318_v2, %v2294_v16  ;;  %v2333_v0 = vmul.f32 %v2318_v2, %v2295_v1  ;;  %v2334_v11 = vmul.f32 %v2318_v2, %v2296_v61 }
 0x493   : > { %v2335_v9 = vmul.f32 %v2318_v2, %v2297_v31  ;;  %v2336_v15 = vmul.f32 %v2318_v2, %v2298_v40  ;;  %v2337_v30 = vmul.f32 %v2318_v2, %v2299_v47  ;;  %v2338_v14 = vmul.f32 %v2318_v2, %v2300_v23 }
 0x494   : > { %v5333_v26 = vmul.f32 %v2318_v2, %v2301_v57  ;;  %v5335_v49 = vmul.f32 %v2318_v2, %v2302_v20  ;;  %v5337_v34 = vmul.f32 %v2318_v2, %v2303_v13  ;;  %v5339_v7 = vmul.f32 %v2318_v2, %v2304_v37 }
 0x495   : > { %v5341_v28 = vmul.f32 %v2318_v2, %v2305_v35  ;;  %v5343_v29 = vmul.f32 %v2318_v2, %v2306_v41  ;;  %v5345_v48 = vmul.f32 %v2318_v2, %v2307_v21  ;;  %v5347_v39 = vmul.f32 %v2318_v2, %v2308_v42 }
 0x496   : > { %v5349_v46 = vmul.f32 %v2318_v2, %v2309_v19  ;;  %v5351_v54 = vmul.f32 %v2318_v2, %v2310_v24  ;;  %v5353_v52 = vmul.f32 %v2318_v2, %v2311_v27  ;;  %v5355_v36 = vmul.f32 %v2318_v2, %v2312_v50 }
 0x497   : > { %v5360_v62 = vadd.f32 %v5357_v18, %v2319_v5  ;;  %v5363_v32 = vadd.f32 %v5357_v18, %v2320_v4  ;;  %v5366_v33 = vadd.f32 %v5357_v18, %v2321_v3  ;;  %v5369_v38 = vadd.f32 %v5357_v18, %v2322_v12 }
 0x498   : > { %v5372_v44 = vadd.f32 %v5357_v18, %v2323_v6  ;;  %v5375_v53 = vadd.f32 %v5357_v18, %v2324_v58  ;;  %v5378_v55 = vadd.f32 %v5357_v18, %v2325_v22  ;;  %v5384_v51 = vadd.f32 %v5357_v18, %v2326_v8 }
 0x499   : > { %v3107_v63 = vmul.f32 -1.442695, %v5360_v62  ;;  %v3108_v16 = vmul.f32 -1.442695, %v5363_v32  ;;  %v3109_v1 = vmul.f32 -1.442695, %v5366_v33  ;;  %v5388_v31 = vadd.f32 %v5357_v18, %v2327_v25 }
 0x49a   : > { %v3110_v61 = vmul.f32 -1.442695, %v5369_v38  ;;  %v3111_v40 = vmul.f32 -1.442695, %v5372_v44  ;;  %v5392_v56 = vadd.f32 %v5357_v18, %v2328_v10  ;;  %v3112_v47 = vmul.f32 -1.442695, %v5375_v53 }
 0x49b   : > { %3543 = vpow2.f32 %v3107_v63  ;;  %v5396_v23 = vadd.f32 %v5357_v18, %v2329_v60  ;;  %v3113_v57 = vmul.f32 -1.442695, %v5378_v55  ;;  %v5400_v59 = vadd.f32 %v5357_v18, %v2330_v17 }
 0x49c   : > { %3545 = vpow2.f32 %v3108_v16  ;;  %v3114_v20 = vmul.f32 -1.442695, %v5384_v51  ;;  %v5404_v13 = vadd.f32 %v5357_v18, %v2331_v43  ;;  %v3115_v37 = vmul.f32 -1.442695, %v5388_v31 }
 0x49d   : > { %3547 = vpow2.f32 %v3109_v1  ;;  %v5408_v35 = vadd.f32 %v5357_v18, %v2332_v45  ;;  %v3116_v41 = vmul.f32 -1.442695, %v5392_v56  ;;  %v5412_v21 = vadd.f32 %v5357_v18, %v2333_v0 }
 0x49e   : > { %3549 = vpow2.f32 %v3110_v61  ;;  %v3117_v42 = vmul.f32 -1.442695, %v5396_v23  ;;  %v5416_v2 = vadd.f32 %v5357_v18, %v2334_v11  ;;  %v3118_v19 = vmul.f32 -1.442695, %v5400_v59 }
 0x49f   : > { %3551 = vpow2.f32 %v3111_v40  ;;  %v5420_v24 = vadd.f32 %v5357_v18, %v2335_v9  ;;  %v3119_v27 = vmul.f32 -1.442695, %v5404_v13  ;;  %v5424_v50 = vadd.f32 %v5357_v18, %v2336_v15 }
 0x4a0   : > { %3553 = vpow2.f32 %v3112_v47  ;;  %v3120_v5 = vmul.f32 -1.442695, %v5408_v35  ;;  %v5430_v3 = vadd.f32 %v5357_v18, %v2337_v30  ;;  %v3121_v12 = vmul.f32 -1.442695, %v5412_v21 }
 0x4a1   : > { %3555 = vpow2.f32 %v3113_v57  ;;  %v5436_v58 = vadd.f32 %v5357_v18, %v2338_v14  ;;  %v3122_v22 = vmul.f32 -1.442695, %v5416_v2  ;;  %v5443_v25 = vadd.f32 %v5357_v18, %v5333_v26 }
 0x4a2   : > { %3557 = vpow2.f32 %v3114_v20  ;;  %v3123_v10 = vmul.f32 -1.442695, %v5420_v24  ;;  %v5450_v17 = vadd.f32 %v5357_v18, %v5335_v49  ;;  %v3124_v43 = vmul.f32 -1.442695, %v5424_v50 }
 0x4a3   : > { %3559 = vpow2.f32 %v3115_v37  ;;  %v5457_v0 = vadd.f32 %v5357_v18, %v5337_v34  ;;  %v3125_v11 = vmul.f32 -1.442695, %v5430_v3  ;;  %v5464_v15 = vadd.f32 %v5357_v18, %v5339_v7 }
 0x4a4   : > { %3561 = vpow2.f32 %v3116_v41  ;;  %v3126_v30 = vmul.f32 -1.442695, %v5436_v58  ;;  %v5469_v26 = vadd.f32 %v5357_v18, %v5341_v28  ;;  %v3127_v49 = vmul.f32 -1.442695, %v5443_v25 }
 0x4a5   : > { %v5427_v4 = vpop.eup %3543  ;;  %3563 = vpow2.f32 %v3117_v42  ;;  %v5474_v63 = vadd.f32 %v5357_v18, %v5343_v29  ;;  %v3128_v7 = vmul.f32 -1.442695, %v5450_v17  ;;  %v5479_v1 = vadd.f32 %v5357_v18, %v5345_v48 }
 0x4a6   : > { %v5433_v6 = vpop.eup %3545  ;;  %3565 = vpow2.f32 %v3118_v19  ;;  %v3129_v28 = vmul.f32 -1.442695, %v5457_v0  ;;  %v5484_v40 = vadd.f32 %v5357_v18, %v5347_v39  ;;  %v3130_v29 = vmul.f32 -1.442695, %v5464_v15 }
 0x4a7   : > { %v5439_v8 = vpop.eup %3547  ;;  %3567 = vpow2.f32 %v3119_v27  ;;  %v5489_v57 = vadd.f32 %v5357_v18, %v5349_v46  ;;  %v3131_v48 = vmul.f32 -1.442695, %v5469_v26  ;;  %v5494_v37 = vadd.f32 %v5357_v18, %v5351_v54 }
 0x4a8   : > { %v5446_v60 = vpop.eup %3549  ;;  %3569 = vpow2.f32 %v3120_v5  ;;  %v3132_v39 = vmul.f32 -1.442695, %v5474_v63  ;;  %v5499_v42 = vadd.f32 %v5357_v18, %v5353_v52  ;;  %v3133_v46 = vmul.f32 -1.442695, %v5479_v1 }
 0x4a9   : > { %v5453_v45 = vpop.eup %3551  ;;  %3571 = vpow2.f32 %v3121_v12  ;;  %5799 = vst [vmem:[#allocation26_spill] sm:$0xff] %v5494_v37  ;;  %v5504_v27 = vadd.f32 %v5357_v18, %v5355_v36  ;;  %v3134_v54 = vmul.f32 -1.442695, %v5484_v40  ;;  %v3135_v12 = vmul.f32 -1.442695, %v5489_v57 }
 0x4aa   : > { %v5460_v9 = vpop.eup %3553  ;;  %3573 = vpow2.f32 %v3122_v22  ;;  %5800 = vst [vmem:[#allocation27_spill] sm:$0xff] %v5499_v42  ;;  %v3136_v52 = vmul.f32 -1.442695, %v5494_v37 }
 0x4ab   : > { %v3556_v14 = vpop.eup %3555  ;;  %3575 = vpow2.f32 %v3123_v10  ;;  %5801 = vst [vmem:[#allocation28_spill] sm:$0xff] %v5504_v27  ;;  %v3138_v36 = vmul.f32 -1.442695, %v5504_v27 }
 0x4ac   : > { %v3558_v34 = vpop.eup %3557  ;;  %3577 = vpow2.f32 %v3124_v43  ;;  %v3137_v43 = vmul.f32 -1.442695, %v5499_v42 }
 0x4ad   : > { %v3560_v16 = vpop.eup %3559  ;;  %3579 = vpow2.f32 %v3125_v11 }
 0x4ae   : > { %v3562_v61 = vpop.eup %3561  ;;  %3581 = vpow2.f32 %v3126_v30  ;;  %v2486_v30 = vadd.f32 1.0, %v5427_v4  ;;  %v2491_v4 = vadd.f32 1.0, %v5460_v9 }
 0x4af   : > { %v3564_v47 = vpop.eup %3563  ;;  %3583 = vpow2.f32 %v3127_v49 }
 0x4b0   : > { %v3566_v20 = vpop.eup %3565  ;;  %3585 = vpow2.f32 %v3128_v7  ;;  %v2487_v7 = vadd.f32 1.0, %v5433_v6  ;;  %v2496_v9 = vadd.f32 1.0, %v3564_v47 }
 0x4b1   : > { %v3568_v41 = vpop.eup %3567  ;;  %3587 = vpow2.f32 %v3129_v28 }
 0x4b2   : > { %v3570_v19 = vpop.eup %3569  ;;  %3589 = vpow2.f32 %v3130_v29  ;;  %v2488_v29 = vadd.f32 1.0, %v5439_v8 }
 0x4b3   : > { %v3572_v5 = vpop.eup %3571  ;;  %3591 = vpow2.f32 %v3131_v48 }
 0x4b4   : > { %v3574_v22 = vpop.eup %3573  ;;  %3593 = vpow2.f32 %v3132_v39  ;;  %v2489_v39 = vadd.f32 1.0, %v5446_v60  ;;  %v2494_v60 = vadd.f32 1.0, %v3560_v16  ;;  %v2499_v16 = vadd.f32 1.0, %v3570_v19 }
 0x4b5   : > { %v3576_v10 = vpop.eup %3575  ;;  %3595 = vpow2.f32 %v3133_v46  ;;  %v2500_v42 = vadd.f32 1.0, %v3572_v5 }
 0x4b6   : > { %v3578_v11 = vpop.eup %3577  ;;  %3597 = vpow2.f32 %v3134_v54  ;;  %v2490_v54 = vadd.f32 1.0, %v5453_v45  ;;  %v2495_v45 = vadd.f32 1.0, %v3562_v61  ;;  %v2502_v37 = vadd.f32 1.0, %v3576_v10 }
 0x4b7   : > { %v3580_v18 = vpop.eup %3579  ;;  %3599 = vpow2.f32 %v3135_v12 }
 0x4b8   : > { %v3582_v49 = vpop.eup %3581  ;;  %3601 = vpow2.f32 %v3136_v52  ;;  %v2492_v52 = vadd.f32 1.0, %v3556_v14  ;;  %v2497_v14 = vadd.f32 1.0, %v3566_v20 }
 0x4b9   : > { %v3584_v28 = vpop.eup %3583  ;;  %3603 = vpow2.f32 %v3137_v43  ;;  %v2493_v43 = vadd.f32 1.0, %v3558_v34  ;;  %v2498_v34 = vadd.f32 1.0, %v3568_v41  ;;  %v2503_v41 = vadd.f32 1.0, %v3578_v11 }
 0x4ba   : > { %v5514_v48 = vpop.eup %3585  ;;  %3605 = vpow2.f32 %v3138_v36 }
 0x4bb   : > { %v5517_v46 = vpop.eup %3587  ;;  %3607 = vrcp.f32 %v2486_v30 }
 0x4bc   : > { %v5520_v12 = vpop.eup %3589  ;;  %3609 = vrcp.f32 %v2487_v7 }
 0x4bd   : > { %v5523_v6 = vpop.eup %3591  ;;  %3611 = vrcp.f32 %v2488_v29 }
 0x4be   : > { %v5525_v8 = vpop.eup %3593  ;;  %3613 = vrcp.f32 %v2489_v39 }
 0x4bf   : > { %v5527_v36 = vpop.eup %3595  ;;  %3615 = vrcp.f32 %v2490_v54 }
 0x4c0   : > { %v5529_v27 = vpop.eup %3597  ;;  %3617 = vrcp.f32 %v2491_v4  ;;  %v2501_v4 = vadd.f32 1.0, %v3574_v22 }
 0x4c1   : > { %v5531_v30 = vpop.eup %3599  ;;  %3619 = vrcp.f32 %v2492_v52 }
 0x4c2   : > { %v5533_v7 = vpop.eup %3601  ;;  %3621 = vrcp.f32 %v2493_v43 }
 0x4c3   : > { %v5535_v29 = vpop.eup %3603  ;;  %3623 = vrcp.f32 %v2494_v60 }
 0x4c4   : > { %v5537_v39 = vpop.eup %3605  ;;  %3625 = vrcp.f32 %v2495_v45  ;;  %v2504_v45 = vadd.f32 1.0, %v3580_v18  ;;  %v2507_v18 = vadd.f32 1.0, %v5514_v48  ;;  %v2510_v48 = vadd.f32 1.0, %v5523_v6 }
 0x4c5   : > { %v3608_v54 = vpop.eup %3607  ;;  %3627 = vrcp.f32 %v2496_v9 }
 0x4c6   : > { %v3610_v61 = vpop.eup %3609  ;;  %3629 = vrcp.f32 %v2497_v14  ;;  %v2582_v47 = vmul.f32 %v3608_v54, %v5360_v62  ;;  %v2505_v14 = vadd.f32 1.0, %v3582_v49  ;;  %v2508_v49 = vadd.f32 1.0, %v5517_v46 }
 0x4c7   : > { %v3612_v52 = vpop.eup %3611  ;;  %3631 = vrcp.f32 %v2498_v34  ;;  %v2583_v20 = vmul.f32 %v3610_v61, %v5363_v32  ;;  %v2506_v34 = vadd.f32 1.0, %v3584_v28 }
 0x4c8   : > { %v3614_v43 = vpop.eup %3613  ;;  %3633 = vrcp.f32 %v2499_v16  ;;  %v2584_v60 = vmul.f32 %v3612_v52, %v5366_v33  ;;  %v2509_v16 = vadd.f32 1.0, %v5520_v12  ;;  %v2512_v12 = vadd.f32 1.0, %v5527_v36 }
 0x4c9   : > { %v3616_v19 = vpop.eup %3615  ;;  %3635 = vrcp.f32 %v2500_v42  ;;  %v2585_v5 = vmul.f32 %v3614_v43, %v5369_v38  ;;  %v2614_v9 = vpack.c.bf16 %v2583_v20, %v2582_v47  ;;  %v2513_v20 = vadd.f32 1.0, %v5529_v27 }
 0x4ca   : > { %v3618_v22 = vpop.eup %3617  ;;  %3637 = vrcp.f32 %v2501_v4  ;;  %v2586_v62 = vmul.f32 %v3616_v19, %v5372_v44  ;;  %v2511_v4 = vadd.f32 1.0, %v5525_v8  ;;  %v2515_v36 = vadd.f32 1.0, %v5533_v7 }
 0x4cb   : > { %v3620_v10 = vpop.eup %3619  ;;  %3639 = vrcp.f32 %v2502_v37  ;;  %v2615_v32 = vpack.c.bf16 %v2585_v5, %v2584_v60  ;;  %3342 = vmatprep.mubr.msk.bf16.mxu1 %vm604_vm0, %v2614_v9  ;;  %v2587_v11 = vmul.f32 %v3618_v22, %v5375_v53  ;;  %v2517_v5 = vadd.f32 1.0, %v5537_v39 }
 0x4cc   : > { %v3622_v33 = vpop.eup %3621  ;;  %3641 = vrcp.f32 %v2503_v41  ;;  %v2588_v38 = vmul.f32 %v3620_v10, %v5378_v55  ;;  %v2514_v41 = vadd.f32 1.0, %v5531_v30 }
 0x4cd   : > { %v3624_v42 = vpop.eup %3623  ;;  %3643 = vrcp.f32 %v2504_v45  ;;  %3343 = vmatmul.mubr.msk.bf16.vlgmr.msra.gmra.mrb[16].mxu1 %vm604_vm0, %v2615_v32  ;;  %v2616_v44 = vpack.c.bf16 %v2587_v11, %v2586_v62  ;;  %v2589_v37 = vmul.f32 %v3622_v33, %v5384_v51  ;;  %v2516_v45 = vadd.f32 1.0, %v5535_v29 }
 0x4ce   : > { %v3626_v28 = vpop.eup %3625  ;;  %3645 = vrcp.f32 %v2505_v14  ;;  %v2590_v53 = vmul.f32 %v3624_v42, %v5388_v31 }
 0x4cf   : > { %v3628_v54 = vpop.eup %3627  ;;  %3647 = vrcp.f32 %v2506_v34  ;;  %3346 = vmatprep.mubr.msk.bf16.mxu1 %vm604_vm0, %v2616_v44  ;;  %v2617_v55 = vpack.c.bf16 %v2589_v37, %v2588_v38  ;;  %v2591_v46 = vmul.f32 %v3626_v28, %v5392_v56 }
 0x4d0   : > { %v3630_v61 = vpop.eup %3629  ;;  %3649 = vrcp.f32 %v2507_v18  ;;  %v2592_v51 = vmul.f32 %v3628_v54, %v5396_v23 }
 0x4d1   : > { %v3632_v47 = vpop.eup %3631  ;;  %3651 = vrcp.f32 %v2508_v49  ;;  %v2618_v31 = vpack.c.bf16 %v2591_v46, %v2590_v53  ;;  %v2593_v52 = vmul.f32 %v3630_v61, %v5400_v59  ;;  %v5803_v46 = vld [vmem:[#allocation27_spill] sm:$0xff] }
 0x4d2   : > { %v3634_v6 = vpop.eup %3633  ;;  %3653 = vrcp.f32 %v2509_v16  ;;  %v2594_v43 = vmul.f32 %v3632_v47, %v5404_v13 }
 0x4d3   : > { %v3636_v56 = vpop.eup %3635  ;;  %3655 = vrcp.f32 %v2510_v48  ;;  %v2619_v8 = vpack.c.bf16 %v2593_v52, %v2592_v51  ;;  %v2595_v23 = vmul.f32 %v3634_v6, %v5408_v35  ;;  %v5802_v48 = vld [vmem:[#allocation26_spill] sm:$0xff] }
 0x4d4   : > { %v3638_v60 = vpop.eup %3637  ;;  %3657 = vrcp.f32 %v2511_v4  ;;  %v2596_v19 = vmul.f32 %v3636_v56, %v5412_v21  ;;  %v5804_v4 = vld [vmem:[#allocation28_spill] sm:$0xff] }
 0x4d5   : > { %v3640_v59 = vpop.eup %3639  ;;  %3659 = vrcp.f32 %v2512_v12  ;;  %3347 = vmatmul.mubr.msk.bf16.gmra.mrb[20].mxu1 %vm604_vm0, %v2617_v55  ;;  %v2620_v13 = vpack.c.bf16 %v2595_v23, %v2594_v43  ;;  %v2597_v27 = vmul.f32 %v3638_v60, %v5416_v2 }
 0x4d6   : > { %v3642_v30 = vpop.eup %3641  ;;  %3661 = vrcp.f32 %v2513_v20  ;;  %3350 = vmatprep.mubr.msk.bf16.mxu1 %vm604_vm0, %v2618_v31  ;;  %v2598_v35 = vmul.f32 %v3640_v59, %v5420_v24 }
 0x4d7   : > { %v3644_v7 = vpop.eup %3643  ;;  %3663 = vrcp.f32 %v2514_v41  ;;  %v2621_v21 = vpack.c.bf16 %v2597_v27, %v2596_v19  ;;  %v2599_v9 = vmul.f32 %v3642_v30, %v5424_v50 }
 0x4d8   : > { %v3646_v29 = vpop.eup %3645  ;;  %3665 = vrcp.f32 %v2515_v36  ;;  %v2600_v22 = vmul.f32 %v3644_v7, %v5430_v3 }
 0x4d9   : > { %v3648_v14 = vpop.eup %3647  ;;  %3667 = vrcp.f32 %v2516_v45  ;;  %v2622_v2 = vpack.c.bf16 %v2599_v9, %v2598_v35  ;;  %v2601_v62 = vmul.f32 %v3646_v29, %v5436_v58 }
 0x4da   : > { %v3650_v39 = vpop.eup %3649  ;;  %3669 = vrcp.f32 %v2517_v5  ;;  %v2602_v10 = vmul.f32 %v3648_v14, %v5443_v25 }
 0x4db   : > { %v3652_v34 = vpop.eup %3651  ;;  %v2623_v24 = vpack.c.bf16 %v2601_v62, %v2600_v22  ;;  %v2603_v32 = vmul.f32 %v3650_v39, %v5450_v17 }
 0x4dc   : > { %v3654_v11 = vpop.eup %3653  ;;  %v2604_v50 = vmul.f32 %v3652_v34, %v5457_v0 }
 0x4dd   : > { %v3656_v33 = vpop.eup %3655  ;;  %3351 = vmatmul.mubr.msk.bf16.gmra.mrb[24].mxu1 %vm604_vm0, %v2619_v8  ;;  %v2624_v3 = vpack.c.bf16 %v2603_v32, %v2602_v10  ;;  %v2605_v18 = vmul.f32 %v3654_v11, %v5464_v15 }
 0x4de   : > { %v3658_v38 = vpop.eup %3657  ;;  %3354 = vmatprep.mubr.msk.bf16.mxu1 %vm604_vm0, %v2620_v13  ;;  %v2606_v58 = vmul.f32 %v3656_v33, %v5469_v26 }
 0x4df   : > { %v3660_v42 = vpop.eup %3659  ;;  %v2625_v25 = vpack.c.bf16 %v2605_v18, %v2604_v50  ;;  %v2607_v49 = vmul.f32 %v3658_v38, %v5474_v63 }
 0x4e0   : > { %v3662_v44 = vpop.eup %3661  ;;  %v2608_v17 = vmul.f32 %v3660_v42, %v5479_v1 }
 0x4e1   : > { %v3664_v37 = vpop.eup %3663  ;;  %v2626_v0 = vpack.c.bf16 %v2607_v49, %v2606_v58  ;;  %v2609_v28 = vmul.f32 %v3662_v44, %v5484_v40  ;;  %v5599_v40 = vld [vmem:[#allocation16] ss:$0 sm:$0xff] }
 0x4e2   : > { %v3666_v16 = vpop.eup %3665  ;;  %v2610_v53 = vmul.f32 %v3664_v37, %v5489_v57 }
 0x4e3   : > { %v3668_v15 = vpop.eup %3667  ;;  %v2627_v54 = vpack.c.bf16 %v2609_v28, %v2608_v17  ;;  %v2611_v55 = vmul.f32 %v3666_v16, %v5802_v48 }
 0x4e4   : > { %v3670_v26 = vpop.eup %3669  ;;  %v2612_v61 = vmul.f32 %v3668_v15, %v5803_v46 }
 0x4e5   : > { %3355 = vmatmul.mubr.msk.bf16.gmra.mrb[28].mxu1 %vm604_vm0, %v2621_v21  ;;  %v2628_v63 = vpack.c.bf16 %v2611_v55, %v2610_v53  ;;  %v2613_v1 = vmul.f32 %v3670_v26, %v5804_v4 }
 0x4e6   : > { %3358 = vmatprep.mubr.msk.bf16.mxu1 %vm604_vm0, %v2622_v2 }
 0x4e7   : > { %v2629_v51 = vpack.c.bf16 %v2613_v1, %v2612_v61 }
 0x4ed   : > { %3359 = vmatmul.mubr.msk.bf16.gmra.mrb[32].mxu1 %vm604_vm0, %v2623_v24 }
 0x4ee   : > { %3362 = vmatprep.mubr.msk.bf16.mxu1 %vm604_vm0, %v2624_v3 }
 0x4f5   : > { %3363 = vmatmul.mubr.msk.bf16.gmra.mrb[36].mxu1 %vm604_vm0, %v2625_v25 }
 0x4f6   : > { %3366 = vmatprep.mubr.msk.bf16.mxu1 %vm604_vm0, %v2626_v0 }
 0x4fd   : > { %3367 = vmatmul.mubr.msk.bf16.gmra.mrb[40].mxu1 %vm604_vm0, %v2627_v54 }
 0x4fe   : > { %3370 = vmatprep.mubr.msk.bf16.mxu1 %vm604_vm0, %v2628_v63 }
 0x505   : > { %3371 = vmatmul.mubr.msk.bf16.gmra.mrb[44].mxu1 %vm604_vm0, %v2629_v51 }
 0x5a0   : > { %v3344_v57 = vpop.f32.mrb[16].mxu1 }
 0x5a1   : > { %v2736_v47 = vadd.f32 %v3344_v57, %v5599_v40  ;;  %v2727_v12 = vpop.f32.mrb[17].mxu1 }
 0x5a2   : > { %v2728_v31 = vadd.f32 %v5599_v40, %v2727_v12  ;;  %v3345_v52 = vpop.f32.mrb[18].mxu1 }
 0x5a3   : > { %2857 = vst.msk [vmem:[%s5603_s5 + $0x10] sm:$0xff] %vm2854_vm11, %v2736_v47  ;;  %v2739_v6 = vadd.f32 %v3345_v52, %v5599_v40  ;;  %v2730_v20 = vpop.f32.mrb[19].mxu1 }
 0x5a4   : > { %2855 = vst.msk [vmem:[%s5603_s5] sm:$0xff] %vm2854_vm11, %v2728_v31  ;;  %v2731_v43 = vadd.f32 %v5599_v40, %v2730_v20 }
 0x5a5   : > { %2858 = vst.msk [vmem:[%s5603_s5 + $0x18] sm:$0xff] %vm2854_vm11, %v2739_v6 }
 0x5a6   : > { %2856 = vst.msk [vmem:[%s5603_s5 + $0x8] sm:$0xff] %vm2854_vm11, %v2731_v43 }
 0x5a8   : > { %v3348_v56 = vpop.f32.mrb[20].mxu1 }
 0x5a9   : > { %v2752_v41 = vadd.f32 %v3348_v56, %v5599_v40  ;;  %v2743_v8 = vpop.f32.mrb[21].mxu1 }
 0x5aa   : > { %v2744_v23 = vadd.f32 %v5599_v40, %v2743_v8  ;;  %v3349_v60 = vpop.f32.mrb[22].mxu1 }
 0x5ab   : > { %2861 = vst.msk [vmem:[%s5603_s5 + $0x30] sm:$0xff] %vm2854_vm11, %v2752_v41  ;;  %v2755_v36 = vadd.f32 %v3349_v60, %v5599_v40  ;;  %v2746_v19 = vpop.f32.mrb[23].mxu1 }
 0x5ac   : > { %2859 = vst.msk [vmem:[%s5603_s5 + $0x20] sm:$0xff] %vm2854_vm11, %v2744_v23  ;;  %v2747_v59 = vadd.f32 %v5599_v40, %v2746_v19 }
 0x5ad   : > { %2862 = vst.msk [vmem:[%s5603_s5 + $0x38] sm:$0xff] %vm2854_vm11, %v2755_v36 }
 0x5ae   : > { %2860 = vst.msk [vmem:[%s5603_s5 + $0x28] sm:$0xff] %vm2854_vm11, %v2747_v59 }
 0x5b0   : > { %v3352_v45 = vpop.f32.mrb[24].mxu1 }
 0x5b1   : > { %v2768_v13 = vadd.f32 %v3352_v45, %v5599_v40  ;;  %v2759_v27 = vpop.f32.mrb[25].mxu1 }
 0x5b2   : > { %v2760_v30 = vadd.f32 %v5599_v40, %v2759_v27  ;;  %v3353_v5 = vpop.f32.mrb[26].mxu1 }
 0x5b3   : > { %2865 = vst.msk [vmem:[%s5603_s5 + $0x50] sm:$0xff] %vm2854_vm11, %v2768_v13  ;;  %v2771_v35 = vadd.f32 %v3353_v5, %v5599_v40  ;;  %v2762_v7 = vpop.f32.mrb[27].mxu1 }
 0x5b4   : > { %2863 = vst.msk [vmem:[%s5603_s5 + $0x40] sm:$0xff] %vm2854_vm11, %v2760_v30  ;;  %v2763_v21 = vadd.f32 %v5599_v40, %v2762_v7 }
 0x5b5   : > { %2866 = vst.msk [vmem:[%s5603_s5 + $0x58] sm:$0xff] %vm2854_vm11, %v2771_v35 }
 0x5b6   : > { %2864 = vst.msk [vmem:[%s5603_s5 + $0x48] sm:$0xff] %vm2854_vm11, %v2763_v21 }
 0x5b8   : > { %v3356_v9 = vpop.f32.mrb[28].mxu1 }
 0x5b9   : > { %v2784_v29 = vadd.f32 %v3356_v9, %v5599_v40  ;;  %v2775_v22 = vpop.f32.mrb[29].mxu1 }
 0x5ba   : > { %v2776_v14 = vadd.f32 %v5599_v40, %v2775_v22  ;;  %v3357_v2 = vpop.f32.mrb[30].mxu1 }
 0x5bb   : > { %2869 = vst.msk [vmem:[%s5603_s5 + $0x70] sm:$0xff] %vm2854_vm11, %v2784_v29  ;;  %v2787_v62 = vadd.f32 %v3357_v2, %v5599_v40  ;;  %v2778_v39 = vpop.f32.mrb[31].mxu1 }
 0x5bc   : > { %2867 = vst.msk [vmem:[%s5603_s5 + $0x60] sm:$0xff] %vm2854_vm11, %v2776_v14  ;;  %v2779_v10 = vadd.f32 %v5599_v40, %v2778_v39 }
 0x5bd   : > { %2870 = vst.msk [vmem:[%s5603_s5 + $0x78] sm:$0xff] %vm2854_vm11, %v2787_v62 }
 0x5be   : > { %2868 = vst.msk [vmem:[%s5603_s5 + $0x68] sm:$0xff] %vm2854_vm11, %v2779_v10 }
 0x5c0   : > { %v3360_v34 = vpop.f32.mrb[32].mxu1 }
 0x5c1   : > { %v2800_v24 = vadd.f32 %v3360_v34, %v5599_v40  ;;  %v2791_v32 = vpop.f32.mrb[33].mxu1 }
 0x5c2   : > { %v2792_v11 = vadd.f32 %v5599_v40, %v2791_v32  ;;  %v3361_v50 = vpop.f32.mrb[34].mxu1 }
 0x5c3   : > { %2873 = vst.msk [vmem:[%s5603_s5 + $0x90] sm:$0xff] %vm2854_vm11, %v2800_v24  ;;  %v2803_v33 = vadd.f32 %v3361_v50, %v5599_v40  ;;  %v2794_v3 = vpop.f32.mrb[35].mxu1 }
 0x5c4   : > { %2871 = vst.msk [vmem:[%s5603_s5 + $0x80] sm:$0xff] %vm2854_vm11, %v2792_v11  ;;  %v2795_v18 = vadd.f32 %v5599_v40, %v2794_v3 }
 0x5c5   : > { %2874 = vst.msk [vmem:[%s5603_s5 + $0x98] sm:$0xff] %vm2854_vm11, %v2803_v33 }
 0x5c6   : > { %2872 = vst.msk [vmem:[%s5603_s5 + $0x88] sm:$0xff] %vm2854_vm11, %v2795_v18 }
 0x5c8   : > { %v3364_v38 = vpop.f32.mrb[36].mxu1 }
 0x5c9   : > { %v2816_v58 = vadd.f32 %v3364_v38, %v5599_v40  ;;  %v2807_v42 = vpop.f32.mrb[37].mxu1 }
 0x5ca   : > { %v2808_v25 = vadd.f32 %v5599_v40, %v2807_v42  ;;  %v3365_v49 = vpop.f32.mrb[38].mxu1 }
 0x5cb   : > { %2877 = vst.msk [vmem:[%s5603_s5 + $0xb0] sm:$0xff] %vm2854_vm11, %v2816_v58  ;;  %v2819_v44 = vadd.f32 %v3365_v49, %v5599_v40  ;;  %v2810_v17 = vpop.f32.mrb[39].mxu1 }
 0x5cc   : > { %2875 = vst.msk [vmem:[%s5603_s5 + $0xa0] sm:$0xff] %vm2854_vm11, %v2808_v25  ;;  %v2811_v37 = vadd.f32 %v5599_v40, %v2810_v17 }
 0x5cd   : > { %2878 = vst.msk [vmem:[%s5603_s5 + $0xb8] sm:$0xff] %vm2854_vm11, %v2819_v44 }
 0x5ce   : > { %2876 = vst.msk [vmem:[%s5603_s5 + $0xa8] sm:$0xff] %vm2854_vm11, %v2811_v37 }
 0x5d0   : > { %v3368_v0 = vpop.f32.mrb[40].mxu1 }
 0x5d1   : > { %v2832_v28 = vadd.f32 %v3368_v0, %v5599_v40  ;;  %v2823_v16 = vpop.f32.mrb[41].mxu1 }
 0x5d2   : > { %v2824_v53 = vadd.f32 %v5599_v40, %v2823_v16  ;;  %v3369_v15 = vpop.f32.mrb[42].mxu1 }
 0x5d3   : > { %2881 = vst.msk [vmem:[%s5603_s5 + $0xd0] sm:$0xff] %vm2854_vm11, %v2832_v28  ;;  %v2835_v54 = vadd.f32 %v3369_v15, %v5599_v40  ;;  %v2826_v48 = vpop.f32.mrb[43].mxu1 }
 0x5d4   : > { %2879 = vst.msk [vmem:[%s5603_s5 + $0xc0] sm:$0xff] %vm2854_vm11, %v2824_v53  ;;  %v2827_v55 = vadd.f32 %v5599_v40, %v2826_v48 }
 0x5d5   : > { %2882 = vst.msk [vmem:[%s5603_s5 + $0xd8] sm:$0xff] %vm2854_vm11, %v2835_v54 }
 0x5d6   : > { %2880 = vst.msk [vmem:[%s5603_s5 + $0xc8] sm:$0xff] %vm2854_vm11, %v2827_v55 }
 0x5d8   : > { %v3372_v26 = vpop.f32.mrb[44].mxu1 }
 0x5d9   : > { %v2848_v46 = vadd.f32 %v3372_v26, %v5599_v40  ;;  %v2839_v61 = vpop.f32.mrb[45].mxu1 }
 0x5da   : > { %v2840_v63 = vadd.f32 %v5599_v40, %v2839_v61  ;;  %v3373_v4 = vpop.f32.mrb[46].mxu1 }
 0x5db   : > { %2885 = vst.msk [vmem:[%s5603_s5 + $0xf0] sm:$0xff] %vm2854_vm11, %v2848_v46  ;;  %v2851_v1 = vadd.f32 %v3373_v4, %v5599_v40  ;;  %v2842_v51 = vpop.f32.mrb[47].mxu1 }
 0x5dc   : > { %2883 = vst.msk [vmem:[%s5603_s5 + $0xe0] sm:$0xff] %vm2854_vm11, %v2840_v63  ;;  %v2843_v57 = vadd.f32 %v5599_v40, %v2842_v51 }
 0x5dd   : > { %2886 = vst.msk [vmem:[%s5603_s5 + $0xf8] sm:$0xff] %vm2854_vm11, %v2851_v1 }
 0x5de   : > { %2884 = vst.msk [vmem:[%s5603_s5 + $0xe8] sm:$0xff] %vm2854_vm11, %v2843_v57 }
 0x5df   : > { %3912 = shalt.err (!%p3909_p0)
}
 0x5e0   : > { %s3913_s21 = scalar_lea.hbm %s5697_s16, 4096  ;;  %s3917_s23 = scalar_lea.hbm %s5758_s8, 8192 }
 0x5e1   : > { %p3914_p12 = scmp.ne.s32.totalorder %s5697_s16, %s3913_s21  ;;  %p3918_p3 = scmp.lt.u32.totalorder %s5697_s16, %s5758_s8 }
 0x5e2   : > { %p3919_p6 = scmp.lt.u32.totalorder %s3917_s23, %s3913_s21  ;;  %p3921_p4 = scmp.lt.u32.totalorder %s3913_s21, %s5697_s16 }
 0x5e3   : > { %p3915_p13 = pnand %p3914_p12, %p5805_p10 }
 0x5e4   : > { %p3920_p2 = por %p3919_p6, %p3918_p3 }
 0x5e5   : > { %p3916_p1 = pneg %p3915_p13 }
 0x5e6   : > { %p3922_p5 = por %p3921_p4, %p3920_p2 }
 0x5e8   : > { %p3923_p7 = pnand %p3922_p5, %p3916_p1 }
 0x5ea   : > { %3926 = shalt.err (!%p3923_p7)
}
 0x5eb   : > { %s4007_s22 = smov 128   ;;  %s4008_s5 = smov 8  }
 0x5ec   : > { %3432 = dma.vmem_to_hbm [thread:$0]  (%p5805_p10), %s5699_s26, 4096, %s5697_s16, %s2888_s11, %s4007_s22, %s4007_s22, %s4008_s5  }
 0x5ed PF: > { %s2916_s25 = sand.u32 1, %s3973_s27   ;;  %p5806_p9 = scmp.ne.s32.totalorder %s5787_s17, 0 }
 0x5ee   : > { %p5807_p8 = scmp.ge.s32.totalorder %s3985_s30, 2  ;;  %s2917_s14 = scalar_lea.sflag [#allocation6], %s2916_s25 }
 0x5f0   : > { %p3461_p11 = pnand %p5807_p8, %p5806_p9 }
 0x5f2   : > { %3968 = dma.done.wait (!%p3461_p11), %s2917_s14, 4096  }
 0x5f3   : > { %3970 = vsyncadd (!%p3461_p11), %s2917_s14, 4294963200  ;;  %p27_p0 = scmp.ge.s32.totalorder %s4238_s15, 4   ;;  %s5808_s27 = smov %s3977_s28 }
 0x5f4   : > { %s5809_s28 = smov %s3981_s29  ;;  %s5810_s29 = smov %s4249_s10 }
 0x5f5   : > { %s5811_s30 = smov %s4238_s15  ;;  %29 = sbr.rel (!%p27_p0) target bundleno = 16 (0x10), region = 137 }
 0x5fc   :  { %2922 = vsyncpa [#allocation5], 1 }
 0x5fd   :  { %2924 = vsyncpa [#allocation5 + $0x1], 1 }
 0x5fe   :  { %2925 = vsyncpa [#allocation8], 1 }
 0x5ff   :  { %2927 = vsyncpa [#allocation8 + $0x1], 1 }
 0x600   :  { %2928 = vsyncpa [#allocation11], 1 }
 0x601   :  { %2929 = vsyncpa [#allocation14], 1 }
 0x602   :  { %2930 = vsyncpa [#allocation17], 1 }
 0x603   :  { %2931 = vsyncpa [#allocation6], 1 }
 0x604   :  { %2933 = vsyncpa [#allocation6 + $0x1], 1 }

</bundles_post_ra>
